<compile_context>
chip_gen: v6e
topology: v6e:2x2x1
jax: 0.10.0
libtpu: 0.0.40
codegen_flags: <defaults>
</compile_context>

<pallas_src>
import jax
import jax.numpy as jnp
from jax.experimental import pallas as pl
from jax.experimental.pallas import tpu as pltpu

D_IN = 1664 * 7 * 7          # 81536
H1, H2, H3, OUT = 1024, 128, 32, 2
NH = 2                       # fc1 output-column shards (megacore-parallel axis)
HB = H1 // NH                # 512 columns per shard


def _pick_tiling():
    """K-tile + scoped-VMEM limit chosen per TPU generation (safe fallback)."""
    tk, vmem_limit = 1664, None          # 49 K-steps; fits 32 MiB default VMEM (v7x-safe)
    try:
        info = pltpu.get_tpu_info()
        cap = getattr(info, "vmem_capacity_bytes", 0) or 0
        if cap >= 100 * 1024 * 1024:     # v5e / v6e: 128 MiB physical VMEM
            tk, vmem_limit = 6272, 64 << 20   # 13 K-steps, big contiguous DMAs
    except Exception:
        pass                              # unknown chip -> conservative TK=1664
    return tk, vmem_limit


# ----------------------------------------------------------------------------
# Kernel 1: fc1 (streamed)  h1[:, h-half] = relu(x @ w1[:, h-half] + b1[h-half])
# ----------------------------------------------------------------------------
def _fc1_kernel(x_ref, w1_ref, b1_ref, h1_ref, acc_ref):
    k = pl.program_id(1)

    @pl.when(k == 0)
    def _():
        acc_ref[...] = jnp.zeros_like(acc_ref)

    w = w1_ref[...]
    xv = x_ref[...]
    if w.dtype != jnp.float32:
        # bf16 weight stream: cast the (tiny) x tile down and take the bf16
        # MXU path; accumulation stays f32 via preferred_element_type.
        xv = xv.astype(w.dtype)
    acc_ref[...] += jnp.dot(xv, w, preferred_element_type=jnp.float32)

    @pl.when(k == pl.num_programs(1) - 1)
    def _():
        h1_ref[...] = jnp.maximum(acc_ref[...] + b1_ref[...], 0.0)


# ----------------------------------------------------------------------------
# Kernel 2: fc2/fc3/fc4 + ReLU + softmax tail (everything fits in VMEM)
# ----------------------------------------------------------------------------
def _tail_kernel(h1_ref, w2_ref, b2_ref, w3_ref, b3_ref, w4_ref, b4_ref,
                 logits_ref, probs_ref):
    h1 = h1_ref[...]
    h2 = jnp.maximum(
        jnp.dot(h1, w2_ref[...], preferred_element_type=jnp.float32)
        + b2_ref[...], 0.0)
    h3 = jnp.maximum(
        jnp.dot(h2, w3_ref[...], preferred_element_type=jnp.float32)
        + b3_ref[...], 0.0)
    logits = (jnp.dot(h3, w4_ref[...], preferred_element_type=jnp.float32)
              + b4_ref[...])
    logits_ref[...] = logits.astype(logits_ref.dtype)

    # softmax over dim=1 (numerically stable)
    m = jnp.max(logits, axis=1, keepdims=True)
    e = jnp.exp(logits - m)
    probs_ref[...] = (e / jnp.sum(e, axis=1, keepdims=True)).astype(probs_ref.dtype)


def discriminator_forward(x, params, *, stream_dtype=jnp.bfloat16):
    """x: (B, 1664, 7, 7). Returns (logits, softmax), each (B, 2) float32.

    stream_dtype: dtype in which the 334 MB fc1 weight matrix is streamed from
    HBM (jnp.bfloat16 halves HBM traffic; jnp.float32 = exact module math).
    """
    w1, b1, w2, b2, w3, b3, w4, b4 = params
    B = x.shape[0]
    x2 = x.reshape(B, D_IN)                       # same flattening as torch .view
    if x2.dtype != jnp.float32:
        x2 = x2.astype(jnp.float32)
    w1s = w1 if w1.dtype == jnp.dtype(stream_dtype) else w1.astype(stream_dtype)

    tk, vmem_limit = _pick_tiling()
    nk = D_IN // tk

    cp_kwargs = dict(dimension_semantics=("parallel", "arbitrary"))
    if vmem_limit is not None:
        cp_kwargs["vmem_limit_bytes"] = vmem_limit
    compiler_params = pltpu.CompilerParams(**cp_kwargs)

    h1 = pl.pallas_call(
        _fc1_kernel,
        out_shape=jax.ShapeDtypeStruct((B, H1), jnp.float32),
        grid_spec=pltpu.PrefetchScalarGridSpec(
            num_scalar_prefetch=0,
            grid=(NH, nk),                        # (column-half, K-tile); K last
            in_specs=[
                pl.BlockSpec((B, tk),  lambda h, k: (0, k)),   # x tile
                pl.BlockSpec((tk, HB), lambda h, k: (k, h)),   # w1 tile (streamed)
                pl.BlockSpec((1, HB),  lambda h, k: (0, h)),   # b1 half
            ],
            out_specs=pl.BlockSpec((B, HB), lambda h, k: (0, h)),
            scratch_shapes=[pltpu.VMEM((B, HB), jnp.float32)],
        ),
        compiler_params=compiler_params,
    )(x2, w1s, b1)

    logits, probs = pl.pallas_call(
        _tail_kernel,
        out_shape=(jax.ShapeDtypeStruct((B, OUT), jnp.float32),
                   jax.ShapeDtypeStruct((B, OUT), jnp.float32)),
    )(h1, w2, b2, w3, b3, w4, b4)
    return logits, probs


def init_params(key):
    """Deterministic synthetic parameters (weights stored as (in, out))."""
    ks = jax.random.split(key, 8)

    def lin(kw, kb, fan_in, fan_out):
        scale = 1.0 / jnp.sqrt(jnp.float32(fan_in))
        w = jax.random.normal(kw, (fan_in, fan_out), jnp.float32) * scale
        b = jax.random.normal(kb, (1, fan_out), jnp.float32) * scale
        return w, b

    w1, b1 = lin(ks[0], ks[1], D_IN, H1)
    w2, b2 = lin(ks[2], ks[3], H1, H2)
    w3, b3 = lin(ks[4], ks[5], H2, H3)
    w4, b4 = lin(ks[6], ks[7], H3, OUT)
    return (w1, b1, w2, b2, w3, b3, w4, b4)


def reference_forward(x, params, fc1_stream_dtype=jnp.float32):
    """Pure-JAX reference. fc1_stream_dtype mirrors the kernel's w1/x quantization."""
    w1, b1, w2, b2, w3, b3, w4, b4 = params
    h = x.reshape(x.shape[0], D_IN).astype(jnp.float32)
    if jnp.dtype(fc1_stream_dtype) != jnp.float32:
        w1 = w1.astype(fc1_stream_dtype).astype(jnp.float32)
        h = h.astype(fc1_stream_dtype).astype(jnp.float32)
    h = jax.nn.relu(h @ w1 + b1)
    h = jax.nn.relu(h @ w2 + b2)
    h = jax.nn.relu(h @ w3 + b3)
    logits = h @ w4 + b4
    return logits, jax.nn.softmax(logits, axis=1)


if __name__ == "__main__":
    key = jax.random.PRNGKey(0)
    k_x, k_p = jax.random.split(key)

    B = 2
    x = jax.random.normal(k_x, (B, 1664, 7, 7), jnp.float32)
    params = init_params(k_p)

    # ---- exact-precision path (f32 weight stream): original module semantics
    logits32, probs32 = discriminator_forward(x, params, stream_dtype=jnp.float32)
    jax.block_until_ready((logits32, probs32))
    ref_logits, ref_probs = reference_forward(x, params)
    assert logits32.shape == (B, OUT) and probs32.shape == (B, OUT)
    assert bool(jnp.all(jnp.isfinite(logits32))) and bool(jnp.all(jnp.isfinite(probs32)))
    assert bool(jnp.allclose(logits32, ref_logits, rtol=2e-3, atol=2e-3))
    assert bool(jnp.allclose(probs32, ref_probs, rtol=2e-3, atol=2e-3))

    # ---- fast path: bf16 w1 stream (halves the dominant 334 MB HBM read)
    logits_bf, probs_bf = discriminator_forward(x, params, stream_dtype=jnp.bfloat16)
    jax.block_until_ready((logits_bf, probs_bf))
    # tight check against the matched (bf16-quantized fc1) reference
    ref_logits_bf, ref_probs_bf = reference_forward(x, params,
                                                    fc1_stream_dtype=jnp.bfloat16)
    assert bool(jnp.allclose(logits_bf, ref_logits_bf, rtol=2e-3, atol=2e-3))
    assert bool(jnp.allclose(probs_bf, ref_probs_bf, rtol=2e-3, atol=2e-3))
    # bf16 streaming is a small, bounded perturbation of the exact f32 module
    assert bool(jnp.allclose(logits_bf, ref_logits, rtol=5e-2, atol=5e-2))
    assert bool(jnp.allclose(probs_bf, ref_probs, rtol=5e-2, atol=5e-2))

    print("KERNEL_OK")
</pallas_src>

<mosaic_0001>
module attributes {stable_mosaic.version = 11 : i64} {
  func.func @_fc1_kernel(%arg0: i32, %arg1: i32, %arg2: memref<2x1664xf32, #tpu.memory_space<vmem>>, %arg3: memref<1664x512xf32, #tpu.memory_space<vmem>>, %arg4: memref<1x512xf32, #tpu.memory_space<vmem>>, %arg5: memref<2x512xf32, #tpu.memory_space<vmem>>, %arg6: memref<2x512xf32, #tpu.memory_space<vmem>>) attributes {dimension_semantics = [#tpu.dimension_semantics<parallel>, #tpu.dimension_semantics<arbitrary>], iteration_bounds = array<i64: 2, 49>, scalar_prefetch = 0 : i64, scratch_operands = 1 : i64, tpu.core_type = #tpu.core_type<tc>, window_params = [{transform_indices = @transform_0, window_bounds = array<i64: 2, 1664>}, {transform_indices = @transform_1, window_bounds = array<i64: 1664, 512>}, {transform_indices = @transform_2, window_bounds = array<i64: 1, 512>}, {transform_indices = @transform_3, window_bounds = array<i64: 2, 512>}]} {
    %c0_i32 = arith.constant 0 : i32
    %0 = arith.cmpi eq, %arg1, %c0_i32 : i32
    %1 = arith.extui %0 : i1 to i32
    %c0_i32_0 = arith.constant 0 : i32
    %2 = arith.cmpi ne, %1, %c0_i32_0 : i32
    scf.if %2 {
      %cst_9 = arith.constant 0.000000e+00 : f32
      %12 = vector.broadcast %cst_9 : f32 to vector<2x512xf32>
      %c0_10 = arith.constant 0 : index
      %c0_11 = arith.constant 0 : index
      %13 = vector.load %arg6[%c0_10, %c0_11] : memref<2x512xf32, #tpu.memory_space<vmem>>, vector<2x512xf32>
      tpu.vector_store %arg6[%c0_10, %c0_11], %12 {strides = array<i32>} : memref<2x512xf32, #tpu.memory_space<vmem>>, vector<2x512xf32>,
    } else {
    }
    %c0 = arith.constant 0 : index
    %c0_1 = arith.constant 0 : index
    %3 = vector.load %arg3[%c0, %c0_1] : memref<1664x512xf32, #tpu.memory_space<vmem>>, vector<1664x512xf32>
    %c0_2 = arith.constant 0 : index
    %c0_3 = arith.constant 0 : index
    %4 = vector.load %arg2[%c0_2, %c0_3] : memref<2x1664xf32, #tpu.memory_space<vmem>>, vector<2x1664xf32>
    %c0_4 = arith.constant 0 : index
    %c0_5 = arith.constant 0 : index
    %5 = vector.load %arg6[%c0_4, %c0_5] : memref<2x512xf32, #tpu.memory_space<vmem>>, vector<2x512xf32>
    %cst = arith.constant dense<0.000000e+00> : vector<2x512xf32>
    %6 = tpu.matmul %4, %3, %cst {dimension_numbers = #tpu.dot_dimension_numbers<[1], [0], [0], [1], [0, 0, 1, 1], [], []>} : vector<2x1664xf32>, vector<1664x512xf32>, vector<2x512xf32> -> vector<2x512xf32>
    %7 = arith.addf %5, %6 : vector<2x512xf32>
    %c0_6 = arith.constant 0 : index
    %c0_7 = arith.constant 0 : index
    %8 = vector.load %arg6[%c0_6, %c0_7] : memref<2x512xf32, #tpu.memory_space<vmem>>, vector<2x512xf32>
    tpu.vector_store %arg6[%c0_6, %c0_7], %7 {strides = array<i32>} : memref<2x512xf32, #tpu.memory_space<vmem>>, vector<2x512xf32>,
    %c48_i32 = arith.constant 48 : i32
    %9 = arith.cmpi eq, %arg1, %c48_i32 : i32
    %10 = arith.extui %9 : i1 to i32
    %c0_i32_8 = arith.constant 0 : i32
    %11 = arith.cmpi ne, %10, %c0_i32_8 : i32
    scf.if %11 {
      %c0_9 = arith.constant 0 : index
      %c0_10 = arith.constant 0 : index
      %12 = vector.load %arg6[%c0_9, %c0_10] : memref<2x512xf32, #tpu.memory_space<vmem>>, vector<2x512xf32>
      %c0_11 = arith.constant 0 : index
      %c0_12 = arith.constant 0 : index
      %13 = vector.load %arg4[%c0_11, %c0_12] : memref<1x512xf32, #tpu.memory_space<vmem>>, vector<1x512xf32>
      %14 = vector.broadcast %13 : vector<1x512xf32> to vector<2x512xf32>
      %15 = arith.addf %12, %14 : vector<2x512xf32>
      %cst_13 = arith.constant 0.000000e+00 : f32
      %16 = vector.broadcast %cst_13 : f32 to vector<2x512xf32>
      %17 = arith.maximumf %15, %16 : vector<2x512xf32>
      %c0_14 = arith.constant 0 : index
      %c0_15 = arith.constant 0 : index
      %18 = vector.load %arg5[%c0_14, %c0_15] : memref<2x512xf32, #tpu.memory_space<vmem>>, vector<2x512xf32>
      tpu.vector_store %arg5[%c0_14, %c0_15], %17 {strides = array<i32>} : memref<2x512xf32, #tpu.memory_space<vmem>>, vector<2x512xf32>,
    } else {
    }
    return
  }
  func.func @transform_0(%arg0: i32, %arg1: i32) -> (i32, i32) {
    %c0_i32 = arith.constant 0 : i32
    %c0_i32_0 = arith.constant 0 : i32
    return %c0_i32, %arg1 : i32, i32
  }
  func.func @transform_1(%arg0: i32, %arg1: i32) -> (i32, i32) {
    %c0_i32 = arith.constant 0 : i32
    return %arg1, %arg0 : i32, i32
  }
  func.func @transform_2(%arg0: i32, %arg1: i32) -> (i32, i32) {
    %c0_i32 = arith.constant 0 : i32
    %c0_i32_0 = arith.constant 0 : i32
    return %c0_i32, %arg0 : i32, i32
  }
  func.func @transform_3(%arg0: i32, %arg1: i32) -> (i32, i32) {
    %c0_i32 = arith.constant 0 : i32
    %c0_i32_0 = arith.constant 0 : i32
    return %c0_i32, %arg0 : i32, i32
  }
}

</mosaic_0001>

<bundles_post_ra>
// kernel: tpu_custom_call.1
= control target key start
LH: loop header
LB: loop body
LE: loop exit
PB: predicated region body
PF: predicated region fallthrough
CT: control target
= control target key end

     0   :  { %s4098_s0 = inlined_call_operand.hbm [shape: f32[2,81536], index: 0, kind: input, shape index: {}]   ;;  %s4099_s1 = inlined_call_operand.hbm [shape: f32[81536,1024], index: 1, kind: input, shape index: {}]   ;;  %s4100_s2 = inlined_call_operand.hbm [shape: f32[1,1024], index: 2, kind: input, shape index: {}]   ;;  %s4101_s3 = inlined_call_operand.hbm [shape: f32[2,1024], index: 3, kind: output, shape index: {}]  }
   0x1   :  { %4111 = sst [smem:[#allocation21_spill]] %s4098_s0 }
   0x2   :  { %4112 = sst [smem:[#allocation22_spill]] %s4099_s1 }
   0x3   :  { %4113 = sst [smem:[#allocation23_spill]] %s4101_s3 }
   0x4   :  { %8 = vsyncpa [#allocation4], 0 }
   0x5   :  { %10 = vsyncpa [#allocation4 + $0x1], 0 }
   0x6   :  { %11 = vsyncpa [#allocation7], 0 }
   0x7   :  { %13 = vsyncpa [#allocation7 + $0x1], 0 }
   0x8   :  { %14 = vsyncpa [#allocation5], 0 }
   0x9   :  { %16 = vsyncpa [#allocation5 + $0x1], 0  ;;  %s2849_s12 = smov 0   ;;  %s2851_s13 = smov 0  }
   0xa   :  { %s2853_s14 = smov 0   ;;  %s2855_s15 = smov 0  }
   0xb   :  { %s2857_s16 = smov 0   ;;  %s2859_s17 = smov 0  }
   0xc   :  { %s2861_s18 = smov 0   ;;  %s2863_s19 = smov 0  }
   0xd   :  { %s2865_s20 = smov 0   ;;  %s2867_s21 = smov 0  }
   0xe   :  { %s2869_s22 = smov 0   ;;  %s2871_s23 = smov 0  }
   0xf   :  { %s2873_s24 = smov 0   ;;  %s2875_s25 = smov 0  }
  0x10 LB: > { %4114 = sst [smem:[#allocation14_spill]] %s2797_s20  ;;  %p49_p0 = scmp.eq.s32.totalorder %s2817_s25, 0  ;;  %s2817_s25 = sphi %s2875_s25, %s22_s25   ;;  %s2813_s24 = sphi %s2873_s24, %s4162_s24   ;;  %s2809_s23 = sphi %s2871_s23, %s4161_s23   ;;  %s2805_s22 = sphi %s2869_s22, %s4160_s22   ;;  %s2801_s21 = sphi %s2867_s21, %s4159_s21   ;;  %s2797_s20 = sphi %s2865_s20, %s4147_s20   ;;  %s2793_s19 = sphi %s2863_s19, %s4158_s19   ;;  %s2789_s18 = sphi %s2861_s18, %s4157_s18   ;;  %s2785_s17 = sphi %s2859_s17, %s4156_s17   ;;  %s2781_s16 = sphi %s2857_s16, %s4155_s16   ;;  %s2777_s15 = sphi %s2855_s15, %s4154_s15   ;;  %s2773_s14 = sphi %s2853_s14, %s4153_s14   ;;  %s2769_s13 = sphi %s2851_s13, %s4152_s13   ;;  %s2765_s12 = sphi %s2849_s12, %s4151_s12  }
  0x11   : > { %4115 = sst [smem:[#allocation15_spill]] %s2801_s21  ;;  %p76_p1 = scmp.ne.s32.totalorder %s2785_s17, %s2781_s16 }
  0x12   : > { %4116 = sst [smem:[#allocation16_spill]] %s2805_s22  ;;  %p82_p2 = scmp.ne.s32.totalorder %s2781_s16, %s2777_s15 }
  0x13   : > { %p78_p3 = por %p76_p1, %p49_p0  ;;  %p4108_p4 = scmp.lt.s32.totalorder %s2817_s25, 98 }
  0x14   : > { %s177_s28 = sand.u32 1, %s2817_s25   ;;  %s179_s29 = sand.u32 1, %s2785_s17  }
  0x15   : > { %s2432_s30 = smul.u32 6656, %s179_s29  ;;  %s2410_s4 = sshll.u32 %s2813_s24, 2 }
  0x16   : > { %s2428_s5 = smul.u32 1664, %s2809_s23  ;;  %p2935_p5 = pnand %p4108_p4, %p78_p3 }
  0x17   : > { %s181_s8 = scalar_lea.vmem [#allocation6], %s2432_s30  ;;  %s4118_s1 = sld [smem:[#allocation22_spill]] }
  0x18   : > { %s188_s7 = sadd.s32 %s2428_s5, %s2410_s4  ;;  %s191_s9 = sshll.u32 %s181_s8, 4  ;;  %s192_s9 = int_to_ptr.vmem [resolvable:$true] %s191_s9 }
  0x19   : > { %s2412_s10 = sshll.u32 %s188_s7, 7  ;;  %p2416_p6 = scmp.ge.s32.totalorder %s2817_s25, 1 }
  0x1a   : > { %s2943_s3 = scalar_lea.sflag [#allocation7], %s177_s28  ;;  %p2583_p7 = pneg %p2935_p5 }
  0x1b   : > { %s2594_s29 = scalar_lea.vmem %s192_s9, 106496  ;;  %s2819_s22 = smov [#allocation6]  }
  0x1c   : > { %p2595_p8 = scmp.ne.s32.totalorder %s192_s9, %s2594_s29  ;;  %s2599_s21 = sshll.u32 %s2819_s22, 4  ;;  %s2600_s21 = int_to_ptr.vmem [resolvable:$false] %s2599_s21 }
  0x1d   : > { %s190_s26 = scalar_lea.hbm %s4118_s1, %s2412_s10  ;;  %s2601_s30 = scalar_lea.vmem %s2600_s21, 212992 }
  0x1e   : > { %p2597_p9 = pnand %p2595_p8, %p2583_p7  ;;  %p2602_p11 = scmp.lt.s32.totalorder %s192_s9, %s2600_s21 }
  0x1f   : > { %p2603_p12 = scmp.lt.s32.totalorder %s2601_s30, %s2594_s29 }
  0x20   : > { %p2598_p10 = pneg %p2597_p9 }
  0x21   : > { %p2604_p13 = por %p2603_p12, %p2602_p11 }
  0x23   : > { %p2605_p1 = pnand %p2604_p13, %p2598_p10 }
  0x25   : > { %2608 = shalt.err (!%p2605_p1)
}
  0x26   : > { %s2820_s27 = smov 1024   ;;  %s2821_s21 = smov 512  }
  0x27   : > { %s2822_s22 = smov 32   ;;  %p218_p3 = scmp.lt.s32.totalorder %s2817_s25, 99 }
  0x28   : > { %2449 = dma.hbm_to_vmem [thread:$0]  (!%p2935_p5), %s190_s26, 106496, %s192_s9, %s2943_s3, %s2820_s27, %s2821_s21, %s2822_s22  }
  0x29   : > { %p2953_p7 = pnand %p2416_p6, %p218_p3  ;;  %s2958_s4 = sadd.s32 4294967295, %s2817_s25  }
  0x2a   : > { %s31_s5 = sadd.s32 1, %s2809_s23  ;;  %s41_s7 = sadd.s32 1, %s2797_s20 }
  0x2b   : > { %p32_p8 = scmp.ge.s32.totalorder %s31_s5, 49  ;;  %p48_p5 = scmp.ne.s32.totalorder %s2797_s20, %s2793_s19 }
  0x2c   : > { %p54_p9 = scmp.ne.s32.totalorder %s2793_s19, %s2789_s18  ;;  %s4121_s26 = sadd.s32 1, %s2813_s24 }
  0x2d   : > { %s4164_s5 = smov (%p32_p8, %s31_s5), 0  ;;  %s4166_s26 = smov (!%p32_p8, %s4121_s26), %s2813_s24 }
  0x2e   : > { %4120 = sst [smem:[#allocation17_spill]] %s4164_s5  ;;  %s38_s6 = ssub.s32 %s2809_s23, %s4164_s5 }
  0x2f   : > { %p2975_p6 = por %p49_p0, %p48_p5  ;;  %p36_p10 = scmp.ge.s32.totalorder %s4166_s26, 2 }
  0x30   : > { %p39_p11 = scmp.eq.s32.totalorder %s38_s6, 0  ;;  %p55_p12 = scmp.eq.s32.totalorder %s2958_s4, 0 }
  0x31   : > { %s158_s18 = sand.u32 1, %s2797_s20   ;;  %s4168_s26 = smov (%p36_p10, %s4166_s26), 0 }
  0x32   : > { %4123 = sst [smem:[#allocation18_spill]] %s4168_s26  ;;  %p2988_p13 = por %p55_p12, %p54_p9 }
  0x33   : > { %s2984_s9 = scalar_select %p39_p11, %s2797_s20, %s41_s7  }
  0x34   : > { %s2994_s11 = ssub.s32 %s2813_s24, %s4168_s26  ;;  %p3002_p1 = por %p82_p2, %p55_p12 }
  0x35   : > { %4124 = sst [smem:[#allocation19_spill]] %s2984_s9  ;;  %s66_s29 = sor.u32 %s2994_s11, %s38_s6 }
  0x36   : > { %s4126_s30 = scalar_select %p3002_p1, 1, 0 }
  0x37   : > { %p67_p3 = scmp.eq.s32.totalorder %s66_s29, 0  ;;  %s2431_s27 = smul.u32 26, %s158_s18 }
  0x38   : > { %4127 = sst [smem:[#allocation20_spill]] %s4126_s30  ;;  %p3010_p8 = pnand %p4108_p4, %p2975_p6 }
  0x39   : > { %s4129_s22 = sadd.s32 1, %s2785_s17  ;;  %s2427_s1 = smul.u32 416, %s2809_s23 }
  0x3a   : > { %s3017_s7 = scalar_select %p67_p3, %s2785_s17, %s4129_s22  }
  0x3b   : > { %s162_s6 = scalar_lea.vmem [#allocation3], %s2431_s27  ;;  %s4130_s0 = sld [smem:[#allocation21_spill]] }
  0x3c   : > { %s170_s26 = sshll.u32 %s162_s6, 4  ;;  %s159_s29 = scalar_lea.sflag [#allocation4], %s158_s18  ;;  %s171_s26 = int_to_ptr.vmem [resolvable:$true] %s170_s26 }
  0x3d   : > { %p2611_p2 = pneg %p3010_p8  ;;  %s2622_s8 = scalar_lea.vmem %s171_s26, 416 }
  0x3e   : > { %p2623_p5 = scmp.ne.s32.totalorder %s171_s26, %s2622_s8  ;;  %s2823_s20 = smov [#allocation3]  }
  0x3f   : > { %s2627_s30 = sshll.u32 %s2823_s20, 4  ;;  %s2628_s30 = int_to_ptr.vmem [resolvable:$false] %s2627_s30 }
  0x40   : > { %p2625_p9 = pnand %p2623_p5, %p2611_p2  ;;  %s2629_s22 = scalar_lea.vmem %s2628_s30, 832 }
  0x41   : > { %s168_s9 = scalar_lea.hbm %s4130_s0, %s2427_s1  ;;  %p2630_p10 = scmp.lt.s32.totalorder %s171_s26, %s2628_s30 }
  0x42   : > { %p2626_p6 = pneg %p2625_p9  ;;  %p2631_p11 = scmp.lt.s32.totalorder %s2629_s22, %s2622_s8 }
  0x44   : > { %p2632_p3 = por %p2631_p11, %p2630_p10 }
  0x46   : > { %p2633_p4 = pnand %p2632_p3, %p2626_p6 }
  0x48   : > { %2636 = shalt.err (!%p2633_p4)
}
  0x49   : > { %2446 = dma.hbm_to_vmem [thread:$0]  (!%p3010_p8), %s168_s9, 416, %s171_s26, %s159_s29  }
  0x4a   : > { %s2406_s1 = sadd.s32 4294967294, %s2817_s25   ;;  %p93_p2 = scmp.eq.s32.totalorder %s2994_s11, 0 }
  0x4b   : > { %s95_s20 = sadd.s32 1, %s2773_s14  ;;  %p102_p4 = scmp.ne.s32.totalorder %s2773_s14, %s2769_s13 }
  0x4c   : > { %s3033_s5 = scalar_select %p93_p2, %s2773_s14, %s95_s20  }
  0x4d   : > { %p3037_p5 = por %p102_p4, %p49_p0  ;;  %p108_p9 = scmp.ne.s32.totalorder %s2769_s13, %s2765_s12 }
  0x4e   : > { %p132_p6 = scmp.eq.s32.totalorder %s2958_s4, 97  ;;  %p138_p10 = scmp.eq.s32.totalorder %s2406_s1, 97 }
  0x4f   : > { %p3046_p11 = por %p108_p9, %p55_p12  ;;  %s203_s26 = sand.u32 1, %s2773_s14  }
  0x50   : > { %p3051_p8 = por %p132_p6, %p102_p4  ;;  %p3055_p3 = por %p138_p10, %p108_p9 }
  0x51   : > { %s4132_s30 = scalar_select %p3046_p11, 1, 0 }
  0x52   : > { %s4133_s9 = scalar_select %p3051_p8, 1, 0 }
  0x53   : > { %s4134_s11 = scalar_select %p3055_p3, 1, 0 }
  0x54   : > { %s2413_s27 = sshll.u32 %s203_s26, 2  ;;  %s2429_s21 = sshll.u32 %s2813_s24, 6 }
  0x55   : > { %s211_s29 = scalar_lea.hbm %s4100_s2, %s2429_s21  ;;  %s205_s8 = scalar_lea.vmem [#allocation8], %s2413_s27 }
  0x56   : > { %s213_s22 = sshll.u32 %s205_s8, 4  ;;  %p4135_p0 = scmp.lt.s32.totalorder %s2817_s25, 98  ;;  %s214_s22 = int_to_ptr.vmem [resolvable:$true] %s213_s22 }
  0x57   : > { %s2650_s20 = scalar_lea.vmem %s214_s22, 64  ;;  %s2824_s26 = smov [#allocation8]  }
  0x58   : > { %p3067_p12 = pnand %p4135_p0, %p3037_p5  ;;  %p2651_p4 = scmp.ne.s32.totalorder %s214_s22, %s2650_s20 }
  0x59   : > { %s2655_s0 = sshll.u32 %s2824_s26, 4  ;;  %s2656_s0 = int_to_ptr.vmem [resolvable:$false] %s2655_s0 }
  0x5a   : > { %p2639_p2 = pneg %p3067_p12  ;;  %s2657_s21 = scalar_lea.vmem %s2656_s0, 128 }
  0x5b   : > { %p2658_p10 = scmp.lt.s32.totalorder %s214_s22, %s2656_s0  ;;  %p2659_p3 = scmp.lt.s32.totalorder %s2657_s21, %s2650_s20 }
  0x5c   : > { %p2653_p9 = pnand %p2651_p4, %p2639_p2 }
  0x5d   : > { %p2660_p8 = por %p2659_p3, %p2658_p10 }
  0x5e   : > { %p2654_p6 = pneg %p2653_p9 }
  0x60   : > { %p2661_p11 = pnand %p2660_p8, %p2654_p6 }
  0x62   : > { %2664 = shalt.err (!%p2661_p11)
}
  0x63   : > { %2452 = dma.hbm_to_vmem [thread:$0]  (!%p3067_p12), %s211_s29, 64, %s214_s22, %s2943_s3  }
  0x64   : > { %222 = sbr.rel (%p2953_p7) target bundleno = 810 (0x32a), region = 32  ;;  %s224_s18 = sand.u32 (!%p2953_p7), 1, %s2793_s19  }
  0x65   : > { %s2433_s27 = smul.u32 (!%p2953_p7), 26, %s224_s18  ;;  %s225_s6 = scalar_lea.sflag (!%p2953_p7), [#allocation4], %s224_s18 }
  0x67   : > { %s3079_s15 = scalar_lea.vmem (!%p2953_p7), [#allocation3], %s2433_s27 }
  0x69   : > { %2748 = dma.done.wait (%p2988_p13), %s225_s6, 416  }
  0x6a   : > { %2750 = vsyncadd (%p2988_p13), %s225_s6, 4294966880  ;;  %s233_s8 = sand.u32 1, %s2958_s4   ;;  %s235_s3 = sand.u32 1, %s2781_s16  }
  0x6b   : > { %s2434_s29 = smul.u32 6656, %s235_s3  ;;  %s234_s28 = scalar_lea.sflag [#allocation7], %s233_s8 }
  0x6d   : > { %s3087_s22 = scalar_lea.vmem [#allocation6], %s2434_s29 }
  0x6e   : > { %2752 = dma.done.wait (%p3002_p1), %s234_s28, 106496  }
  0x6f   : > { %2754 = vsyncadd (%p3002_p1), %s234_s28, 4294860800  ;;  %s3094_s1 = sand.u32 1, %s2769_s13   ;;  %p4138_p7 = scmp.ne.s32.totalorder %s4132_s30, 0 }
  0x70   : > { %s2417_s10 = sshll.u32 %s3094_s1, 2 }
  0x71   : > { %s3097_s20 = scalar_lea.vmem [#allocation8], %s2417_s10 }
  0x72   : > { %2756 = dma.done.wait (%p4138_p7), %s234_s28, 64  }
  0x73   : > { %2758 = vsyncadd (%p4138_p7), %s234_s28, 4294967232  ;;  %s2418_s4 = sshll.u32 %s3094_s1, 3  ;;  %s4139_s21 = sld [smem:[#allocation15_spill]] }
  0x74   : > { %s3104_s26 = scalar_lea.vmem [#allocation9], %s2418_s4 }
  0x79   : > { %p2419_p13 = scmp.ne.s32.totalorder %s4139_s21, 0 }
  0x7b   : > { %287 = sbr.rel (%p2419_p13) target bundleno = 130 (0x82), region = 48 }
  0x80   : > { %v2825_v0 = vmov 0.0  }
  0x81   : > { %288 = vst [vmem:[#allocation2] sm:$0xff] %v2825_v0 }
  0x82 PF: > { %v350_v1 = vld [vmem:[%s3087_s22 + $0x1e8] sm:$0xff]  ;;  %v349_v3 = vld [vmem:[%s3087_s22 + $0x1e0] sm:$0xff]  ;;  %s4140_s30 = sld [smem:[#allocation15_spill]] }
  0x83   : > { %v478_v2 = vld [vmem:[%s3087_s22 + $0x5e8] sm:$0xff]  ;;  %1201 = vmatprep.subr.mxu0 %v350_v1  ;;  %v477_v4 = vld [vmem:[%s3087_s22 + $0x5e0] sm:$0xff] }
  0x84   : > { %1272 = vmatprep.subr.mxu1 %v478_v2  ;;  %v346_v5 = vld [vmem:[%s3087_s22 + $0x1c8] sm:$0xff]  ;;  %1202 = vmatpush1.msra.mxu0 %v349_v3  ;;  %v345_v7 = vld [vmem:[%s3087_s22 + $0x1c0] sm:$0xff] }
  0x85   : > { %v474_v6 = vld [vmem:[%s3087_s22 + $0x5c8] sm:$0xff]  ;;  %1273 = vmatpush1.msra.mxu1 %v477_v4  ;;  %v473_v8 = vld [vmem:[%s3087_s22 + $0x5c0] sm:$0xff]  ;;  %1203 = vmatprep.subr.mxu0 %v346_v5 }
  0x86   : > { %v342_v9 = vld [vmem:[%s3087_s22 + $0x1a8] sm:$0xff]  ;;  %1274 = vmatprep.subr.mxu1 %v474_v6  ;;  %v341_v11 = vld [vmem:[%s3087_s22 + $0x1a0] sm:$0xff]  ;;  %1204 = vmatpush1.msra.mxu0 %v345_v7 }
  0x87   : > { %v470_v10 = vld [vmem:[%s3087_s22 + $0x5a8] sm:$0xff]  ;;  %v469_v12 = vld [vmem:[%s3087_s22 + $0x5a0] sm:$0xff]  ;;  %1275 = vmatpush1.msra.mxu1 %v473_v8  ;;  %1205 = vmatprep.subr.mxu0 %v342_v9 }
  0x88   : > { %v338_v13 = vld [vmem:[%s3087_s22 + $0x188] sm:$0xff]  ;;  %1276 = vmatprep.subr.mxu1 %v470_v10  ;;  %v337_v15 = vld [vmem:[%s3087_s22 + $0x180] sm:$0xff]  ;;  %1206 = vmatpush1.msra.mxu0 %v341_v11  ;;  %p2421_p1 = scmp.ne.s32.totalorder %s4140_s30, 48 }
  0x89   : > { %v466_v14 = vld [vmem:[%s3087_s22 + $0x588] sm:$0xff]  ;;  %v465_v16 = vld [vmem:[%s3087_s22 + $0x580] sm:$0xff]  ;;  %1277 = vmatpush1.msra.mxu1 %v469_v12  ;;  %1207 = vmatprep.subr.mxu0 %v338_v13 }
  0x8a   : > { %v334_v17 = vld [vmem:[%s3087_s22 + $0x168] sm:$0xff]  ;;  %1278 = vmatprep.subr.mxu1 %v466_v14  ;;  %v333_v19 = vld [vmem:[%s3087_s22 + $0x160] sm:$0xff]  ;;  %1208 = vmatpush1.msra.mxu0 %v337_v15 }
  0x8b   : > { %v462_v18 = vld [vmem:[%s3087_s22 + $0x568] sm:$0xff]  ;;  %v461_v20 = vld [vmem:[%s3087_s22 + $0x560] sm:$0xff]  ;;  %1279 = vmatpush1.msra.mxu1 %v465_v16  ;;  %1209 = vmatprep.subr.mxu0 %v334_v17 }
  0x8c   : > { %v330_v21 = vld [vmem:[%s3087_s22 + $0x148] sm:$0xff]  ;;  %1280 = vmatprep.subr.mxu1 %v462_v18  ;;  %v329_v23 = vld [vmem:[%s3087_s22 + $0x140] sm:$0xff]  ;;  %1210 = vmatpush1.msra.mxu0 %v333_v19 }
  0x8d   : > { %v458_v22 = vld [vmem:[%s3087_s22 + $0x548] sm:$0xff]  ;;  %v457_v24 = vld [vmem:[%s3087_s22 + $0x540] sm:$0xff]  ;;  %1281 = vmatpush1.msra.mxu1 %v461_v20  ;;  %1211 = vmatprep.subr.mxu0 %v330_v21 }
  0x8e   : > { %v326_v25 = vld [vmem:[%s3087_s22 + $0x128] sm:$0xff]  ;;  %1282 = vmatprep.subr.mxu1 %v458_v22  ;;  %v325_v27 = vld [vmem:[%s3087_s22 + $0x120] sm:$0xff]  ;;  %1212 = vmatpush1.msra.mxu0 %v329_v23 }
  0x8f   : > { %v454_v26 = vld [vmem:[%s3087_s22 + $0x528] sm:$0xff]  ;;  %v453_v28 = vld [vmem:[%s3087_s22 + $0x520] sm:$0xff]  ;;  %1283 = vmatpush1.msra.mxu1 %v457_v24  ;;  %1213 = vmatprep.subr.mxu0 %v326_v25 }
  0x90   : > { %v322_v29 = vld [vmem:[%s3087_s22 + $0x108] sm:$0xff]  ;;  %1284 = vmatprep.subr.mxu1 %v454_v26  ;;  %v321_v31 = vld [vmem:[%s3087_s22 + $0x100] sm:$0xff]  ;;  %1214 = vmatpush1.msra.mxu0 %v325_v27 }
  0x91   : > { %v450_v30 = vld [vmem:[%s3087_s22 + $0x508] sm:$0xff]  ;;  %v449_v32 = vld [vmem:[%s3087_s22 + $0x500] sm:$0xff]  ;;  %1285 = vmatpush1.msra.mxu1 %v453_v28  ;;  %1215 = vmatprep.subr.mxu0 %v322_v29 }
  0x92   : > { %v318_v33 = vld [vmem:[%s3087_s22 + $0xe8] sm:$0xff]  ;;  %1286 = vmatprep.subr.mxu1 %v450_v30  ;;  %v317_v35 = vld [vmem:[%s3087_s22 + $0xe0] sm:$0xff]  ;;  %1216 = vmatpush1.msra.mxu0 %v321_v31  ;;  %v2826_v31 = vmov 1983009808  }
  0x93   : > { %v446_v34 = vld [vmem:[%s3087_s22 + $0x4e8] sm:$0xff]  ;;  %v445_v36 = vld [vmem:[%s3087_s22 + $0x4e0] sm:$0xff]  ;;  %1287 = vmatpush1.msra.mxu1 %v449_v32  ;;  %1217 = vmatprep.subr.mxu0 %v318_v33  ;;  %v1132_v32 = vunpack.c.l.s4 %v2826_v31  ;;  %v1134_v33 = vlaneseq }
  0x94   : > { %v314_v37 = vld [vmem:[%s3087_s22 + $0xc8] sm:$0xff]  ;;  %1288 = vmatprep.subr.mxu1 %v446_v34  ;;  %v313_v39 = vld [vmem:[%s3087_s22 + $0xc0] sm:$0xff]  ;;  %1218 = vmatpush1.msra.mxu0 %v317_v35 }
  0x95   : > { %v442_v38 = vld [vmem:[%s3087_s22 + $0x4c8] sm:$0xff]  ;;  %v441_v40 = vld [vmem:[%s3087_s22 + $0x4c0] sm:$0xff]  ;;  %1289 = vmatpush1.msra.mxu1 %v445_v36  ;;  %1219 = vmatprep.subr.mxu0 %v314_v37 }
  0x96   : > { %v310_v41 = vld [vmem:[%s3087_s22 + $0xa8] sm:$0xff]  ;;  %1290 = vmatprep.subr.mxu1 %v442_v38  ;;  %v309_v43 = vld [vmem:[%s3087_s22 + $0xa0] sm:$0xff]  ;;  %1220 = vmatpush1.msra.mxu0 %v313_v39 }
  0x97   : > { %v438_v42 = vld [vmem:[%s3087_s22 + $0x4a8] sm:$0xff]  ;;  %v437_v44 = vld [vmem:[%s3087_s22 + $0x4a0] sm:$0xff]  ;;  %1291 = vmatpush1.msra.mxu1 %v441_v40  ;;  %1221 = vmatprep.subr.mxu0 %v310_v41 }
  0x98   : > { %v306_v45 = vld [vmem:[%s3087_s22 + $0x88] sm:$0xff]  ;;  %1292 = vmatprep.subr.mxu1 %v438_v42  ;;  %v305_v47 = vld [vmem:[%s3087_s22 + $0x80] sm:$0xff]  ;;  %1222 = vmatpush1.msra.mxu0 %v309_v43  ;;  %v1133_v42 = vunpack.c.0.s8 %v1132_v32  ;;  %v3209_v43 = vshrl.u32 %v1134_v33, 7 }
  0x99   : > { %v434_v46 = vld [vmem:[%s3087_s22 + $0x488] sm:$0xff]  ;;  %v433_v48 = vld [vmem:[%s3087_s22 + $0x480] sm:$0xff]  ;;  %1293 = vmatpush1.msra.mxu1 %v437_v44  ;;  %1223 = vmatprep.subr.mxu0 %v306_v45 }
  0x9a   : > { %v302_v49 = vld [vmem:[%s3087_s22 + $0x68] sm:$0xff]  ;;  %1294 = vmatprep.subr.mxu1 %v434_v46  ;;  %v301_v51 = vld [vmem:[%s3087_s22 + $0x60] sm:$0xff]  ;;  %1224 = vmatpush1.msra.mxu0 %v305_v47 }
  0x9b   : > { %v430_v50 = vld [vmem:[%s3087_s22 + $0x468] sm:$0xff]  ;;  %v429_v52 = vld [vmem:[%s3087_s22 + $0x460] sm:$0xff]  ;;  %1295 = vmatpush1.msra.mxu1 %v433_v48  ;;  %1225 = vmatprep.subr.mxu0 %v302_v49 }
  0x9c   : > { %v298_v53 = vld [vmem:[%s3087_s22 + $0x48] sm:$0xff]  ;;  %1296 = vmatprep.subr.mxu1 %v430_v50  ;;  %v297_v55 = vld [vmem:[%s3087_s22 + $0x40] sm:$0xff]  ;;  %1226 = vmatpush1.msra.mxu0 %v301_v51 }
  0x9d   : > { %v426_v54 = vld [vmem:[%s3087_s22 + $0x448] sm:$0xff]  ;;  %v425_v56 = vld [vmem:[%s3087_s22 + $0x440] sm:$0xff]  ;;  %1297 = vmatpush1.msra.mxu1 %v429_v52  ;;  %1227 = vmatprep.subr.mxu0 %v298_v53  ;;  %v3221_v53 = vsub.s32 %v1133_v42, %v3209_v43 }
  0x9e   : > { %v294_v57 = vld [vmem:[%s3087_s22 + $0x28] sm:$0xff]  ;;  %1298 = vmatprep.subr.mxu1 %v426_v54  ;;  %v293_v59 = vld [vmem:[%s3087_s22 + $0x20] sm:$0xff]  ;;  %1228 = vmatpush1.msra.mxu0 %v297_v55 }
  0x9f   : > { %v422_v58 = vld [vmem:[%s3087_s22 + $0x428] sm:$0xff]  ;;  %v421_v60 = vld [vmem:[%s3087_s22 + $0x420] sm:$0xff]  ;;  %1299 = vmatpush1.msra.mxu1 %v425_v56  ;;  %1229 = vmatprep.subr.mxu0 %v294_v57 }
  0xa0   : > { %v290_v61 = vld [vmem:[%s3087_s22 + $0x8] sm:$0xff]  ;;  %1300 = vmatprep.subr.mxu1 %v422_v58  ;;  %v289_v63 = vld [vmem:[%s3087_s22] sm:$0xff]  ;;  %1230 = vmatpush1.msra.mxu0 %v293_v59 }
  0xa1   : > { %v418_v62 = vld [vmem:[%s3087_s22 + $0x408] sm:$0xff]  ;;  %v417_v0 = vld [vmem:[%s3087_s22 + $0x400] sm:$0xff]  ;;  %1301 = vmatpush1.msra.mxu1 %v421_v60  ;;  %1231 = vmatprep.subr.mxu0 %v290_v61 }
  0xa2   : > { %v414_v1 = vld [vmem:[%s3087_s22 + $0x3e8] sm:$0xff]  ;;  %1302 = vmatprep.subr.mxu1 %v418_v62  ;;  %v413_v3 = vld [vmem:[%s3087_s22 + $0x3e0] sm:$0xff]  ;;  %1232 = vmatpush1.msra.mxu0 %v289_v63 }
  0xa3   : > { %v542_v2 = vld [vmem:[%s3087_s22 + $0x7e8] sm:$0xff]  ;;  %v541_v4 = vld [vmem:[%s3087_s22 + $0x7e0] sm:$0xff]  ;;  %1303 = vmatpush1.msra.mxu1 %v417_v0  ;;  %1233 = vmatprep.subr.mxu0 %v414_v1 }
  0xa4   : > { %v410_v5 = vld [vmem:[%s3087_s22 + $0x3c8] sm:$0xff]  ;;  %1304 = vmatprep.subr.mxu1 %v542_v2  ;;  %v409_v7 = vld [vmem:[%s3087_s22 + $0x3c0] sm:$0xff]  ;;  %1234 = vmatpush2.msra.mxu0 %v413_v3 }
  0xa5   : > { %v538_v6 = vld [vmem:[%s3087_s22 + $0x7c8] sm:$0xff]  ;;  %v537_v8 = vld [vmem:[%s3087_s22 + $0x7c0] sm:$0xff]  ;;  %1305 = vmatpush2.msra.mxu1 %v541_v4  ;;  %1235 = vmatprep.subr.mxu0 %v410_v5 }
  0xa6   : > { %v406_v9 = vld [vmem:[%s3087_s22 + $0x3a8] sm:$0xff]  ;;  %1306 = vmatprep.subr.mxu1 %v538_v6  ;;  %v405_v11 = vld [vmem:[%s3087_s22 + $0x3a0] sm:$0xff]  ;;  %1236 = vmatpush2.msra.mxu0 %v409_v7 }
  0xa7   : > { %v534_v10 = vld [vmem:[%s3087_s22 + $0x7a8] sm:$0xff]  ;;  %v533_v12 = vld [vmem:[%s3087_s22 + $0x7a0] sm:$0xff]  ;;  %1307 = vmatpush2.msra.mxu1 %v537_v8  ;;  %1237 = vmatprep.subr.mxu0 %v406_v9 }
  0xa8   : > { %v402_v13 = vld [vmem:[%s3087_s22 + $0x388] sm:$0xff]  ;;  %1308 = vmatprep.subr.mxu1 %v534_v10  ;;  %v401_v15 = vld [vmem:[%s3087_s22 + $0x380] sm:$0xff]  ;;  %1238 = vmatpush2.msra.mxu0 %v405_v11 }
  0xa9   : > { %v530_v14 = vld [vmem:[%s3087_s22 + $0x788] sm:$0xff]  ;;  %v529_v16 = vld [vmem:[%s3087_s22 + $0x780] sm:$0xff]  ;;  %1309 = vmatpush2.msra.mxu1 %v533_v12  ;;  %1239 = vmatprep.subr.mxu0 %v402_v13 }
  0xaa   : > { %v398_v17 = vld [vmem:[%s3087_s22 + $0x368] sm:$0xff]  ;;  %1310 = vmatprep.subr.mxu1 %v530_v14  ;;  %v397_v19 = vld [vmem:[%s3087_s22 + $0x360] sm:$0xff]  ;;  %1240 = vmatpush2.msra.mxu0 %v401_v15 }
  0xab   : > { %v526_v18 = vld [vmem:[%s3087_s22 + $0x768] sm:$0xff]  ;;  %v525_v20 = vld [vmem:[%s3087_s22 + $0x760] sm:$0xff]  ;;  %1311 = vmatpush2.msra.mxu1 %v529_v16  ;;  %1241 = vmatprep.subr.mxu0 %v398_v17 }
  0xac   : > { %v394_v21 = vld [vmem:[%s3087_s22 + $0x348] sm:$0xff]  ;;  %1312 = vmatprep.subr.mxu1 %v526_v18  ;;  %v393_v23 = vld [vmem:[%s3087_s22 + $0x340] sm:$0xff]  ;;  %1242 = vmatpush2.msra.mxu0 %v397_v19 }
  0xad   : > { %v522_v22 = vld [vmem:[%s3087_s22 + $0x748] sm:$0xff]  ;;  %v521_v24 = vld [vmem:[%s3087_s22 + $0x740] sm:$0xff]  ;;  %1313 = vmatpush2.msra.mxu1 %v525_v20  ;;  %1243 = vmatprep.subr.mxu0 %v394_v21 }
  0xae   : > { %v390_v25 = vld [vmem:[%s3087_s22 + $0x328] sm:$0xff]  ;;  %1314 = vmatprep.subr.mxu1 %v522_v22  ;;  %v389_v27 = vld [vmem:[%s3087_s22 + $0x320] sm:$0xff]  ;;  %1244 = vmatpush2.msra.mxu0 %v393_v23 }
  0xaf   : > { %v518_v26 = vld [vmem:[%s3087_s22 + $0x728] sm:$0xff]  ;;  %v517_v28 = vld [vmem:[%s3087_s22 + $0x720] sm:$0xff]  ;;  %1315 = vmatpush2.msra.mxu1 %v521_v24  ;;  %1245 = vmatprep.subr.mxu0 %v390_v25 }
  0xb0   : > { %v386_v29 = vld [vmem:[%s3087_s22 + $0x308] sm:$0xff]  ;;  %1316 = vmatprep.subr.mxu1 %v518_v26  ;;  %v385_v34 = vld [vmem:[%s3087_s22 + $0x300] sm:$0xff]  ;;  %1246 = vmatpush2.msra.mxu0 %v389_v27 }
  0xb1   : > { %v514_v30 = vld [vmem:[%s3087_s22 + $0x708] sm:$0xff]  ;;  %v513_v35 = vld [vmem:[%s3087_s22 + $0x700] sm:$0xff]  ;;  %1317 = vmatpush2.msra.mxu1 %v517_v28  ;;  %1247 = vmatprep.subr.mxu0 %v386_v29 }
  0xb2   : > { %v382_v36 = vld [vmem:[%s3087_s22 + $0x2e8] sm:$0xff]  ;;  %1318 = vmatprep.subr.mxu1 %v514_v30  ;;  %v381_v38 = vld [vmem:[%s3087_s22 + $0x2e0] sm:$0xff]  ;;  %1248 = vmatpush2.msra.mxu0 %v385_v34 }
  0xb3   : > { %v510_v37 = vld [vmem:[%s3087_s22 + $0x6e8] sm:$0xff]  ;;  %v509_v39 = vld [vmem:[%s3087_s22 + $0x6e0] sm:$0xff]  ;;  %1319 = vmatpush2.msra.mxu1 %v513_v35  ;;  %1249 = vmatprep.subr.mxu0 %v382_v36 }
  0xb4   : > { %v378_v40 = vld [vmem:[%s3087_s22 + $0x2c8] sm:$0xff]  ;;  %1320 = vmatprep.subr.mxu1 %v510_v37  ;;  %v377_v44 = vld [vmem:[%s3087_s22 + $0x2c0] sm:$0xff]  ;;  %1250 = vmatpush2.msra.mxu0 %v381_v38 }
  0xb5   : > { %v506_v41 = vld [vmem:[%s3087_s22 + $0x6c8] sm:$0xff]  ;;  %v505_v45 = vld [vmem:[%s3087_s22 + $0x6c0] sm:$0xff]  ;;  %1321 = vmatpush2.msra.mxu1 %v509_v39  ;;  %1251 = vmatprep.subr.mxu0 %v378_v40 }
  0xb6   : > { %v374_v46 = vld [vmem:[%s3087_s22 + $0x2a8] sm:$0xff]  ;;  %1322 = vmatprep.subr.mxu1 %v506_v41  ;;  %v373_v49 = vld [vmem:[%s3087_s22 + $0x2a0] sm:$0xff]  ;;  %1252 = vmatpush2.msra.mxu0 %v377_v44 }
  0xb7   : > { %v502_v47 = vld [vmem:[%s3087_s22 + $0x6a8] sm:$0xff]  ;;  %v501_v50 = vld [vmem:[%s3087_s22 + $0x6a0] sm:$0xff]  ;;  %1323 = vmatpush2.msra.mxu1 %v505_v45  ;;  %1253 = vmatprep.subr.mxu0 %v374_v46 }
  0xb8   : > { %v1121_v48 = vld [vmem:[%s3079_s15] sm:$0xff]  ;;  %1324 = vmatprep.subr.mxu1 %v502_v47  ;;  %1254 = vmatpush2.msra.mxu0 %v373_v49 }
  0xb9   : > { %v370_v51 = vld [vmem:[%s3087_s22 + $0x288] sm:$0xff]  ;;  %v369_v54 = vld [vmem:[%s3087_s22 + $0x280] sm:$0xff]  ;;  %v1130_v56 = vcombine.high %v1121_v48, %v1121_v48  ;;  %1325 = vmatpush2.msra.mxu1 %v501_v50  ;;  %v3232_v63 = vrot.slane %v1121_v48, %v3221_v53 }
  0xba   : > { %v498_v52 = vld [vmem:[%s3087_s22 + $0x688] sm:$0xff]  ;;  %v497_v55 = vld [vmem:[%s3087_s22 + $0x680] sm:$0xff]  ;;  %1255 = vmatprep.subr.mxu0 %v370_v51 }
  0xbb   : > { %v366_v57 = vld [vmem:[%s3087_s22 + $0x268] sm:$0xff]  ;;  %1326 = vmatprep.subr.mxu1 %v498_v52  ;;  %v365_v59 = vld [vmem:[%s3087_s22 + $0x260] sm:$0xff]  ;;  %1256 = vmatpush2.msra.mxu0 %v369_v54  ;;  %v3237_v2 = vrot.slane %v1130_v56, %v3221_v53  ;;  %v3247_v9 = vcombine.high %v3232_v63, %v3232_v63 }
  0xbc   : > { %v494_v58 = vld [vmem:[%s3087_s22 + $0x668] sm:$0xff]  ;;  %v493_v60 = vld [vmem:[%s3087_s22 + $0x660] sm:$0xff]  ;;  %1327 = vmatpush2.msra.mxu1 %v497_v55  ;;  %1257 = vmatprep.subr.mxu0 %v366_v57 }
  0xbd   : > { %v362_v61 = vld [vmem:[%s3087_s22 + $0x248] sm:$0xff]  ;;  %1328 = vmatprep.subr.mxu1 %v494_v58  ;;  %v361_v0 = vld [vmem:[%s3087_s22 + $0x240] sm:$0xff]  ;;  %1258 = vmatpush2.msra.mxu0 %v365_v59  ;;  %v3252_v11 = vcombine.high %v3237_v2, %v3237_v2 }
  0xbe   : > { %v490_v62 = vld [vmem:[%s3087_s22 + $0x648] sm:$0xff]  ;;  %v489_v1 = vld [vmem:[%s3087_s22 + $0x640] sm:$0xff]  ;;  %1329 = vmatpush2.msra.mxu1 %v493_v60  ;;  %1259 = vmatprep.subr.mxu0 %v362_v61 }
  0xbf   : > { %v358_v3 = vld [vmem:[%s3087_s22 + $0x228] sm:$0xff]  ;;  %1330 = vmatprep.subr.mxu1 %v490_v62  ;;  %v357_v5 = vld [vmem:[%s3087_s22 + $0x220] sm:$0xff]  ;;  %1260 = vmatpush2.msra.mxu0 %v361_v0 }
  0xc0   : > { %v486_v4 = vld [vmem:[%s3087_s22 + $0x628] sm:$0xff]  ;;  %v485_v6 = vld [vmem:[%s3087_s22 + $0x620] sm:$0xff]  ;;  %1331 = vmatpush2.msra.mxu1 %v489_v1  ;;  %1261 = vmatprep.subr.mxu0 %v358_v3 }
  0xc1   : > { %v354_v7 = vld [vmem:[%s3087_s22 + $0x208] sm:$0xff]  ;;  %1332 = vmatprep.subr.mxu1 %v486_v4  ;;  %v353_v10 = vld [vmem:[%s3087_s22 + $0x200] sm:$0xff]  ;;  %1262 = vmatpush2.msra.mxu0 %v357_v5 }
  0xc2   : > { %v482_v8 = vld [vmem:[%s3087_s22 + $0x608] sm:$0xff]  ;;  %1333 = vmatpush2.msra.mxu1 %v485_v6  ;;  %v481_v12 = vld [vmem:[%s3087_s22 + $0x600] sm:$0xff]  ;;  %1263 = vmatprep.subr.mxu0 %v354_v7 }
  0xc3   : > { %1334 = vmatprep.subr.mxu1 %v482_v8  ;;  %1264 = vmatpush2.msra.mxu0 %v353_v10  ;;  %v606_v13 = vld [vmem:[%s3087_s22 + $0x9e8] sm:$0xff]  ;;  %v605_v15 = vld [vmem:[%s3087_s22 + $0x9e0] sm:$0xff] }
  0xc4   : > { %1265 = vmatprep.mubr.f32.mxu0 %v3247_v9  ;;  %v734_v14 = vld [vmem:[%s3087_s22 + $0xde8] sm:$0xff]  ;;  %1335 = vmatpush2.msra.mxu1 %v481_v12  ;;  %v733_v16 = vld [vmem:[%s3087_s22 + $0xde0] sm:$0xff] }
  0xc5   : > { %1336 = vmatprep.mubr.f32.mxu1 %v3252_v11  ;;  %1266 = vmatmul.mubr.f32.vlgmr.msra.gmra.mxu0 %v3232_v63  ;;  %v602_v17 = vld [vmem:[%s3087_s22 + $0x9c8] sm:$0xff]  ;;  %v601_v19 = vld [vmem:[%s3087_s22 + $0x9c0] sm:$0xff] }
  0xc6   : > { %1337 = vmatmul.mubr.f32.vlgmr.msra.gmra.mxu1 %v3237_v2  ;;  %v730_v18 = vld [vmem:[%s3087_s22 + $0xdc8] sm:$0xff]  ;;  %1343 = vmatprep.subr.mxu0 %v606_v13  ;;  %v729_v20 = vld [vmem:[%s3087_s22 + $0xdc0] sm:$0xff] }
  0xc7   : > { %1414 = vmatprep.subr.mxu1 %v734_v14  ;;  %1344 = vmatpush1.msra.mxu0 %v605_v15  ;;  %v598_v21 = vld [vmem:[%s3087_s22 + $0x9a8] sm:$0xff]  ;;  %v597_v23 = vld [vmem:[%s3087_s22 + $0x9a0] sm:$0xff] }
  0xc8   : > { %1415 = vmatpush1.msra.mxu1 %v733_v16  ;;  %v726_v22 = vld [vmem:[%s3087_s22 + $0xda8] sm:$0xff]  ;;  %1345 = vmatprep.subr.mxu0 %v602_v17  ;;  %v725_v24 = vld [vmem:[%s3087_s22 + $0xda0] sm:$0xff] }
  0xc9   : > { %1416 = vmatprep.subr.mxu1 %v730_v18  ;;  %1346 = vmatpush1.msra.mxu0 %v601_v19  ;;  %v594_v25 = vld [vmem:[%s3087_s22 + $0x988] sm:$0xff]  ;;  %v593_v27 = vld [vmem:[%s3087_s22 + $0x980] sm:$0xff] }
  0xca   : > { %1417 = vmatpush1.msra.mxu1 %v729_v20  ;;  %v722_v26 = vld [vmem:[%s3087_s22 + $0xd88] sm:$0xff]  ;;  %1347 = vmatprep.subr.mxu0 %v598_v21  ;;  %v721_v28 = vld [vmem:[%s3087_s22 + $0xd80] sm:$0xff] }
  0xcb   : > { %1418 = vmatprep.subr.mxu1 %v726_v22  ;;  %1348 = vmatpush1.msra.mxu0 %v597_v23  ;;  %v590_v29 = vld [vmem:[%s3087_s22 + $0x968] sm:$0xff]  ;;  %v589_v31 = vld [vmem:[%s3087_s22 + $0x960] sm:$0xff] }
  0xcc   : > { %1419 = vmatpush1.msra.mxu1 %v725_v24  ;;  %v718_v30 = vld [vmem:[%s3087_s22 + $0xd68] sm:$0xff]  ;;  %1349 = vmatprep.subr.mxu0 %v594_v25  ;;  %v717_v32 = vld [vmem:[%s3087_s22 + $0xd60] sm:$0xff] }
  0xcd   : > { %1420 = vmatprep.subr.mxu1 %v722_v26  ;;  %1350 = vmatpush1.msra.mxu0 %v593_v27  ;;  %v586_v33 = vld [vmem:[%s3087_s22 + $0x948] sm:$0xff]  ;;  %v585_v35 = vld [vmem:[%s3087_s22 + $0x940] sm:$0xff] }
  0xce   : > { %1421 = vmatpush1.msra.mxu1 %v721_v28  ;;  %v714_v34 = vld [vmem:[%s3087_s22 + $0xd48] sm:$0xff]  ;;  %1351 = vmatprep.subr.mxu0 %v590_v29  ;;  %v713_v36 = vld [vmem:[%s3087_s22 + $0xd40] sm:$0xff] }
  0xcf   : > { %1422 = vmatprep.subr.mxu1 %v718_v30  ;;  %1352 = vmatpush1.msra.mxu0 %v589_v31  ;;  %v582_v37 = vld [vmem:[%s3087_s22 + $0x928] sm:$0xff]  ;;  %v581_v39 = vld [vmem:[%s3087_s22 + $0x920] sm:$0xff] }
  0xd0   : > { %1423 = vmatpush1.msra.mxu1 %v717_v32  ;;  %v710_v38 = vld [vmem:[%s3087_s22 + $0xd28] sm:$0xff]  ;;  %1353 = vmatprep.subr.mxu0 %v586_v33  ;;  %v709_v40 = vld [vmem:[%s3087_s22 + $0xd20] sm:$0xff] }
  0xd1   : > { %1424 = vmatprep.subr.mxu1 %v714_v34  ;;  %1354 = vmatpush1.msra.mxu0 %v585_v35  ;;  %v578_v41 = vld [vmem:[%s3087_s22 + $0x908] sm:$0xff]  ;;  %v577_v44 = vld [vmem:[%s3087_s22 + $0x900] sm:$0xff] }
  0xd2   : > { %1425 = vmatpush1.msra.mxu1 %v713_v36  ;;  %v706_v42 = vld [vmem:[%s3087_s22 + $0xd08] sm:$0xff]  ;;  %1355 = vmatprep.subr.mxu0 %v582_v37  ;;  %v705_v45 = vld [vmem:[%s3087_s22 + $0xd00] sm:$0xff] }
  0xd3   : > { %1426 = vmatprep.subr.mxu1 %v710_v38  ;;  %1356 = vmatpush1.msra.mxu0 %v581_v39  ;;  %v574_v46 = vld [vmem:[%s3087_s22 + $0x8e8] sm:$0xff]  ;;  %v573_v48 = vld [vmem:[%s3087_s22 + $0x8e0] sm:$0xff] }
  0xd4   : > { %1427 = vmatpush1.msra.mxu1 %v709_v40  ;;  %v702_v47 = vld [vmem:[%s3087_s22 + $0xce8] sm:$0xff]  ;;  %1357 = vmatprep.subr.mxu0 %v578_v41  ;;  %v701_v49 = vld [vmem:[%s3087_s22 + $0xce0] sm:$0xff] }
  0xd5   : > { %1428 = vmatprep.subr.mxu1 %v706_v42  ;;  %1358 = vmatpush1.msra.mxu0 %v577_v44  ;;  %v570_v50 = vld [vmem:[%s3087_s22 + $0x8c8] sm:$0xff]  ;;  %v569_v52 = vld [vmem:[%s3087_s22 + $0x8c0] sm:$0xff] }
  0xd6   : > { %1429 = vmatpush1.msra.mxu1 %v705_v45  ;;  %v698_v51 = vld [vmem:[%s3087_s22 + $0xcc8] sm:$0xff]  ;;  %1359 = vmatprep.subr.mxu0 %v574_v46  ;;  %v697_v54 = vld [vmem:[%s3087_s22 + $0xcc0] sm:$0xff] }
  0xd7   : > { %1430 = vmatprep.subr.mxu1 %v702_v47  ;;  %1360 = vmatpush1.msra.mxu0 %v573_v48  ;;  %v566_v55 = vld [vmem:[%s3087_s22 + $0x8a8] sm:$0xff]  ;;  %v565_v57 = vld [vmem:[%s3087_s22 + $0x8a0] sm:$0xff] }
  0xd8   : > { %1431 = vmatpush1.msra.mxu1 %v701_v49  ;;  %v694_v56 = vld [vmem:[%s3087_s22 + $0xca8] sm:$0xff]  ;;  %1361 = vmatprep.subr.mxu0 %v570_v50  ;;  %v693_v58 = vld [vmem:[%s3087_s22 + $0xca0] sm:$0xff] }
  0xd9   : > { %1432 = vmatprep.subr.mxu1 %v698_v51  ;;  %1362 = vmatpush1.msra.mxu0 %v569_v52  ;;  %v562_v59 = vld [vmem:[%s3087_s22 + $0x888] sm:$0xff]  ;;  %v561_v61 = vld [vmem:[%s3087_s22 + $0x880] sm:$0xff] }
  0xda   : > { %1433 = vmatpush1.msra.mxu1 %v697_v54  ;;  %v690_v60 = vld [vmem:[%s3087_s22 + $0xc88] sm:$0xff]  ;;  %1363 = vmatprep.subr.mxu0 %v566_v55  ;;  %v689_v62 = vld [vmem:[%s3087_s22 + $0xc80] sm:$0xff] }
  0xdb   : > { %1434 = vmatprep.subr.mxu1 %v694_v56  ;;  %1364 = vmatpush1.msra.mxu0 %v565_v57  ;;  %v558_v0 = vld [vmem:[%s3087_s22 + $0x868] sm:$0xff]  ;;  %v557_v3 = vld [vmem:[%s3087_s22 + $0x860] sm:$0xff] }
  0xdc   : > { %1435 = vmatpush1.msra.mxu1 %v693_v58  ;;  %v686_v1 = vld [vmem:[%s3087_s22 + $0xc68] sm:$0xff]  ;;  %1365 = vmatprep.subr.mxu0 %v562_v59  ;;  %v685_v4 = vld [vmem:[%s3087_s22 + $0xc60] sm:$0xff] }
  0xdd   : > { %1436 = vmatprep.subr.mxu1 %v690_v60  ;;  %1366 = vmatpush1.msra.mxu0 %v561_v61  ;;  %v554_v5 = vld [vmem:[%s3087_s22 + $0x848] sm:$0xff]  ;;  %v553_v7 = vld [vmem:[%s3087_s22 + $0x840] sm:$0xff] }
  0xde   : > { %1437 = vmatpush1.msra.mxu1 %v689_v62  ;;  %v682_v6 = vld [vmem:[%s3087_s22 + $0xc48] sm:$0xff]  ;;  %1367 = vmatprep.subr.mxu0 %v558_v0  ;;  %v681_v8 = vld [vmem:[%s3087_s22 + $0xc40] sm:$0xff] }
  0xdf   : > { %1438 = vmatprep.subr.mxu1 %v686_v1  ;;  %1368 = vmatpush1.msra.mxu0 %v557_v3  ;;  %v550_v10 = vld [vmem:[%s3087_s22 + $0x828] sm:$0xff]  ;;  %v549_v13 = vld [vmem:[%s3087_s22 + $0x820] sm:$0xff] }
  0xe0   : > { %1439 = vmatpush1.msra.mxu1 %v685_v4  ;;  %v678_v12 = vld [vmem:[%s3087_s22 + $0xc28] sm:$0xff]  ;;  %1369 = vmatprep.subr.mxu0 %v554_v5  ;;  %v677_v14 = vld [vmem:[%s3087_s22 + $0xc20] sm:$0xff] }
  0xe1   : > { %1440 = vmatprep.subr.mxu1 %v682_v6  ;;  %1370 = vmatpush1.msra.mxu0 %v553_v7  ;;  %v546_v15 = vld [vmem:[%s3087_s22 + $0x808] sm:$0xff]  ;;  %v545_v17 = vld [vmem:[%s3087_s22 + $0x800] sm:$0xff] }
  0xe2   : > { %1441 = vmatpush1.msra.mxu1 %v681_v8  ;;  %v674_v16 = vld [vmem:[%s3087_s22 + $0xc08] sm:$0xff]  ;;  %1371 = vmatprep.subr.mxu0 %v550_v10  ;;  %v673_v18 = vld [vmem:[%s3087_s22 + $0xc00] sm:$0xff] }
  0xe3   : > { %1442 = vmatprep.subr.mxu1 %v678_v12  ;;  %1372 = vmatpush1.msra.mxu0 %v549_v13  ;;  %v670_v19 = vld [vmem:[%s3087_s22 + $0xbe8] sm:$0xff]  ;;  %v669_v21 = vld [vmem:[%s3087_s22 + $0xbe0] sm:$0xff] }
  0xe4   : > { %1443 = vmatpush1.msra.mxu1 %v677_v14  ;;  %v798_v20 = vld [vmem:[%s3087_s22 + $0xfe8] sm:$0xff]  ;;  %1373 = vmatprep.subr.mxu0 %v546_v15  ;;  %v797_v22 = vld [vmem:[%s3087_s22 + $0xfe0] sm:$0xff] }
  0xe5   : > { %1444 = vmatprep.subr.mxu1 %v674_v16  ;;  %1374 = vmatpush1.msra.mxu0 %v545_v17  ;;  %v666_v23 = vld [vmem:[%s3087_s22 + $0xbc8] sm:$0xff]  ;;  %v665_v25 = vld [vmem:[%s3087_s22 + $0xbc0] sm:$0xff] }
  0xe6   : > { %1445 = vmatpush1.msra.mxu1 %v673_v18  ;;  %v794_v24 = vld [vmem:[%s3087_s22 + $0xfc8] sm:$0xff]  ;;  %1375 = vmatprep.subr.mxu0 %v670_v19  ;;  %v793_v26 = vld [vmem:[%s3087_s22 + $0xfc0] sm:$0xff] }
  0xe7   : > { %1446 = vmatprep.subr.mxu1 %v798_v20  ;;  %1376 = vmatpush2.msra.mxu0 %v669_v21  ;;  %v662_v27 = vld [vmem:[%s3087_s22 + $0xba8] sm:$0xff]  ;;  %v661_v29 = vld [vmem:[%s3087_s22 + $0xba0] sm:$0xff] }
  0xe8   : > { %1447 = vmatpush2.msra.mxu1 %v797_v22  ;;  %v790_v28 = vld [vmem:[%s3087_s22 + $0xfa8] sm:$0xff]  ;;  %1377 = vmatprep.subr.mxu0 %v666_v23  ;;  %v789_v30 = vld [vmem:[%s3087_s22 + $0xfa0] sm:$0xff] }
  0xe9   : > { %1448 = vmatprep.subr.mxu1 %v794_v24  ;;  %1378 = vmatpush2.msra.mxu0 %v665_v25  ;;  %v658_v31 = vld [vmem:[%s3087_s22 + $0xb88] sm:$0xff]  ;;  %v657_v33 = vld [vmem:[%s3087_s22 + $0xb80] sm:$0xff] }
  0xea   : > { %1449 = vmatpush2.msra.mxu1 %v793_v26  ;;  %v786_v32 = vld [vmem:[%s3087_s22 + $0xf88] sm:$0xff]  ;;  %1379 = vmatprep.subr.mxu0 %v662_v27  ;;  %v785_v34 = vld [vmem:[%s3087_s22 + $0xf80] sm:$0xff] }
  0xeb   : > { %1450 = vmatprep.subr.mxu1 %v790_v28  ;;  %1380 = vmatpush2.msra.mxu0 %v661_v29  ;;  %v654_v35 = vld [vmem:[%s3087_s22 + $0xb68] sm:$0xff]  ;;  %v653_v37 = vld [vmem:[%s3087_s22 + $0xb60] sm:$0xff] }
  0xec   : > { %1451 = vmatpush2.msra.mxu1 %v789_v30  ;;  %v782_v36 = vld [vmem:[%s3087_s22 + $0xf68] sm:$0xff]  ;;  %1381 = vmatprep.subr.mxu0 %v658_v31  ;;  %v781_v38 = vld [vmem:[%s3087_s22 + $0xf60] sm:$0xff] }
  0xed   : > { %1452 = vmatprep.subr.mxu1 %v786_v32  ;;  %1382 = vmatpush2.msra.mxu0 %v657_v33  ;;  %v650_v39 = vld [vmem:[%s3087_s22 + $0xb48] sm:$0xff]  ;;  %v649_v41 = vld [vmem:[%s3087_s22 + $0xb40] sm:$0xff] }
  0xee   : > { %1453 = vmatpush2.msra.mxu1 %v785_v34  ;;  %v778_v40 = vld [vmem:[%s3087_s22 + $0xf48] sm:$0xff]  ;;  %1383 = vmatprep.subr.mxu0 %v654_v35  ;;  %v777_v42 = vld [vmem:[%s3087_s22 + $0xf40] sm:$0xff] }
  0xef   : > { %1454 = vmatprep.subr.mxu1 %v782_v36  ;;  %1384 = vmatpush2.msra.mxu0 %v653_v37  ;;  %v646_v44 = vld [vmem:[%s3087_s22 + $0xb28] sm:$0xff]  ;;  %v645_v46 = vld [vmem:[%s3087_s22 + $0xb20] sm:$0xff] }
  0xf0   : > { %1455 = vmatpush2.msra.mxu1 %v781_v38  ;;  %v774_v45 = vld [vmem:[%s3087_s22 + $0xf28] sm:$0xff]  ;;  %1385 = vmatprep.subr.mxu0 %v650_v39  ;;  %v773_v47 = vld [vmem:[%s3087_s22 + $0xf20] sm:$0xff] }
  0xf1   : > { %1456 = vmatprep.subr.mxu1 %v778_v40  ;;  %1386 = vmatpush2.msra.mxu0 %v649_v41  ;;  %v642_v48 = vld [vmem:[%s3087_s22 + $0xb08] sm:$0xff]  ;;  %v641_v50 = vld [vmem:[%s3087_s22 + $0xb00] sm:$0xff] }
  0xf2   : > { %1457 = vmatpush2.msra.mxu1 %v777_v42  ;;  %v770_v49 = vld [vmem:[%s3087_s22 + $0xf08] sm:$0xff]  ;;  %1387 = vmatprep.subr.mxu0 %v646_v44  ;;  %v769_v51 = vld [vmem:[%s3087_s22 + $0xf00] sm:$0xff] }
  0xf3   : > { %1458 = vmatprep.subr.mxu1 %v774_v45  ;;  %1388 = vmatpush2.msra.mxu0 %v645_v46  ;;  %v638_v52 = vld [vmem:[%s3087_s22 + $0xae8] sm:$0xff]  ;;  %v637_v55 = vld [vmem:[%s3087_s22 + $0xae0] sm:$0xff] }
  0xf4   : > { %1459 = vmatpush2.msra.mxu1 %v773_v47  ;;  %v766_v54 = vld [vmem:[%s3087_s22 + $0xee8] sm:$0xff]  ;;  %1389 = vmatprep.subr.mxu0 %v642_v48  ;;  %v765_v56 = vld [vmem:[%s3087_s22 + $0xee0] sm:$0xff] }
  0xf5   : > { %1460 = vmatprep.subr.mxu1 %v770_v49  ;;  %1390 = vmatpush2.msra.mxu0 %v641_v50  ;;  %v634_v57 = vld [vmem:[%s3087_s22 + $0xac8] sm:$0xff]  ;;  %v633_v59 = vld [vmem:[%s3087_s22 + $0xac0] sm:$0xff] }
  0xf6   : > { %1461 = vmatpush2.msra.mxu1 %v769_v51  ;;  %v762_v58 = vld [vmem:[%s3087_s22 + $0xec8] sm:$0xff]  ;;  %1391 = vmatprep.subr.mxu0 %v638_v52  ;;  %v761_v60 = vld [vmem:[%s3087_s22 + $0xec0] sm:$0xff] }
  0xf7   : > { %1462 = vmatprep.subr.mxu1 %v766_v54  ;;  %1392 = vmatpush2.msra.mxu0 %v637_v55  ;;  %v630_v61 = vld [vmem:[%s3087_s22 + $0xaa8] sm:$0xff]  ;;  %v629_v0 = vld [vmem:[%s3087_s22 + $0xaa0] sm:$0xff] }
  0xf8   : > { %1463 = vmatpush2.msra.mxu1 %v765_v56  ;;  %v758_v62 = vld [vmem:[%s3087_s22 + $0xea8] sm:$0xff]  ;;  %1393 = vmatprep.subr.mxu0 %v634_v57  ;;  %v757_v1 = vld [vmem:[%s3087_s22 + $0xea0] sm:$0xff] }
  0xf9   : > { %1464 = vmatprep.subr.mxu1 %v762_v58  ;;  %v1122_v3 = vld [vmem:[%s3079_s15 + $0x8] sm:$0xff]  ;;  %1394 = vmatpush2.msra.mxu0 %v633_v59  ;;  %v625_v6 = vld [vmem:[%s3087_s22 + $0xa80] sm:$0xff] }
  0xfa   : > { %1465 = vmatpush2.msra.mxu1 %v761_v60  ;;  %v626_v4 = vld [vmem:[%s3087_s22 + $0xa88] sm:$0xff]  ;;  %1395 = vmatprep.subr.mxu0 %v630_v61  ;;  %v753_v7 = vld [vmem:[%s3087_s22 + $0xe80] sm:$0xff]  ;;  %v1147_v12 = vcombine.high %v1122_v3, %v1122_v3  ;;  %v3379_v17 = vrot.slane %v1122_v3, %v3221_v53 }
  0xfb   : > { %v754_v5 = vld [vmem:[%s3087_s22 + $0xe88] sm:$0xff]  ;;  %1466 = vmatprep.subr.mxu1 %v758_v62  ;;  %1396 = vmatpush2.msra.mxu0 %v629_v0  ;;  %v621_v13 = vld [vmem:[%s3087_s22 + $0xa60] sm:$0xff] }
  0xfc   : > { %1467 = vmatpush2.msra.mxu1 %v757_v1  ;;  %v622_v8 = vld [vmem:[%s3087_s22 + $0xa68] sm:$0xff]  ;;  %1397 = vmatprep.subr.mxu0 %v626_v4  ;;  %v749_v14 = vld [vmem:[%s3087_s22 + $0xe60] sm:$0xff]  ;;  %v3386_v22 = vrot.slane %v1147_v12, %v3221_v53  ;;  %v3394_v27 = vcombine.high %v3379_v17, %v3379_v17 }
  0xfd   : > { %v750_v10 = vld [vmem:[%s3087_s22 + $0xe68] sm:$0xff]  ;;  %1468 = vmatprep.subr.mxu1 %v754_v5  ;;  %1398 = vmatpush2.msra.mxu0 %v625_v6  ;;  %v617_v18 = vld [vmem:[%s3087_s22 + $0xa40] sm:$0xff] }
  0xfe   : > { %1469 = vmatpush2.msra.mxu1 %v753_v7  ;;  %v618_v15 = vld [vmem:[%s3087_s22 + $0xa48] sm:$0xff]  ;;  %1399 = vmatprep.subr.mxu0 %v622_v8  ;;  %v745_v19 = vld [vmem:[%s3087_s22 + $0xe40] sm:$0xff]  ;;  %v3400_v30 = vcombine.high %v3386_v22, %v3386_v22 }
  0xff   : > { %v746_v16 = vld [vmem:[%s3087_s22 + $0xe48] sm:$0xff]  ;;  %1470 = vmatprep.subr.mxu1 %v750_v10  ;;  %1400 = vmatpush2.msra.mxu0 %v621_v13  ;;  %v613_v23 = vld [vmem:[%s3087_s22 + $0xa20] sm:$0xff] }
 0x100   : > { %1471 = vmatpush2.msra.mxu1 %v749_v14  ;;  %v614_v20 = vld [vmem:[%s3087_s22 + $0xa28] sm:$0xff]  ;;  %1401 = vmatprep.subr.mxu0 %v618_v15  ;;  %v741_v24 = vld [vmem:[%s3087_s22 + $0xe20] sm:$0xff] }
 0x101   : > { %v742_v21 = vld [vmem:[%s3087_s22 + $0xe28] sm:$0xff]  ;;  %1472 = vmatprep.subr.mxu1 %v746_v16  ;;  %1402 = vmatpush2.msra.mxu0 %v617_v18  ;;  %v609_v28 = vld [vmem:[%s3087_s22 + $0xa00] sm:$0xff] }
 0x102   : > { %1473 = vmatpush2.msra.mxu1 %v745_v19  ;;  %v610_v25 = vld [vmem:[%s3087_s22 + $0xa08] sm:$0xff]  ;;  %1403 = vmatprep.subr.mxu0 %v614_v20  ;;  %v737_v29 = vld [vmem:[%s3087_s22 + $0xe00] sm:$0xff] }
 0x103   : > { %v738_v26 = vld [vmem:[%s3087_s22 + $0xe08] sm:$0xff]  ;;  %1474 = vmatprep.subr.mxu1 %v742_v21  ;;  %1404 = vmatpush2.msra.mxu0 %v613_v23  ;;  %v861_v33 = vld [vmem:[%s3087_s22 + $0x11e0] sm:$0xff] }
 0x104   : > { %1475 = vmatpush2.msra.mxu1 %v741_v24  ;;  %1405 = vmatprep.subr.mxu0 %v610_v25  ;;  %v862_v31 = vld [vmem:[%s3087_s22 + $0x11e8] sm:$0xff]  ;;  %v989_v34 = vld [vmem:[%s3087_s22 + $0x15e0] sm:$0xff] }
 0x105   : > { %1476 = vmatprep.subr.mxu1 %v738_v26  ;;  %1406 = vmatpush2.msra.mxu0 %v609_v28  ;;  %v990_v32 = vld [vmem:[%s3087_s22 + $0x15e8] sm:$0xff]  ;;  %v857_v37 = vld [vmem:[%s3087_s22 + $0x11c0] sm:$0xff] }
 0x106   : > { %1407 = vmatprep.mubr.f32.mxu0 %v3394_v27  ;;  %1477 = vmatpush2.msra.mxu1 %v737_v29  ;;  %v858_v35 = vld [vmem:[%s3087_s22 + $0x11c8] sm:$0xff]  ;;  %v985_v38 = vld [vmem:[%s3087_s22 + $0x15c0] sm:$0xff] }
 0x107   : > { %1408 = vmatmul.mubr.f32.vlgmr.msra.gmra.mxu0 %v3379_v17  ;;  %1478 = vmatprep.mubr.f32.mxu1 %v3400_v30  ;;  %v986_v36 = vld [vmem:[%s3087_s22 + $0x15c8] sm:$0xff]  ;;  %v853_v41 = vld [vmem:[%s3087_s22 + $0x11a0] sm:$0xff] }
 0x108   : > { %1485 = vmatprep.subr.mxu0 %v862_v31  ;;  %1556 = vmatprep.subr.mxu1 %v990_v32  ;;  %v854_v39 = vld [vmem:[%s3087_s22 + $0x11a8] sm:$0xff]  ;;  %v981_v42 = vld [vmem:[%s3087_s22 + $0x15a0] sm:$0xff] }
 0x109   : > { %1479 = vmatmul.mubr.f32.vlgmr.msra.gmra.mxu1 %v3386_v22  ;;  %1486 = vmatpush1.msra.mxu0 %v861_v33  ;;  %v982_v40 = vld [vmem:[%s3087_s22 + $0x15a8] sm:$0xff]  ;;  %v849_v46 = vld [vmem:[%s3087_s22 + $0x1180] sm:$0xff] }
 0x10a   : > { %1557 = vmatpush1.msra.mxu1 %v989_v34  ;;  %1487 = vmatprep.subr.mxu0 %v858_v35  ;;  %v850_v44 = vld [vmem:[%s3087_s22 + $0x1188] sm:$0xff]  ;;  %v977_v47 = vld [vmem:[%s3087_s22 + $0x1580] sm:$0xff] }
 0x10b   : > { %1558 = vmatprep.subr.mxu1 %v986_v36  ;;  %1488 = vmatpush1.msra.mxu0 %v857_v37  ;;  %v978_v45 = vld [vmem:[%s3087_s22 + $0x1588] sm:$0xff]  ;;  %v845_v50 = vld [vmem:[%s3087_s22 + $0x1160] sm:$0xff] }
 0x10c   : > { %1559 = vmatpush1.msra.mxu1 %v985_v38  ;;  %1489 = vmatprep.subr.mxu0 %v854_v39  ;;  %v846_v48 = vld [vmem:[%s3087_s22 + $0x1168] sm:$0xff]  ;;  %v973_v51 = vld [vmem:[%s3087_s22 + $0x1560] sm:$0xff] }
 0x10d   : > { %1560 = vmatprep.subr.mxu1 %v982_v40  ;;  %1490 = vmatpush1.msra.mxu0 %v853_v41  ;;  %v974_v49 = vld [vmem:[%s3087_s22 + $0x1568] sm:$0xff]  ;;  %v841_v55 = vld [vmem:[%s3087_s22 + $0x1140] sm:$0xff] }
 0x10e   : > { %1561 = vmatpush1.msra.mxu1 %v981_v42  ;;  %1491 = vmatprep.subr.mxu0 %v850_v44  ;;  %v842_v52 = vld [vmem:[%s3087_s22 + $0x1148] sm:$0xff]  ;;  %v969_v56 = vld [vmem:[%s3087_s22 + $0x1540] sm:$0xff] }
 0x10f   : > { %1562 = vmatprep.subr.mxu1 %v978_v45  ;;  %1492 = vmatpush1.msra.mxu0 %v849_v46  ;;  %v970_v54 = vld [vmem:[%s3087_s22 + $0x1548] sm:$0xff]  ;;  %v837_v59 = vld [vmem:[%s3087_s22 + $0x1120] sm:$0xff] }
 0x110   : > { %1563 = vmatpush1.msra.mxu1 %v977_v47  ;;  %1493 = vmatprep.subr.mxu0 %v846_v48  ;;  %v838_v57 = vld [vmem:[%s3087_s22 + $0x1128] sm:$0xff]  ;;  %v965_v60 = vld [vmem:[%s3087_s22 + $0x1520] sm:$0xff] }
 0x111   : > { %1564 = vmatprep.subr.mxu1 %v974_v49  ;;  %1494 = vmatpush1.msra.mxu0 %v845_v50  ;;  %v966_v58 = vld [vmem:[%s3087_s22 + $0x1528] sm:$0xff]  ;;  %v833_v0 = vld [vmem:[%s3087_s22 + $0x1100] sm:$0xff] }
 0x112   : > { %1565 = vmatpush1.msra.mxu1 %v973_v51  ;;  %1495 = vmatprep.subr.mxu0 %v842_v52  ;;  %v834_v61 = vld [vmem:[%s3087_s22 + $0x1108] sm:$0xff]  ;;  %v961_v1 = vld [vmem:[%s3087_s22 + $0x1500] sm:$0xff] }
 0x113   : > { %1566 = vmatprep.subr.mxu1 %v970_v54  ;;  %1496 = vmatpush1.msra.mxu0 %v841_v55  ;;  %v962_v62 = vld [vmem:[%s3087_s22 + $0x1508] sm:$0xff]  ;;  %v829_v5 = vld [vmem:[%s3087_s22 + $0x10e0] sm:$0xff] }
 0x114   : > { %1567 = vmatpush1.msra.mxu1 %v969_v56  ;;  %1497 = vmatprep.subr.mxu0 %v838_v57  ;;  %v830_v3 = vld [vmem:[%s3087_s22 + $0x10e8] sm:$0xff]  ;;  %v957_v6 = vld [vmem:[%s3087_s22 + $0x14e0] sm:$0xff] }
 0x115   : > { %1568 = vmatprep.subr.mxu1 %v966_v58  ;;  %1498 = vmatpush1.msra.mxu0 %v837_v59  ;;  %v958_v4 = vld [vmem:[%s3087_s22 + $0x14e8] sm:$0xff]  ;;  %v825_v10 = vld [vmem:[%s3087_s22 + $0x10c0] sm:$0xff] }
 0x116   : > { %1569 = vmatpush1.msra.mxu1 %v965_v60  ;;  %1499 = vmatprep.subr.mxu0 %v834_v61  ;;  %v826_v7 = vld [vmem:[%s3087_s22 + $0x10c8] sm:$0xff]  ;;  %v953_v12 = vld [vmem:[%s3087_s22 + $0x14c0] sm:$0xff] }
 0x117   : > { %1570 = vmatprep.subr.mxu1 %v962_v62  ;;  %1500 = vmatpush1.msra.mxu0 %v833_v0  ;;  %v954_v8 = vld [vmem:[%s3087_s22 + $0x14c8] sm:$0xff]  ;;  %v821_v15 = vld [vmem:[%s3087_s22 + $0x10a0] sm:$0xff] }
 0x118   : > { %1571 = vmatpush1.msra.mxu1 %v961_v1  ;;  %1501 = vmatprep.subr.mxu0 %v830_v3  ;;  %v822_v13 = vld [vmem:[%s3087_s22 + $0x10a8] sm:$0xff]  ;;  %v949_v16 = vld [vmem:[%s3087_s22 + $0x14a0] sm:$0xff] }
 0x119   : > { %1572 = vmatprep.subr.mxu1 %v958_v4  ;;  %1502 = vmatpush1.msra.mxu0 %v829_v5  ;;  %v950_v14 = vld [vmem:[%s3087_s22 + $0x14a8] sm:$0xff]  ;;  %v817_v20 = vld [vmem:[%s3087_s22 + $0x1080] sm:$0xff] }
 0x11a   : > { %1573 = vmatpush1.msra.mxu1 %v957_v6  ;;  %1503 = vmatprep.subr.mxu0 %v826_v7  ;;  %v818_v18 = vld [vmem:[%s3087_s22 + $0x1088] sm:$0xff]  ;;  %v945_v21 = vld [vmem:[%s3087_s22 + $0x1480] sm:$0xff] }
 0x11b   : > { %1574 = vmatprep.subr.mxu1 %v954_v8  ;;  %1504 = vmatpush1.msra.mxu0 %v825_v10  ;;  %v946_v19 = vld [vmem:[%s3087_s22 + $0x1488] sm:$0xff]  ;;  %v813_v25 = vld [vmem:[%s3087_s22 + $0x1060] sm:$0xff] }
 0x11c   : > { %1575 = vmatpush1.msra.mxu1 %v953_v12  ;;  %1505 = vmatprep.subr.mxu0 %v822_v13  ;;  %v814_v23 = vld [vmem:[%s3087_s22 + $0x1068] sm:$0xff]  ;;  %v941_v26 = vld [vmem:[%s3087_s22 + $0x1460] sm:$0xff] }
 0x11d   : > { %1576 = vmatprep.subr.mxu1 %v950_v14  ;;  %1506 = vmatpush1.msra.mxu0 %v821_v15  ;;  %v942_v24 = vld [vmem:[%s3087_s22 + $0x1468] sm:$0xff]  ;;  %v809_v31 = vld [vmem:[%s3087_s22 + $0x1040] sm:$0xff] }
 0x11e   : > { %1577 = vmatpush1.msra.mxu1 %v949_v16  ;;  %1507 = vmatprep.subr.mxu0 %v818_v18  ;;  %v810_v28 = vld [vmem:[%s3087_s22 + $0x1048] sm:$0xff]  ;;  %v937_v32 = vld [vmem:[%s3087_s22 + $0x1440] sm:$0xff] }
 0x11f   : > { %1578 = vmatprep.subr.mxu1 %v946_v19  ;;  %1508 = vmatpush1.msra.mxu0 %v817_v20  ;;  %v938_v29 = vld [vmem:[%s3087_s22 + $0x1448] sm:$0xff]  ;;  %v805_v35 = vld [vmem:[%s3087_s22 + $0x1020] sm:$0xff] }
 0x120   : > { %1579 = vmatpush1.msra.mxu1 %v945_v21  ;;  %1509 = vmatprep.subr.mxu0 %v814_v23  ;;  %v806_v33 = vld [vmem:[%s3087_s22 + $0x1028] sm:$0xff]  ;;  %v933_v36 = vld [vmem:[%s3087_s22 + $0x1420] sm:$0xff] }
 0x121   : > { %1580 = vmatprep.subr.mxu1 %v942_v24  ;;  %1510 = vmatpush1.msra.mxu0 %v813_v25  ;;  %v934_v34 = vld [vmem:[%s3087_s22 + $0x1428] sm:$0xff]  ;;  %v801_v39 = vld [vmem:[%s3087_s22 + $0x1000] sm:$0xff] }
 0x122   : > { %1581 = vmatpush1.msra.mxu1 %v941_v26  ;;  %1511 = vmatprep.subr.mxu0 %v810_v28  ;;  %v802_v37 = vld [vmem:[%s3087_s22 + $0x1008] sm:$0xff]  ;;  %v929_v40 = vld [vmem:[%s3087_s22 + $0x1400] sm:$0xff] }
 0x123   : > { %1582 = vmatprep.subr.mxu1 %v938_v29  ;;  %1512 = vmatpush1.msra.mxu0 %v809_v31  ;;  %v930_v38 = vld [vmem:[%s3087_s22 + $0x1408] sm:$0xff]  ;;  %v925_v44 = vld [vmem:[%s3087_s22 + $0x13e0] sm:$0xff] }
 0x124   : > { %1583 = vmatpush1.msra.mxu1 %v937_v32  ;;  %1513 = vmatprep.subr.mxu0 %v806_v33  ;;  %v926_v41 = vld [vmem:[%s3087_s22 + $0x13e8] sm:$0xff]  ;;  %v1053_v45 = vld [vmem:[%s3087_s22 + $0x17e0] sm:$0xff] }
 0x125   : > { %1584 = vmatprep.subr.mxu1 %v934_v34  ;;  %1514 = vmatpush1.msra.mxu0 %v805_v35  ;;  %v1054_v42 = vld [vmem:[%s3087_s22 + $0x17e8] sm:$0xff]  ;;  %v921_v48 = vld [vmem:[%s3087_s22 + $0x13c0] sm:$0xff] }
 0x126   : > { %1585 = vmatpush1.msra.mxu1 %v933_v36  ;;  %1515 = vmatprep.subr.mxu0 %v802_v37  ;;  %v922_v46 = vld [vmem:[%s3087_s22 + $0x13c8] sm:$0xff]  ;;  %v1049_v49 = vld [vmem:[%s3087_s22 + $0x17c0] sm:$0xff] }
 0x127   : > { %1586 = vmatprep.subr.mxu1 %v930_v38  ;;  %1516 = vmatpush1.msra.mxu0 %v801_v39  ;;  %v1050_v47 = vld [vmem:[%s3087_s22 + $0x17c8] sm:$0xff]  ;;  %v917_v52 = vld [vmem:[%s3087_s22 + $0x13a0] sm:$0xff] }
 0x128   : > { %1587 = vmatpush1.msra.mxu1 %v929_v40  ;;  %1517 = vmatprep.subr.mxu0 %v926_v41  ;;  %v918_v50 = vld [vmem:[%s3087_s22 + $0x13a8] sm:$0xff]  ;;  %v1045_v54 = vld [vmem:[%s3087_s22 + $0x17a0] sm:$0xff] }
 0x129   : > { %1588 = vmatprep.subr.mxu1 %v1054_v42  ;;  %1518 = vmatpush2.msra.mxu0 %v925_v44  ;;  %v1046_v51 = vld [vmem:[%s3087_s22 + $0x17a8] sm:$0xff]  ;;  %v913_v57 = vld [vmem:[%s3087_s22 + $0x1380] sm:$0xff] }
 0x12a   : > { %1589 = vmatpush2.msra.mxu1 %v1053_v45  ;;  %1519 = vmatprep.subr.mxu0 %v922_v46  ;;  %v914_v55 = vld [vmem:[%s3087_s22 + $0x1388] sm:$0xff]  ;;  %v1041_v58 = vld [vmem:[%s3087_s22 + $0x1780] sm:$0xff] }
 0x12b   : > { %1590 = vmatprep.subr.mxu1 %v1050_v47  ;;  %1520 = vmatpush2.msra.mxu0 %v921_v48  ;;  %v1042_v56 = vld [vmem:[%s3087_s22 + $0x1788] sm:$0xff]  ;;  %v909_v61 = vld [vmem:[%s3087_s22 + $0x1360] sm:$0xff] }
 0x12c   : > { %1591 = vmatpush2.msra.mxu1 %v1049_v49  ;;  %1521 = vmatprep.subr.mxu0 %v918_v50  ;;  %v910_v59 = vld [vmem:[%s3087_s22 + $0x1368] sm:$0xff]  ;;  %v1037_v62 = vld [vmem:[%s3087_s22 + $0x1760] sm:$0xff] }
 0x12d   : > { %1592 = vmatprep.subr.mxu1 %v1046_v51  ;;  %1522 = vmatpush2.msra.mxu0 %v917_v52  ;;  %v1038_v60 = vld [vmem:[%s3087_s22 + $0x1768] sm:$0xff]  ;;  %v905_v3 = vld [vmem:[%s3087_s22 + $0x1340] sm:$0xff] }
 0x12e   : > { %1593 = vmatpush2.msra.mxu1 %v1045_v54  ;;  %1523 = vmatprep.subr.mxu0 %v914_v55  ;;  %v906_v0 = vld [vmem:[%s3087_s22 + $0x1348] sm:$0xff]  ;;  %v1033_v4 = vld [vmem:[%s3087_s22 + $0x1740] sm:$0xff] }
 0x12f   : > { %1594 = vmatprep.subr.mxu1 %v1042_v56  ;;  %1524 = vmatpush2.msra.mxu0 %v913_v57  ;;  %v1034_v1 = vld [vmem:[%s3087_s22 + $0x1748] sm:$0xff]  ;;  %v901_v7 = vld [vmem:[%s3087_s22 + $0x1320] sm:$0xff] }
 0x130   : > { %1595 = vmatpush2.msra.mxu1 %v1041_v58  ;;  %1525 = vmatprep.subr.mxu0 %v910_v59  ;;  %v902_v5 = vld [vmem:[%s3087_s22 + $0x1328] sm:$0xff]  ;;  %v1029_v8 = vld [vmem:[%s3087_s22 + $0x1720] sm:$0xff] }
 0x131   : > { %1596 = vmatprep.subr.mxu1 %v1038_v60  ;;  %1526 = vmatpush2.msra.mxu0 %v909_v61  ;;  %v1030_v6 = vld [vmem:[%s3087_s22 + $0x1728] sm:$0xff]  ;;  %v897_v13 = vld [vmem:[%s3087_s22 + $0x1300] sm:$0xff]  ;;  %v352_v60 = vld [vmem:[%s3087_s22 + $0x1f8] sm:$0xff] }
 0x132   : > { %1597 = vmatpush2.msra.mxu1 %v1037_v62  ;;  %1527 = vmatprep.subr.mxu0 %v906_v0  ;;  %v898_v10 = vld [vmem:[%s3087_s22 + $0x1308] sm:$0xff]  ;;  %v1025_v14 = vld [vmem:[%s3087_s22 + $0x1700] sm:$0xff]  ;;  %v351_v62 = vld [vmem:[%s3087_s22 + $0x1f0] sm:$0xff] }
 0x133   : > { %1598 = vmatprep.subr.mxu1 %v1034_v1  ;;  %1528 = vmatpush2.msra.mxu0 %v905_v3  ;;  %v1026_v12 = vld [vmem:[%s3087_s22 + $0x1708] sm:$0xff]  ;;  %v893_v18 = vld [vmem:[%s3087_s22 + $0x12e0] sm:$0xff]  ;;  %v348_v1 = vld [vmem:[%s3087_s22 + $0x1d8] sm:$0xff] }
 0x134   : > { %1599 = vmatpush2.msra.mxu1 %v1033_v4  ;;  %1529 = vmatprep.subr.mxu0 %v902_v5  ;;  %v894_v15 = vld [vmem:[%s3087_s22 + $0x12e8] sm:$0xff]  ;;  %v1021_v19 = vld [vmem:[%s3087_s22 + $0x16e0] sm:$0xff]  ;;  %v347_v4 = vld [vmem:[%s3087_s22 + $0x1d0] sm:$0xff] }
 0x135   : > { %1600 = vmatprep.subr.mxu1 %v1030_v6  ;;  %1530 = vmatpush2.msra.mxu0 %v901_v7  ;;  %v1022_v16 = vld [vmem:[%s3087_s22 + $0x16e8] sm:$0xff]  ;;  %v889_v23 = vld [vmem:[%s3087_s22 + $0x12c0] sm:$0xff]  ;;  %v344_v6 = vld [vmem:[%s3087_s22 + $0x1b8] sm:$0xff] }
 0x136   : > { %1601 = vmatpush2.msra.mxu1 %v1029_v8  ;;  %1531 = vmatprep.subr.mxu0 %v898_v10  ;;  %v890_v20 = vld [vmem:[%s3087_s22 + $0x12c8] sm:$0xff]  ;;  %v1017_v24 = vld [vmem:[%s3087_s22 + $0x16c0] sm:$0xff]  ;;  %v343_v8 = vld [vmem:[%s3087_s22 + $0x1b0] sm:$0xff] }
 0x137   : > { %1602 = vmatprep.subr.mxu1 %v1026_v12  ;;  %1532 = vmatpush2.msra.mxu0 %v897_v13  ;;  %v1018_v21 = vld [vmem:[%s3087_s22 + $0x16c8] sm:$0xff]  ;;  %v885_v28 = vld [vmem:[%s3087_s22 + $0x12a0] sm:$0xff]  ;;  %v340_v12 = vld [vmem:[%s3087_s22 + $0x198] sm:$0xff] }
 0x138   : > { %1603 = vmatpush2.msra.mxu1 %v1025_v14  ;;  %1533 = vmatprep.subr.mxu0 %v894_v15  ;;  %v886_v25 = vld [vmem:[%s3087_s22 + $0x12a8] sm:$0xff]  ;;  %v1013_v29 = vld [vmem:[%s3087_s22 + $0x16a0] sm:$0xff]  ;;  %v339_v14 = vld [vmem:[%s3087_s22 + $0x190] sm:$0xff] }
 0x139   : > { %1604 = vmatprep.subr.mxu1 %v1022_v16  ;;  %1534 = vmatpush2.msra.mxu0 %v893_v18  ;;  %v1014_v26 = vld [vmem:[%s3087_s22 + $0x16a8] sm:$0xff]  ;;  %v1123_v31 = vld [vmem:[%s3079_s15 + $0x10] sm:$0xff] }
 0x13a   : > { %1605 = vmatpush2.msra.mxu1 %v1021_v19  ;;  %1535 = vmatprep.subr.mxu0 %v890_v20  ;;  %v882_v32 = vld [vmem:[%s3087_s22 + $0x1288] sm:$0xff]  ;;  %v881_v34 = vld [vmem:[%s3087_s22 + $0x1280] sm:$0xff]  ;;  %v1164_v38 = vcombine.high %v1123_v31, %v1123_v31  ;;  %v3526_v44 = vrot.slane %v1123_v31, %v3221_v53  ;;  %v336_v16 = vld [vmem:[%s3087_s22 + $0x178] sm:$0xff] }
 0x13b   : > { %1606 = vmatprep.subr.mxu1 %v1018_v21  ;;  %1536 = vmatpush2.msra.mxu0 %v889_v23  ;;  %v1010_v33 = vld [vmem:[%s3087_s22 + $0x1688] sm:$0xff]  ;;  %v1009_v35 = vld [vmem:[%s3087_s22 + $0x1680] sm:$0xff]  ;;  %v335_v19 = vld [vmem:[%s3087_s22 + $0x170] sm:$0xff] }
 0x13c   : > { %1607 = vmatpush2.msra.mxu1 %v1017_v24  ;;  %1537 = vmatprep.subr.mxu0 %v886_v25  ;;  %v878_v36 = vld [vmem:[%s3087_s22 + $0x1268] sm:$0xff]  ;;  %v877_v39 = vld [vmem:[%s3087_s22 + $0x1260] sm:$0xff]  ;;  %v3533_v49 = vrot.slane %v1164_v38, %v3221_v53  ;;  %v3541_v55 = vcombine.high %v3526_v44, %v3526_v44  ;;  %v332_v21 = vld [vmem:[%s3087_s22 + $0x158] sm:$0xff] }
 0x13d   : > { %1608 = vmatprep.subr.mxu1 %v1014_v26  ;;  %1538 = vmatpush2.msra.mxu0 %v885_v28  ;;  %v1006_v37 = vld [vmem:[%s3087_s22 + $0x1668] sm:$0xff]  ;;  %v1005_v40 = vld [vmem:[%s3087_s22 + $0x1660] sm:$0xff]  ;;  %v331_v24 = vld [vmem:[%s3087_s22 + $0x150] sm:$0xff] }
 0x13e   : > { %1609 = vmatpush2.msra.mxu1 %v1013_v29  ;;  %1539 = vmatprep.subr.mxu0 %v882_v32  ;;  %v874_v41 = vld [vmem:[%s3087_s22 + $0x1248] sm:$0xff]  ;;  %v873_v45 = vld [vmem:[%s3087_s22 + $0x1240] sm:$0xff]  ;;  %v3547_v58 = vcombine.high %v3533_v49, %v3533_v49  ;;  %v328_v26 = vld [vmem:[%s3087_s22 + $0x138] sm:$0xff] }
 0x13f   : > { %1610 = vmatprep.subr.mxu1 %v1010_v33  ;;  %1540 = vmatpush2.msra.mxu0 %v881_v34  ;;  %v1002_v42 = vld [vmem:[%s3087_s22 + $0x1648] sm:$0xff]  ;;  %v1001_v46 = vld [vmem:[%s3087_s22 + $0x1640] sm:$0xff]  ;;  %v327_v29 = vld [vmem:[%s3087_s22 + $0x130] sm:$0xff] }
 0x140   : > { %1611 = vmatpush2.msra.mxu1 %v1009_v35  ;;  %1541 = vmatprep.subr.mxu0 %v878_v36  ;;  %v870_v47 = vld [vmem:[%s3087_s22 + $0x1228] sm:$0xff]  ;;  %v869_v50 = vld [vmem:[%s3087_s22 + $0x1220] sm:$0xff]  ;;  %v324_v32 = vld [vmem:[%s3087_s22 + $0x118] sm:$0xff] }
 0x141   : > { %1612 = vmatprep.subr.mxu1 %v1006_v37  ;;  %1542 = vmatpush2.msra.mxu0 %v877_v39  ;;  %v998_v48 = vld [vmem:[%s3087_s22 + $0x1628] sm:$0xff]  ;;  %v997_v51 = vld [vmem:[%s3087_s22 + $0x1620] sm:$0xff]  ;;  %v323_v34 = vld [vmem:[%s3087_s22 + $0x110] sm:$0xff] }
 0x142   : > { %1613 = vmatpush2.msra.mxu1 %v1005_v40  ;;  %1543 = vmatprep.subr.mxu0 %v874_v41  ;;  %v866_v52 = vld [vmem:[%s3087_s22 + $0x1208] sm:$0xff]  ;;  %v865_v56 = vld [vmem:[%s3087_s22 + $0x1200] sm:$0xff]  ;;  %v320_v36 = vld [vmem:[%s3087_s22 + $0xf8] sm:$0xff] }
 0x143   : > { %1614 = vmatprep.subr.mxu1 %v1002_v42  ;;  %1544 = vmatpush2.msra.mxu0 %v873_v45  ;;  %v994_v54 = vld [vmem:[%s3087_s22 + $0x1608] sm:$0xff]  ;;  %v993_v57 = vld [vmem:[%s3087_s22 + $0x1600] sm:$0xff]  ;;  %v319_v38 = vld [vmem:[%s3087_s22 + $0xf0] sm:$0xff] }
 0x144   : > { %1615 = vmatpush2.msra.mxu1 %v1001_v46  ;;  %1545 = vmatprep.subr.mxu0 %v870_v47  ;;  %v1118_v59 = vld [vmem:[%s3087_s22 + $0x19e8] sm:$0xff]  ;;  %v1117_v61 = vld [vmem:[%s3087_s22 + $0x19e0] sm:$0xff]  ;;  %v316_v40 = vld [vmem:[%s3087_s22 + $0xd8] sm:$0xff] }
 0x145   : > { %1616 = vmatprep.subr.mxu1 %v998_v48  ;;  %1546 = vmatpush2.msra.mxu0 %v869_v50  ;;  %v1114_v0 = vld [vmem:[%s3087_s22 + $0x19c8] sm:$0xff]  ;;  %v1113_v3 = vld [vmem:[%s3087_s22 + $0x19c0] sm:$0xff]  ;;  %v315_v42 = vld [vmem:[%s3087_s22 + $0xd0] sm:$0xff] }
 0x146   : > { %1617 = vmatpush2.msra.mxu1 %v997_v51  ;;  %1547 = vmatprep.subr.mxu0 %v866_v52  ;;  %v1110_v5 = vld [vmem:[%s3087_s22 + $0x19a8] sm:$0xff]  ;;  %v1109_v7 = vld [vmem:[%s3087_s22 + $0x19a0] sm:$0xff]  ;;  %v312_v46 = vld [vmem:[%s3087_s22 + $0xb8] sm:$0xff] }
 0x147   : > { %1618 = vmatprep.subr.mxu1 %v994_v54  ;;  %1548 = vmatpush2.msra.mxu0 %v865_v56  ;;  %v1106_v10 = vld [vmem:[%s3087_s22 + $0x1988] sm:$0xff]  ;;  %v1105_v13 = vld [vmem:[%s3087_s22 + $0x1980] sm:$0xff]  ;;  %v311_v48 = vld [vmem:[%s3087_s22 + $0xb0] sm:$0xff] }
 0x148   : > { %1549 = vmatprep.mubr.f32.mxu0 %v3541_v55  ;;  %1619 = vmatpush2.msra.mxu1 %v993_v57  ;;  %v1102_v15 = vld [vmem:[%s3087_s22 + $0x1968] sm:$0xff]  ;;  %v1101_v18 = vld [vmem:[%s3087_s22 + $0x1960] sm:$0xff]  ;;  %v308_v51 = vld [vmem:[%s3087_s22 + $0x98] sm:$0xff] }
 0x149   : > { %1550 = vmatmul.mubr.f32.vlgmr.msra.gmra.mxu0 %v3526_v44  ;;  %1620 = vmatprep.mubr.f32.mxu1 %v3547_v58  ;;  %v1098_v20 = vld [vmem:[%s3087_s22 + $0x1948] sm:$0xff]  ;;  %v1097_v23 = vld [vmem:[%s3087_s22 + $0x1940] sm:$0xff]  ;;  %v307_v54 = vld [vmem:[%s3087_s22 + $0x90] sm:$0xff] }
 0x14a   : > { %1627 = vmatprep.subr.mxu0 %v1118_v59  ;;  %1698 = vmatprep.subr.mxu1 %v352_v60  ;;  %v1094_v25 = vld [vmem:[%s3087_s22 + $0x1928] sm:$0xff]  ;;  %v1093_v28 = vld [vmem:[%s3087_s22 + $0x1920] sm:$0xff]  ;;  %v304_v57 = vld [vmem:[%s3087_s22 + $0x78] sm:$0xff] }
 0x14b   : > { %1621 = vmatmul.mubr.f32.vlgmr.msra.gmra.mxu1 %v3533_v49  ;;  %1628 = vmatpush1.msra.mxu0 %v1117_v61  ;;  %v1090_v31 = vld [vmem:[%s3087_s22 + $0x1908] sm:$0xff]  ;;  %v1089_v33 = vld [vmem:[%s3087_s22 + $0x1900] sm:$0xff]  ;;  %v303_v60 = vld [vmem:[%s3087_s22 + $0x70] sm:$0xff] }
 0x14c   : > { %1699 = vmatpush1.msra.mxu1 %v351_v62  ;;  %1629 = vmatprep.subr.mxu0 %v1114_v0  ;;  %v1086_v35 = vld [vmem:[%s3087_s22 + $0x18e8] sm:$0xff]  ;;  %v1085_v37 = vld [vmem:[%s3087_s22 + $0x18e0] sm:$0xff]  ;;  %v300_v62 = vld [vmem:[%s3087_s22 + $0x58] sm:$0xff] }
 0x14d   : > { %1700 = vmatprep.subr.mxu1 %v348_v1  ;;  %1630 = vmatpush1.msra.mxu0 %v1113_v3  ;;  %v1082_v39 = vld [vmem:[%s3087_s22 + $0x18c8] sm:$0xff]  ;;  %v1081_v41 = vld [vmem:[%s3087_s22 + $0x18c0] sm:$0xff]  ;;  %v299_v1 = vld [vmem:[%s3087_s22 + $0x50] sm:$0xff] }
 0x14e   : > { %1701 = vmatpush1.msra.mxu1 %v347_v4  ;;  %1631 = vmatprep.subr.mxu0 %v1110_v5  ;;  %v1078_v45 = vld [vmem:[%s3087_s22 + $0x18a8] sm:$0xff]  ;;  %v1077_v47 = vld [vmem:[%s3087_s22 + $0x18a0] sm:$0xff]  ;;  %v296_v4 = vld [vmem:[%s3087_s22 + $0x38] sm:$0xff] }
 0x14f   : > { %1702 = vmatprep.subr.mxu1 %v344_v6  ;;  %1632 = vmatpush1.msra.mxu0 %v1109_v7  ;;  %v1074_v50 = vld [vmem:[%s3087_s22 + $0x1888] sm:$0xff]  ;;  %v1073_v52 = vld [vmem:[%s3087_s22 + $0x1880] sm:$0xff]  ;;  %v295_v6 = vld [vmem:[%s3087_s22 + $0x30] sm:$0xff] }
 0x150   : > { %1703 = vmatpush1.msra.mxu1 %v343_v8  ;;  %1633 = vmatprep.subr.mxu0 %v1106_v10  ;;  %v1070_v56 = vld [vmem:[%s3087_s22 + $0x1868] sm:$0xff]  ;;  %v1069_v59 = vld [vmem:[%s3087_s22 + $0x1860] sm:$0xff]  ;;  %v292_v8 = vld [vmem:[%s3087_s22 + $0x18] sm:$0xff] }
 0x151   : > { %1704 = vmatprep.subr.mxu1 %v340_v12  ;;  %1634 = vmatpush1.msra.mxu0 %v1105_v13  ;;  %v1066_v61 = vld [vmem:[%s3087_s22 + $0x1848] sm:$0xff]  ;;  %v1065_v0 = vld [vmem:[%s3087_s22 + $0x1840] sm:$0xff]  ;;  %v291_v12 = vld [vmem:[%s3087_s22 + $0x10] sm:$0xff] }
 0x152   : > { %1705 = vmatpush1.msra.mxu1 %v339_v14  ;;  %1635 = vmatprep.subr.mxu0 %v1102_v15  ;;  %v1062_v3 = vld [vmem:[%s3087_s22 + $0x1828] sm:$0xff]  ;;  %v1061_v5 = vld [vmem:[%s3087_s22 + $0x1820] sm:$0xff]  ;;  %v416_v14 = vld [vmem:[%s3087_s22 + $0x3f8] sm:$0xff] }
 0x153   : > { %1706 = vmatprep.subr.mxu1 %v336_v16  ;;  %1636 = vmatpush1.msra.mxu0 %v1101_v18  ;;  %v1058_v7 = vld [vmem:[%s3087_s22 + $0x1808] sm:$0xff]  ;;  %v1057_v10 = vld [vmem:[%s3087_s22 + $0x1800] sm:$0xff]  ;;  %v480_v15 = vld [vmem:[%s3087_s22 + $0x5f8] sm:$0xff]  ;;  %v2827_v16 = vmov 0.0  }
 0x154   : > { %1707 = vmatpush1.msra.mxu1 %v335_v19  ;;  %1637 = vmatprep.subr.mxu0 %v1098_v20  ;;  %v2420_v13 = vld.sshfl [vmem:[%s3079_s15 + $0x18] sm:$0x3 pattern:$0x76325410]  ;;  %v415_v18 = vld [vmem:[%s3087_s22 + $0x3f0] sm:$0xff] }
 0x155   : > { %1708 = vmatprep.subr.mxu1 %v332_v21  ;;  %1638 = vmatpush1.msra.mxu0 %v1097_v23  ;;  %v479_v19 = vld [vmem:[%s3087_s22 + $0x5f0] sm:$0xff]  ;;  %v412_v20 = vld [vmem:[%s3087_s22 + $0x3d8] sm:$0xff] }
 0x156   : > { %1709 = vmatpush1.msra.mxu1 %v331_v24  ;;  %1639 = vmatprep.subr.mxu0 %v1094_v25  ;;  %v476_v21 = vld [vmem:[%s3087_s22 + $0x5d8] sm:$0xff]  ;;  %v411_v23 = vld [vmem:[%s3087_s22 + $0x3d0] sm:$0xff] }
 0x157   : > { %1710 = vmatprep.subr.mxu1 %v328_v26  ;;  %1640 = vmatpush1.msra.mxu0 %v1093_v28  ;;  %v475_v24 = vld [vmem:[%s3087_s22 + $0x5d0] sm:$0xff]  ;;  %v408_v25 = vld [vmem:[%s3087_s22 + $0x3b8] sm:$0xff] }
 0x158   : > { %1711 = vmatpush1.msra.mxu1 %v327_v29  ;;  %1641 = vmatprep.subr.mxu0 %v1090_v31  ;;  %v472_v26 = vld [vmem:[%s3087_s22 + $0x5b8] sm:$0xff]  ;;  %v407_v28 = vld [vmem:[%s3087_s22 + $0x3b0] sm:$0xff] }
 0x159   : > { %1712 = vmatprep.subr.mxu1 %v324_v32  ;;  %1642 = vmatpush1.msra.mxu0 %v1089_v33  ;;  %v471_v29 = vld [vmem:[%s3087_s22 + $0x5b0] sm:$0xff]  ;;  %v404_v31 = vld [vmem:[%s3087_s22 + $0x398] sm:$0xff] }
 0x15a   : > { %1713 = vmatpush1.msra.mxu1 %v323_v34  ;;  %1643 = vmatprep.subr.mxu0 %v1086_v35  ;;  %v468_v32 = vld [vmem:[%s3087_s22 + $0x598] sm:$0xff]  ;;  %v403_v33 = vld [vmem:[%s3087_s22 + $0x390] sm:$0xff] }
 0x15b   : > { %1714 = vmatprep.subr.mxu1 %v320_v36  ;;  %1644 = vmatpush1.msra.mxu0 %v1085_v37  ;;  %v467_v34 = vld [vmem:[%s3087_s22 + $0x590] sm:$0xff]  ;;  %v400_v35 = vld [vmem:[%s3087_s22 + $0x378] sm:$0xff] }
 0x15c   : > { %1715 = vmatpush1.msra.mxu1 %v319_v38  ;;  %1645 = vmatprep.subr.mxu0 %v1082_v39  ;;  %v464_v36 = vld [vmem:[%s3087_s22 + $0x578] sm:$0xff]  ;;  %v399_v37 = vld [vmem:[%s3087_s22 + $0x370] sm:$0xff] }
 0x15d   : > { %1716 = vmatprep.subr.mxu1 %v316_v40  ;;  %1646 = vmatpush1.msra.mxu0 %v1081_v41  ;;  %v463_v38 = vld [vmem:[%s3087_s22 + $0x570] sm:$0xff]  ;;  %v396_v39 = vld [vmem:[%s3087_s22 + $0x358] sm:$0xff] }
 0x15e   : > { %1717 = vmatpush1.msra.mxu1 %v315_v42  ;;  %1647 = vmatprep.subr.mxu0 %v1078_v45  ;;  %v460_v40 = vld [vmem:[%s3087_s22 + $0x558] sm:$0xff]  ;;  %v395_v41 = vld [vmem:[%s3087_s22 + $0x350] sm:$0xff] }
 0x15f   : > { %1718 = vmatprep.subr.mxu1 %v312_v46  ;;  %1648 = vmatpush1.msra.mxu0 %v1077_v47  ;;  %v459_v42 = vld [vmem:[%s3087_s22 + $0x550] sm:$0xff]  ;;  %v392_v45 = vld [vmem:[%s3087_s22 + $0x338] sm:$0xff] }
 0x160   : > { %1719 = vmatpush1.msra.mxu1 %v311_v48  ;;  %1649 = vmatprep.subr.mxu0 %v1074_v50  ;;  %v456_v46 = vld [vmem:[%s3087_s22 + $0x538] sm:$0xff]  ;;  %v391_v47 = vld [vmem:[%s3087_s22 + $0x330] sm:$0xff] }
 0x161   : > { %1720 = vmatprep.subr.mxu1 %v308_v51  ;;  %1650 = vmatpush1.msra.mxu0 %v1073_v52  ;;  %v455_v48 = vld [vmem:[%s3087_s22 + $0x530] sm:$0xff]  ;;  %v388_v50 = vld [vmem:[%s3087_s22 + $0x318] sm:$0xff] }
 0x162   : > { %1721 = vmatpush1.msra.mxu1 %v307_v54  ;;  %1651 = vmatprep.subr.mxu0 %v1070_v56  ;;  %v452_v51 = vld [vmem:[%s3087_s22 + $0x518] sm:$0xff]  ;;  %v387_v52 = vld [vmem:[%s3087_s22 + $0x310] sm:$0xff] }
 0x163   : > { %1722 = vmatprep.subr.mxu1 %v304_v57  ;;  %1652 = vmatpush1.msra.mxu0 %v1069_v59  ;;  %v451_v54 = vld [vmem:[%s3087_s22 + $0x510] sm:$0xff]  ;;  %v384_v56 = vld [vmem:[%s3087_s22 + $0x2f8] sm:$0xff] }
 0x164   : > { %1723 = vmatpush1.msra.mxu1 %v303_v60  ;;  %1653 = vmatprep.subr.mxu0 %v1066_v61  ;;  %v448_v57 = vld [vmem:[%s3087_s22 + $0x4f8] sm:$0xff]  ;;  %v383_v59 = vld [vmem:[%s3087_s22 + $0x2f0] sm:$0xff] }
 0x165   : > { %1724 = vmatprep.subr.mxu1 %v300_v62  ;;  %1654 = vmatpush1.msra.mxu0 %v1065_v0  ;;  %v447_v60 = vld [vmem:[%s3087_s22 + $0x4f0] sm:$0xff]  ;;  %v380_v61 = vld [vmem:[%s3087_s22 + $0x2d8] sm:$0xff] }
 0x166   : > { %1725 = vmatpush1.msra.mxu1 %v299_v1  ;;  %1655 = vmatprep.subr.mxu0 %v1062_v3  ;;  %v444_v62 = vld [vmem:[%s3087_s22 + $0x4d8] sm:$0xff]  ;;  %v379_v0 = vld [vmem:[%s3087_s22 + $0x2d0] sm:$0xff] }
 0x167   : > { %1726 = vmatprep.subr.mxu1 %v296_v4  ;;  %1656 = vmatpush1.msra.mxu0 %v1061_v5  ;;  %v443_v1 = vld [vmem:[%s3087_s22 + $0x4d0] sm:$0xff]  ;;  %v376_v3 = vld [vmem:[%s3087_s22 + $0x2b8] sm:$0xff] }
 0x168   : > { %1727 = vmatpush1.msra.mxu1 %v295_v6  ;;  %1657 = vmatprep.subr.mxu0 %v1058_v7  ;;  %v440_v4 = vld [vmem:[%s3087_s22 + $0x4b8] sm:$0xff]  ;;  %v375_v5 = vld [vmem:[%s3087_s22 + $0x2b0] sm:$0xff] }
 0x169   : > { %1728 = vmatprep.subr.mxu1 %v292_v8  ;;  %1658 = vmatpush1.msra.mxu0 %v1057_v10  ;;  %v439_v6 = vld [vmem:[%s3087_s22 + $0x4b0] sm:$0xff]  ;;  %v372_v7 = vld [vmem:[%s3087_s22 + $0x298] sm:$0xff] }
 0x16a   : > { %1691 = vmatprep.mubr.f32.mxu0 %v2827_v16  ;;  %1729 = vmatpush1.msra.mxu1 %v291_v12  ;;  %v436_v8 = vld [vmem:[%s3087_s22 + $0x498] sm:$0xff]  ;;  %v371_v10 = vld [vmem:[%s3087_s22 + $0x290] sm:$0xff] }
 0x16b   : > { %1692 = vmatmul.mubr.f32.vlgmr.msra.gmra.mxu0 %v2420_v13  ;;  %1730 = vmatprep.subr.mxu1 %v416_v14  ;;  %v435_v12 = vld [vmem:[%s3087_s22 + $0x490] sm:$0xff]  ;;  %v368_v13 = vld [vmem:[%s3087_s22 + $0x278] sm:$0xff] }
 0x16c   : > { %1769 = vmatprep.subr.mxu0 %v480_v15  ;;  %1731 = vmatpush2.msra.mxu1 %v415_v18  ;;  %v432_v14 = vld [vmem:[%s3087_s22 + $0x478] sm:$0xff]  ;;  %v367_v15 = vld [vmem:[%s3087_s22 + $0x270] sm:$0xff] }
 0x16d   : > { %1770 = vmatpush1.msra.mxu0 %v479_v19  ;;  %1732 = vmatprep.subr.mxu1 %v412_v20  ;;  %v431_v18 = vld [vmem:[%s3087_s22 + $0x470] sm:$0xff]  ;;  %v364_v19 = vld [vmem:[%s3087_s22 + $0x258] sm:$0xff] }
 0x16e   : > { %1771 = vmatprep.subr.mxu0 %v476_v21  ;;  %1733 = vmatpush2.msra.mxu1 %v411_v23  ;;  %v428_v20 = vld [vmem:[%s3087_s22 + $0x458] sm:$0xff]  ;;  %v363_v21 = vld [vmem:[%s3087_s22 + $0x250] sm:$0xff] }
 0x16f   : > { %1772 = vmatpush1.msra.mxu0 %v475_v24  ;;  %1734 = vmatprep.subr.mxu1 %v408_v25  ;;  %v427_v23 = vld [vmem:[%s3087_s22 + $0x450] sm:$0xff]  ;;  %v360_v24 = vld [vmem:[%s3087_s22 + $0x238] sm:$0xff] }
 0x170   : > { %1773 = vmatprep.subr.mxu0 %v472_v26  ;;  %1735 = vmatpush2.msra.mxu1 %v407_v28  ;;  %v424_v25 = vld [vmem:[%s3087_s22 + $0x438] sm:$0xff]  ;;  %v359_v26 = vld [vmem:[%s3087_s22 + $0x230] sm:$0xff] }
 0x171   : > { %1774 = vmatpush1.msra.mxu0 %v471_v29  ;;  %1736 = vmatprep.subr.mxu1 %v404_v31  ;;  %v423_v28 = vld [vmem:[%s3087_s22 + $0x430] sm:$0xff]  ;;  %v356_v29 = vld [vmem:[%s3087_s22 + $0x218] sm:$0xff] }
 0x172   : > { %1775 = vmatprep.subr.mxu0 %v468_v32  ;;  %1737 = vmatpush2.msra.mxu1 %v403_v33  ;;  %v420_v31 = vld [vmem:[%s3087_s22 + $0x418] sm:$0xff]  ;;  %v355_v32 = vld [vmem:[%s3087_s22 + $0x210] sm:$0xff] }
 0x173   : > { %1776 = vmatpush1.msra.mxu0 %v467_v34  ;;  %1738 = vmatprep.subr.mxu1 %v400_v35  ;;  %v419_v33 = vld [vmem:[%s3087_s22 + $0x410] sm:$0xff]  ;;  %v544_v34 = vld [vmem:[%s3087_s22 + $0x7f8] sm:$0xff] }
 0x174   : > { %1777 = vmatprep.subr.mxu0 %v464_v36  ;;  %1739 = vmatpush2.msra.mxu1 %v399_v37  ;;  %v608_v35 = vld [vmem:[%s3087_s22 + $0x9f8] sm:$0xff]  ;;  %v543_v36 = vld [vmem:[%s3087_s22 + $0x7f0] sm:$0xff] }
 0x175   : > { %1778 = vmatpush1.msra.mxu0 %v463_v38  ;;  %1740 = vmatprep.subr.mxu1 %v396_v39  ;;  %v607_v37 = vld [vmem:[%s3087_s22 + $0x9f0] sm:$0xff]  ;;  %v540_v38 = vld [vmem:[%s3087_s22 + $0x7d8] sm:$0xff] }
 0x176   : > { %1779 = vmatprep.subr.mxu0 %v460_v40  ;;  %1741 = vmatpush2.msra.mxu1 %v395_v41  ;;  %v604_v39 = vld [vmem:[%s3087_s22 + $0x9d8] sm:$0xff]  ;;  %v539_v40 = vld [vmem:[%s3087_s22 + $0x7d0] sm:$0xff] }
 0x177   : > { %1780 = vmatpush1.msra.mxu0 %v459_v42  ;;  %1742 = vmatprep.subr.mxu1 %v392_v45  ;;  %v603_v41 = vld [vmem:[%s3087_s22 + $0x9d0] sm:$0xff]  ;;  %v536_v42 = vld [vmem:[%s3087_s22 + $0x7b8] sm:$0xff] }
 0x178   : > { %1781 = vmatprep.subr.mxu0 %v456_v46  ;;  %1743 = vmatpush2.msra.mxu1 %v391_v47  ;;  %v600_v45 = vld [vmem:[%s3087_s22 + $0x9b8] sm:$0xff]  ;;  %v599_v46 = vld [vmem:[%s3087_s22 + $0x9b0] sm:$0xff] }
 0x179   : > { %1782 = vmatpush1.msra.mxu0 %v455_v48  ;;  %1744 = vmatprep.subr.mxu1 %v388_v50  ;;  %v532_v47 = vld [vmem:[%s3087_s22 + $0x798] sm:$0xff]  ;;  %v531_v48 = vld [vmem:[%s3087_s22 + $0x790] sm:$0xff] }
 0x17a   : > { %1783 = vmatprep.subr.mxu0 %v452_v51  ;;  %1745 = vmatpush2.msra.mxu1 %v387_v52  ;;  %v595_v50 = vld [vmem:[%s3087_s22 + $0x990] sm:$0xff]  ;;  %v528_v51 = vld [vmem:[%s3087_s22 + $0x778] sm:$0xff] }
 0x17b   : > { %1784 = vmatpush1.msra.mxu0 %v451_v54  ;;  %1746 = vmatprep.subr.mxu1 %v384_v56  ;;  %v592_v52 = vld [vmem:[%s3087_s22 + $0x978] sm:$0xff]  ;;  %v527_v54 = vld [vmem:[%s3087_s22 + $0x770] sm:$0xff] }
 0x17c   : > { %1785 = vmatprep.subr.mxu0 %v448_v57  ;;  %1747 = vmatpush2.msra.mxu1 %v383_v59  ;;  %v591_v56 = vld [vmem:[%s3087_s22 + $0x970] sm:$0xff]  ;;  %v524_v57 = vld [vmem:[%s3087_s22 + $0x758] sm:$0xff] }
 0x17d   : > { %1786 = vmatpush1.msra.mxu0 %v447_v60  ;;  %1748 = vmatprep.subr.mxu1 %v380_v61  ;;  %v588_v59 = vld [vmem:[%s3087_s22 + $0x958] sm:$0xff]  ;;  %v523_v60 = vld [vmem:[%s3087_s22 + $0x750] sm:$0xff] }
 0x17e   : > { %1787 = vmatprep.subr.mxu0 %v444_v62  ;;  %1749 = vmatpush2.msra.mxu1 %v379_v0  ;;  %v587_v61 = vld [vmem:[%s3087_s22 + $0x950] sm:$0xff]  ;;  %v520_v62 = vld [vmem:[%s3087_s22 + $0x738] sm:$0xff] }
 0x17f   : > { %1788 = vmatpush1.msra.mxu0 %v443_v1  ;;  %1750 = vmatprep.subr.mxu1 %v376_v3  ;;  %v584_v0 = vld [vmem:[%s3087_s22 + $0x938] sm:$0xff]  ;;  %v519_v1 = vld [vmem:[%s3087_s22 + $0x730] sm:$0xff] }
 0x180   : > { %1789 = vmatprep.subr.mxu0 %v440_v4  ;;  %1751 = vmatpush2.msra.mxu1 %v375_v5  ;;  %v583_v3 = vld [vmem:[%s3087_s22 + $0x930] sm:$0xff]  ;;  %v516_v4 = vld [vmem:[%s3087_s22 + $0x718] sm:$0xff] }
 0x181   : > { %1790 = vmatpush1.msra.mxu0 %v439_v6  ;;  %1752 = vmatprep.subr.mxu1 %v372_v7  ;;  %v580_v5 = vld [vmem:[%s3087_s22 + $0x918] sm:$0xff]  ;;  %v515_v6 = vld [vmem:[%s3087_s22 + $0x710] sm:$0xff] }
 0x182   : > { %1791 = vmatprep.subr.mxu0 %v436_v8  ;;  %1753 = vmatpush2.msra.mxu1 %v371_v10  ;;  %v579_v7 = vld [vmem:[%s3087_s22 + $0x910] sm:$0xff]  ;;  %v512_v8 = vld [vmem:[%s3087_s22 + $0x6f8] sm:$0xff] }
 0x183   : > { %1792 = vmatpush1.msra.mxu0 %v435_v12  ;;  %1754 = vmatprep.subr.mxu1 %v368_v13  ;;  %v576_v10 = vld [vmem:[%s3087_s22 + $0x8f8] sm:$0xff]  ;;  %v511_v12 = vld [vmem:[%s3087_s22 + $0x6f0] sm:$0xff] }
 0x184   : > { %1793 = vmatprep.subr.mxu0 %v432_v14  ;;  %1755 = vmatpush2.msra.mxu1 %v367_v15  ;;  %v575_v13 = vld [vmem:[%s3087_s22 + $0x8f0] sm:$0xff]  ;;  %v508_v14 = vld [vmem:[%s3087_s22 + $0x6d8] sm:$0xff] }
 0x185   : > { %1794 = vmatpush1.msra.mxu0 %v431_v18  ;;  %1756 = vmatprep.subr.mxu1 %v364_v19  ;;  %v572_v15 = vld [vmem:[%s3087_s22 + $0x8d8] sm:$0xff]  ;;  %v507_v18 = vld [vmem:[%s3087_s22 + $0x6d0] sm:$0xff] }
 0x186   : > { %1795 = vmatprep.subr.mxu0 %v428_v20  ;;  %1757 = vmatpush2.msra.mxu1 %v363_v21  ;;  %v571_v19 = vld [vmem:[%s3087_s22 + $0x8d0] sm:$0xff]  ;;  %v504_v20 = vld [vmem:[%s3087_s22 + $0x6b8] sm:$0xff] }
 0x187   : > { %1796 = vmatpush1.msra.mxu0 %v427_v23  ;;  %1758 = vmatprep.subr.mxu1 %v360_v24  ;;  %v568_v21 = vld [vmem:[%s3087_s22 + $0x8b8] sm:$0xff]  ;;  %v503_v23 = vld [vmem:[%s3087_s22 + $0x6b0] sm:$0xff] }
 0x188   : > { %1797 = vmatprep.subr.mxu0 %v424_v25  ;;  %1759 = vmatpush2.msra.mxu1 %v359_v26  ;;  %v567_v24 = vld [vmem:[%s3087_s22 + $0x8b0] sm:$0xff]  ;;  %v500_v25 = vld [vmem:[%s3087_s22 + $0x698] sm:$0xff] }
 0x189   : > { %1798 = vmatpush1.msra.mxu0 %v423_v28  ;;  %1760 = vmatprep.subr.mxu1 %v356_v29  ;;  %v564_v26 = vld [vmem:[%s3087_s22 + $0x898] sm:$0xff]  ;;  %v499_v28 = vld [vmem:[%s3087_s22 + $0x690] sm:$0xff] }
 0x18a   : > { %1799 = vmatprep.subr.mxu0 %v420_v31  ;;  %1761 = vmatpush2.msra.mxu1 %v355_v32  ;;  %v563_v29 = vld [vmem:[%s3087_s22 + $0x890] sm:$0xff]  ;;  %v496_v31 = vld [vmem:[%s3087_s22 + $0x678] sm:$0xff] }
 0x18b   : > { %1800 = vmatpush1.msra.mxu0 %v419_v33  ;;  %1762 = vmatprep.mubr.f32.mxu1 %v3247_v9  ;;  %v535_v9 = vld [vmem:[%s3087_s22 + $0x7b0] sm:$0xff]  ;;  %v560_v32 = vld [vmem:[%s3087_s22 + $0x878] sm:$0xff] }
 0x18c   : > { %1801 = vmatprep.subr.mxu0 %v544_v34  ;;  %1840 = vmatprep.subr.mxu1 %v608_v35  ;;  %v495_v33 = vld [vmem:[%s3087_s22 + $0x670] sm:$0xff]  ;;  %v492_v35 = vld [vmem:[%s3087_s22 + $0x658] sm:$0xff] }
 0x18d   : > { %1763 = vmatmul.mubr.f32.vlgmr.msra.gmra.mxu1 %v3232_v63  ;;  %1802 = vmatpush2.msra.mxu0 %v543_v36  ;;  %v596_v63 = vld [vmem:[%s3087_s22 + $0x998] sm:$0xff]  ;;  %v559_v34 = vld [vmem:[%s3087_s22 + $0x870] sm:$0xff] }
 0x18e   : > { %1841 = vmatpush1.msra.mxu1 %v607_v37  ;;  %1803 = vmatprep.subr.mxu0 %v540_v38  ;;  %v556_v36 = vld [vmem:[%s3087_s22 + $0x858] sm:$0xff]  ;;  %v491_v37 = vld [vmem:[%s3087_s22 + $0x650] sm:$0xff] }
 0x18f   : > { %1842 = vmatprep.subr.mxu1 %v604_v39  ;;  %1804 = vmatpush2.msra.mxu0 %v539_v40  ;;  %v555_v38 = vld [vmem:[%s3087_s22 + $0x850] sm:$0xff]  ;;  %v488_v39 = vld [vmem:[%s3087_s22 + $0x638] sm:$0xff] }
 0x190   : > { %1843 = vmatpush1.msra.mxu1 %v603_v41  ;;  %1805 = vmatprep.subr.mxu0 %v536_v42  ;;  %v552_v40 = vld [vmem:[%s3087_s22 + $0x838] sm:$0xff]  ;;  %v487_v41 = vld [vmem:[%s3087_s22 + $0x630] sm:$0xff] }
 0x191   : > { %1844 = vmatprep.subr.mxu1 %v600_v45  ;;  %1806 = vmatpush2.msra.mxu0 %v535_v9  ;;  %v551_v42 = vld [vmem:[%s3087_s22 + $0x830] sm:$0xff]  ;;  %v484_v45 = vld [vmem:[%s3087_s22 + $0x618] sm:$0xff] }
 0x192   : > { %1845 = vmatpush1.msra.mxu1 %v599_v46  ;;  %1807 = vmatprep.subr.mxu0 %v532_v47  ;;  %v548_v9 = vld [vmem:[%s3087_s22 + $0x818] sm:$0xff]  ;;  %v483_v46 = vld [vmem:[%s3087_s22 + $0x610] sm:$0xff] }
 0x193   : > { %1846 = vmatprep.subr.mxu1 %v596_v63  ;;  %1808 = vmatpush2.msra.mxu0 %v531_v48  ;;  %v547_v47 = vld [vmem:[%s3087_s22 + $0x810] sm:$0xff]  ;;  %v672_v63 = vld [vmem:[%s3087_s22 + $0xbf8] sm:$0xff] }
 0x194   : > { %1847 = vmatpush1.msra.mxu1 %v595_v50  ;;  %1809 = vmatprep.subr.mxu0 %v528_v51  ;;  %v736_v48 = vld [vmem:[%s3087_s22 + $0xdf8] sm:$0xff]  ;;  %v671_v50 = vld [vmem:[%s3087_s22 + $0xbf0] sm:$0xff] }
 0x195   : > { %1848 = vmatprep.subr.mxu1 %v592_v52  ;;  %1810 = vmatpush2.msra.mxu0 %v527_v54  ;;  %v735_v51 = vld [vmem:[%s3087_s22 + $0xdf0] sm:$0xff]  ;;  %v668_v52 = vld [vmem:[%s3087_s22 + $0xbd8] sm:$0xff] }
 0x196   : > { %1849 = vmatpush1.msra.mxu1 %v591_v56  ;;  %1811 = vmatprep.subr.mxu0 %v524_v57  ;;  %v732_v54 = vld [vmem:[%s3087_s22 + $0xdd8] sm:$0xff]  ;;  %v667_v56 = vld [vmem:[%s3087_s22 + $0xbd0] sm:$0xff] }
 0x197   : > { %1850 = vmatprep.subr.mxu1 %v588_v59  ;;  %1812 = vmatpush2.msra.mxu0 %v523_v60  ;;  %v731_v57 = vld [vmem:[%s3087_s22 + $0xdd0] sm:$0xff]  ;;  %v728_v59 = vld [vmem:[%s3087_s22 + $0xdb8] sm:$0xff] }
 0x198   : > { %1851 = vmatpush1.msra.mxu1 %v587_v61  ;;  %1813 = vmatprep.subr.mxu0 %v520_v62  ;;  %v663_v60 = vld [vmem:[%s3087_s22 + $0xbb0] sm:$0xff]  ;;  %v660_v61 = vld [vmem:[%s3087_s22 + $0xb98] sm:$0xff] }
 0x199   : > { %1852 = vmatprep.subr.mxu1 %v584_v0  ;;  %1814 = vmatpush2.msra.mxu0 %v519_v1  ;;  %v724_v62 = vld [vmem:[%s3087_s22 + $0xd98] sm:$0xff]  ;;  %v659_v0 = vld [vmem:[%s3087_s22 + $0xb90] sm:$0xff] }
 0x19a   : > { %1853 = vmatpush1.msra.mxu1 %v583_v3  ;;  %1815 = vmatprep.subr.mxu0 %v516_v4  ;;  %v723_v1 = vld [vmem:[%s3087_s22 + $0xd90] sm:$0xff]  ;;  %v656_v3 = vld [vmem:[%s3087_s22 + $0xb78] sm:$0xff] }
 0x19b   : > { %1854 = vmatprep.subr.mxu1 %v580_v5  ;;  %1816 = vmatpush2.msra.mxu0 %v515_v6  ;;  %v720_v4 = vld [vmem:[%s3087_s22 + $0xd78] sm:$0xff]  ;;  %v655_v5 = vld [vmem:[%s3087_s22 + $0xb70] sm:$0xff] }
 0x19c   : > { %1855 = vmatpush1.msra.mxu1 %v579_v7  ;;  %1817 = vmatprep.subr.mxu0 %v512_v8  ;;  %v719_v6 = vld [vmem:[%s3087_s22 + $0xd70] sm:$0xff]  ;;  %v652_v7 = vld [vmem:[%s3087_s22 + $0xb58] sm:$0xff] }
 0x19d   : > { %1856 = vmatprep.subr.mxu1 %v576_v10  ;;  %1818 = vmatpush2.msra.mxu0 %v511_v12  ;;  %v716_v8 = vld [vmem:[%s3087_s22 + $0xd58] sm:$0xff]  ;;  %v651_v10 = vld [vmem:[%s3087_s22 + $0xb50] sm:$0xff] }
 0x19e   : > { %1857 = vmatpush1.msra.mxu1 %v575_v13  ;;  %1819 = vmatprep.subr.mxu0 %v508_v14  ;;  %v715_v12 = vld [vmem:[%s3087_s22 + $0xd50] sm:$0xff]  ;;  %v648_v13 = vld [vmem:[%s3087_s22 + $0xb38] sm:$0xff] }
 0x19f   : > { %1858 = vmatprep.subr.mxu1 %v572_v15  ;;  %1820 = vmatpush2.msra.mxu0 %v507_v18  ;;  %v712_v14 = vld [vmem:[%s3087_s22 + $0xd38] sm:$0xff]  ;;  %v647_v15 = vld [vmem:[%s3087_s22 + $0xb30] sm:$0xff] }
 0x1a0   : > { %1859 = vmatpush1.msra.mxu1 %v571_v19  ;;  %1821 = vmatprep.subr.mxu0 %v504_v20  ;;  %v711_v18 = vld [vmem:[%s3087_s22 + $0xd30] sm:$0xff]  ;;  %v644_v19 = vld [vmem:[%s3087_s22 + $0xb18] sm:$0xff] }
 0x1a1   : > { %1860 = vmatprep.subr.mxu1 %v568_v21  ;;  %1822 = vmatpush2.msra.mxu0 %v503_v23  ;;  %v708_v20 = vld [vmem:[%s3087_s22 + $0xd18] sm:$0xff]  ;;  %v643_v21 = vld [vmem:[%s3087_s22 + $0xb10] sm:$0xff] }
 0x1a2   : > { %1861 = vmatpush1.msra.mxu1 %v567_v24  ;;  %1823 = vmatprep.subr.mxu0 %v500_v25  ;;  %v707_v23 = vld [vmem:[%s3087_s22 + $0xd10] sm:$0xff]  ;;  %v640_v24 = vld [vmem:[%s3087_s22 + $0xaf8] sm:$0xff] }
 0x1a3   : > { %1862 = vmatprep.subr.mxu1 %v564_v26  ;;  %1824 = vmatpush2.msra.mxu0 %v499_v28  ;;  %v704_v25 = vld [vmem:[%s3087_s22 + $0xcf8] sm:$0xff]  ;;  %v639_v26 = vld [vmem:[%s3087_s22 + $0xaf0] sm:$0xff] }
 0x1a4   : > { %1863 = vmatpush1.msra.mxu1 %v563_v29  ;;  %1825 = vmatprep.subr.mxu0 %v496_v31  ;;  %v703_v28 = vld [vmem:[%s3087_s22 + $0xcf0] sm:$0xff]  ;;  %v636_v29 = vld [vmem:[%s3087_s22 + $0xad8] sm:$0xff] }
 0x1a5   : > { %1864 = vmatprep.subr.mxu1 %v560_v32  ;;  %1826 = vmatpush2.msra.mxu0 %v495_v33  ;;  %v700_v31 = vld [vmem:[%s3087_s22 + $0xcd8] sm:$0xff]  ;;  %v635_v32 = vld [vmem:[%s3087_s22 + $0xad0] sm:$0xff] }
 0x1a6   : > { %1865 = vmatpush1.msra.mxu1 %v559_v34  ;;  %1827 = vmatprep.subr.mxu0 %v492_v35  ;;  %v699_v33 = vld [vmem:[%s3087_s22 + $0xcd0] sm:$0xff]  ;;  %v632_v34 = vld [vmem:[%s3087_s22 + $0xab8] sm:$0xff] }
 0x1a7   : > { %1866 = vmatprep.subr.mxu1 %v556_v36  ;;  %1828 = vmatpush2.msra.mxu0 %v491_v37  ;;  %v696_v35 = vld [vmem:[%s3087_s22 + $0xcb8] sm:$0xff]  ;;  %v631_v36 = vld [vmem:[%s3087_s22 + $0xab0] sm:$0xff] }
 0x1a8   : > { %1867 = vmatpush1.msra.mxu1 %v555_v38  ;;  %1829 = vmatprep.subr.mxu0 %v488_v39  ;;  %v695_v37 = vld [vmem:[%s3087_s22 + $0xcb0] sm:$0xff]  ;;  %v628_v38 = vld [vmem:[%s3087_s22 + $0xa98] sm:$0xff] }
 0x1a9   : > { %1868 = vmatprep.subr.mxu1 %v552_v40  ;;  %1830 = vmatpush2.msra.mxu0 %v487_v41  ;;  %v692_v39 = vld [vmem:[%s3087_s22 + $0xc98] sm:$0xff]  ;;  %v627_v40 = vld [vmem:[%s3087_s22 + $0xa90] sm:$0xff] }
 0x1aa   : > { %1869 = vmatpush1.msra.mxu1 %v551_v42  ;;  %1831 = vmatprep.subr.mxu0 %v484_v45  ;;  %v691_v41 = vld [vmem:[%s3087_s22 + $0xc90] sm:$0xff]  ;;  %v624_v42 = vld [vmem:[%s3087_s22 + $0xa78] sm:$0xff] }
 0x1ab   : > { %1870 = vmatprep.subr.mxu1 %v548_v9  ;;  %1832 = vmatpush2.msra.mxu0 %v483_v46  ;;  %v688_v45 = vld [vmem:[%s3087_s22 + $0xc78] sm:$0xff]  ;;  %v623_v9 = vld [vmem:[%s3087_s22 + $0xa70] sm:$0xff] }
 0x1ac   : > { %1833 = vmatprep.mubr.f32.mxu0 %v3252_v11  ;;  %1871 = vmatpush1.msra.mxu1 %v547_v47  ;;  %v664_v11 = vld [vmem:[%s3087_s22 + $0xbb8] sm:$0xff]  ;;  %v687_v46 = vld [vmem:[%s3087_s22 + $0xc70] sm:$0xff] }
 0x1ad   : > { %1834 = vmatmul.mubr.f32.vlgmr.msra.gmra.mxu0 %v3237_v2  ;;  %1872 = vmatprep.subr.mxu1 %v672_v63  ;;  %v727_v2 = vld [vmem:[%s3087_s22 + $0xdb0] sm:$0xff]  ;;  %v620_v47 = vld [vmem:[%s3087_s22 + $0xa58] sm:$0xff] }
 0x1ae   : > { %1911 = vmatprep.subr.mxu0 %v736_v48  ;;  %1873 = vmatpush2.msra.mxu1 %v671_v50  ;;  %v684_v63 = vld [vmem:[%s3087_s22 + $0xc58] sm:$0xff]  ;;  %v619_v48 = vld [vmem:[%s3087_s22 + $0xa50] sm:$0xff] }
 0x1af   : > { %1912 = vmatpush1.msra.mxu0 %v735_v51  ;;  %1874 = vmatprep.subr.mxu1 %v668_v52  ;;  %v683_v50 = vld [vmem:[%s3087_s22 + $0xc50] sm:$0xff]  ;;  %v616_v51 = vld [vmem:[%s3087_s22 + $0xa38] sm:$0xff] }
 0x1b0   : > { %1913 = vmatprep.subr.mxu0 %v732_v54  ;;  %1875 = vmatpush2.msra.mxu1 %v667_v56  ;;  %v680_v52 = vld [vmem:[%s3087_s22 + $0xc38] sm:$0xff]  ;;  %v615_v54 = vld [vmem:[%s3087_s22 + $0xa30] sm:$0xff] }
 0x1b1   : > { %1914 = vmatpush1.msra.mxu0 %v731_v57  ;;  %1876 = vmatprep.subr.mxu1 %v664_v11  ;;  %v679_v56 = vld [vmem:[%s3087_s22 + $0xc30] sm:$0xff]  ;;  %v612_v57 = vld [vmem:[%s3087_s22 + $0xa18] sm:$0xff] }
 0x1b2   : > { %1915 = vmatprep.subr.mxu0 %v728_v59  ;;  %1877 = vmatpush2.msra.mxu1 %v663_v60  ;;  %v676_v11 = vld [vmem:[%s3087_s22 + $0xc18] sm:$0xff]  ;;  %v611_v59 = vld [vmem:[%s3087_s22 + $0xa10] sm:$0xff] }
 0x1b3   : > { %1916 = vmatpush1.msra.mxu0 %v727_v2  ;;  %1878 = vmatprep.subr.mxu1 %v660_v61  ;;  %v675_v60 = vld [vmem:[%s3087_s22 + $0xc10] sm:$0xff]  ;;  %v800_v2 = vld [vmem:[%s3087_s22 + $0xff8] sm:$0xff] }
 0x1b4   : > { %1917 = vmatprep.subr.mxu0 %v724_v62  ;;  %1879 = vmatpush2.msra.mxu1 %v659_v0  ;;  %v864_v61 = vld [vmem:[%s3087_s22 + $0x11f8] sm:$0xff]  ;;  %v799_v62 = vld [vmem:[%s3087_s22 + $0xff0] sm:$0xff] }
 0x1b5   : > { %1918 = vmatpush1.msra.mxu0 %v723_v1  ;;  %1880 = vmatprep.subr.mxu1 %v656_v3  ;;  %v863_v0 = vld [vmem:[%s3087_s22 + $0x11f0] sm:$0xff]  ;;  %v796_v1 = vld [vmem:[%s3087_s22 + $0xfd8] sm:$0xff] }
 0x1b6   : > { %1919 = vmatprep.subr.mxu0 %v720_v4  ;;  %1881 = vmatpush2.msra.mxu1 %v655_v5  ;;  %v860_v3 = vld [vmem:[%s3087_s22 + $0x11d8] sm:$0xff]  ;;  %v795_v4 = vld [vmem:[%s3087_s22 + $0xfd0] sm:$0xff] }
 0x1b7   : > { %1920 = vmatpush1.msra.mxu0 %v719_v6  ;;  %1882 = vmatprep.subr.mxu1 %v652_v7  ;;  %v859_v5 = vld [vmem:[%s3087_s22 + $0x11d0] sm:$0xff]  ;;  %v856_v6 = vld [vmem:[%s3087_s22 + $0x11b8] sm:$0xff] }
 0x1b8   : > { %1921 = vmatprep.subr.mxu0 %v716_v8  ;;  %1883 = vmatpush2.msra.mxu1 %v651_v10  ;;  %v791_v7 = vld [vmem:[%s3087_s22 + $0xfb0] sm:$0xff]  ;;  %v788_v8 = vld [vmem:[%s3087_s22 + $0xf98] sm:$0xff] }
 0x1b9   : > { %1922 = vmatpush1.msra.mxu0 %v715_v12  ;;  %1884 = vmatprep.subr.mxu1 %v648_v13  ;;  %v852_v10 = vld [vmem:[%s3087_s22 + $0x1198] sm:$0xff]  ;;  %v787_v12 = vld [vmem:[%s3087_s22 + $0xf90] sm:$0xff] }
 0x1ba   : > { %1923 = vmatprep.subr.mxu0 %v712_v14  ;;  %1885 = vmatpush2.msra.mxu1 %v647_v15  ;;  %v851_v13 = vld [vmem:[%s3087_s22 + $0x1190] sm:$0xff]  ;;  %v784_v14 = vld [vmem:[%s3087_s22 + $0xf78] sm:$0xff] }
 0x1bb   : > { %1924 = vmatpush1.msra.mxu0 %v711_v18  ;;  %1886 = vmatprep.subr.mxu1 %v644_v19  ;;  %v848_v15 = vld [vmem:[%s3087_s22 + $0x1178] sm:$0xff]  ;;  %v783_v18 = vld [vmem:[%s3087_s22 + $0xf70] sm:$0xff] }
 0x1bc   : > { %1925 = vmatprep.subr.mxu0 %v708_v20  ;;  %1887 = vmatpush2.msra.mxu1 %v643_v21  ;;  %v847_v19 = vld [vmem:[%s3087_s22 + $0x1170] sm:$0xff]  ;;  %v780_v20 = vld [vmem:[%s3087_s22 + $0xf58] sm:$0xff] }
 0x1bd   : > { %1926 = vmatpush1.msra.mxu0 %v707_v23  ;;  %1888 = vmatprep.subr.mxu1 %v640_v24  ;;  %v844_v21 = vld [vmem:[%s3087_s22 + $0x1158] sm:$0xff]  ;;  %v779_v23 = vld [vmem:[%s3087_s22 + $0xf50] sm:$0xff] }
 0x1be   : > { %1927 = vmatprep.subr.mxu0 %v704_v25  ;;  %1889 = vmatpush2.msra.mxu1 %v639_v26  ;;  %v843_v24 = vld [vmem:[%s3087_s22 + $0x1150] sm:$0xff]  ;;  %v776_v25 = vld [vmem:[%s3087_s22 + $0xf38] sm:$0xff] }
 0x1bf   : > { %1928 = vmatpush1.msra.mxu0 %v703_v28  ;;  %1890 = vmatprep.subr.mxu1 %v636_v29  ;;  %v840_v26 = vld [vmem:[%s3087_s22 + $0x1138] sm:$0xff]  ;;  %v775_v28 = vld [vmem:[%s3087_s22 + $0xf30] sm:$0xff] }
 0x1c0   : > { %1929 = vmatprep.subr.mxu0 %v700_v31  ;;  %1891 = vmatpush2.msra.mxu1 %v635_v32  ;;  %v839_v29 = vld [vmem:[%s3087_s22 + $0x1130] sm:$0xff]  ;;  %v772_v31 = vld [vmem:[%s3087_s22 + $0xf18] sm:$0xff] }
 0x1c1   : > { %1930 = vmatpush1.msra.mxu0 %v699_v33  ;;  %1892 = vmatprep.subr.mxu1 %v632_v34  ;;  %v836_v32 = vld [vmem:[%s3087_s22 + $0x1118] sm:$0xff]  ;;  %v771_v33 = vld [vmem:[%s3087_s22 + $0xf10] sm:$0xff] }
 0x1c2   : > { %1931 = vmatprep.subr.mxu0 %v696_v35  ;;  %1893 = vmatpush2.msra.mxu1 %v631_v36  ;;  %v835_v34 = vld [vmem:[%s3087_s22 + $0x1110] sm:$0xff]  ;;  %v768_v35 = vld [vmem:[%s3087_s22 + $0xef8] sm:$0xff] }
 0x1c3   : > { %1932 = vmatpush1.msra.mxu0 %v695_v37  ;;  %1894 = vmatprep.subr.mxu1 %v628_v38  ;;  %v832_v36 = vld [vmem:[%s3087_s22 + $0x10f8] sm:$0xff]  ;;  %v767_v37 = vld [vmem:[%s3087_s22 + $0xef0] sm:$0xff] }
 0x1c4   : > { %1933 = vmatprep.subr.mxu0 %v692_v39  ;;  %1895 = vmatpush2.msra.mxu1 %v627_v40  ;;  %v831_v38 = vld [vmem:[%s3087_s22 + $0x10f0] sm:$0xff]  ;;  %v764_v39 = vld [vmem:[%s3087_s22 + $0xed8] sm:$0xff] }
 0x1c5   : > { %1934 = vmatpush1.msra.mxu0 %v691_v41  ;;  %1896 = vmatprep.subr.mxu1 %v624_v42  ;;  %v828_v40 = vld [vmem:[%s3087_s22 + $0x10d8] sm:$0xff]  ;;  %v763_v41 = vld [vmem:[%s3087_s22 + $0xed0] sm:$0xff] }
 0x1c6   : > { %1935 = vmatprep.subr.mxu0 %v688_v45  ;;  %1897 = vmatpush2.msra.mxu1 %v623_v9  ;;  %v827_v42 = vld [vmem:[%s3087_s22 + $0x10d0] sm:$0xff]  ;;  %v760_v45 = vld [vmem:[%s3087_s22 + $0xeb8] sm:$0xff] }
 0x1c7   : > { %1936 = vmatpush1.msra.mxu0 %v687_v46  ;;  %1898 = vmatprep.subr.mxu1 %v620_v47  ;;  %v824_v9 = vld [vmem:[%s3087_s22 + $0x10b8] sm:$0xff]  ;;  %v759_v46 = vld [vmem:[%s3087_s22 + $0xeb0] sm:$0xff] }
 0x1c8   : > { %1937 = vmatprep.subr.mxu0 %v684_v63  ;;  %1899 = vmatpush2.msra.mxu1 %v619_v48  ;;  %v823_v47 = vld [vmem:[%s3087_s22 + $0x10b0] sm:$0xff]  ;;  %v756_v63 = vld [vmem:[%s3087_s22 + $0xe98] sm:$0xff] }
 0x1c9   : > { %1938 = vmatpush1.msra.mxu0 %v683_v50  ;;  %1900 = vmatprep.subr.mxu1 %v616_v51  ;;  %v820_v48 = vld [vmem:[%s3087_s22 + $0x1098] sm:$0xff]  ;;  %v755_v50 = vld [vmem:[%s3087_s22 + $0xe90] sm:$0xff] }
 0x1ca   : > { %1939 = vmatprep.subr.mxu0 %v680_v52  ;;  %1901 = vmatpush2.msra.mxu1 %v615_v54  ;;  %v819_v51 = vld [vmem:[%s3087_s22 + $0x1090] sm:$0xff]  ;;  %v752_v52 = vld [vmem:[%s3087_s22 + $0xe78] sm:$0xff] }
 0x1cb   : > { %1940 = vmatpush1.msra.mxu0 %v679_v56  ;;  %1902 = vmatprep.subr.mxu1 %v612_v57  ;;  %v816_v54 = vld [vmem:[%s3087_s22 + $0x1078] sm:$0xff]  ;;  %v751_v56 = vld [vmem:[%s3087_s22 + $0xe70] sm:$0xff] }
 0x1cc   : > { %1941 = vmatprep.subr.mxu0 %v676_v11  ;;  %1903 = vmatpush2.msra.mxu1 %v611_v59  ;;  %v815_v57 = vld [vmem:[%s3087_s22 + $0x1070] sm:$0xff]  ;;  %v748_v11 = vld [vmem:[%s3087_s22 + $0xe58] sm:$0xff] }
 0x1cd   : > { %1904 = vmatprep.mubr.f32.mxu1 %v3394_v27  ;;  %1942 = vmatpush1.msra.mxu0 %v675_v60  ;;  %v792_v27 = vld [vmem:[%s3087_s22 + $0xfb8] sm:$0xff]  ;;  %v747_v60 = vld [vmem:[%s3087_s22 + $0xe50] sm:$0xff] }
 0x1ce   : > { %1905 = vmatmul.mubr.f32.vlgmr.msra.gmra.mxu1 %v3379_v17  ;;  %1943 = vmatprep.subr.mxu0 %v800_v2  ;;  %v855_v17 = vld [vmem:[%s3087_s22 + $0x11b0] sm:$0xff]  ;;  %v812_v59 = vld [vmem:[%s3087_s22 + $0x1058] sm:$0xff] }
 0x1cf   : > { %1982 = vmatprep.subr.mxu1 %v864_v61  ;;  %1944 = vmatpush2.msra.mxu0 %v799_v62  ;;  %v811_v2 = vld [vmem:[%s3087_s22 + $0x1050] sm:$0xff]  ;;  %v744_v61 = vld [vmem:[%s3087_s22 + $0xe38] sm:$0xff] }
 0x1d0   : > { %1983 = vmatpush1.msra.mxu1 %v863_v0  ;;  %1945 = vmatprep.subr.mxu0 %v796_v1  ;;  %v808_v62 = vld [vmem:[%s3087_s22 + $0x1038] sm:$0xff]  ;;  %v743_v0 = vld [vmem:[%s3087_s22 + $0xe30] sm:$0xff] }
 0x1d1   : > { %1984 = vmatprep.subr.mxu1 %v860_v3  ;;  %1946 = vmatpush2.msra.mxu0 %v795_v4  ;;  %v807_v1 = vld [vmem:[%s3087_s22 + $0x1030] sm:$0xff]  ;;  %v740_v3 = vld [vmem:[%s3087_s22 + $0xe18] sm:$0xff] }
 0x1d2   : > { %1985 = vmatpush1.msra.mxu1 %v859_v5  ;;  %1947 = vmatprep.subr.mxu0 %v792_v27  ;;  %v804_v4 = vld [vmem:[%s3087_s22 + $0x1018] sm:$0xff]  ;;  %v739_v5 = vld [vmem:[%s3087_s22 + $0xe10] sm:$0xff] }
 0x1d3   : > { %1986 = vmatprep.subr.mxu1 %v856_v6  ;;  %1948 = vmatpush2.msra.mxu0 %v791_v7  ;;  %v803_v27 = vld [vmem:[%s3087_s22 + $0x1010] sm:$0xff]  ;;  %v928_v6 = vld [vmem:[%s3087_s22 + $0x13f8] sm:$0xff] }
 0x1d4   : > { %1987 = vmatpush1.msra.mxu1 %v855_v17  ;;  %1949 = vmatprep.subr.mxu0 %v788_v8  ;;  %v992_v7 = vld [vmem:[%s3087_s22 + $0x15f8] sm:$0xff]  ;;  %v927_v17 = vld [vmem:[%s3087_s22 + $0x13f0] sm:$0xff] }
 0x1d5   : > { %1988 = vmatprep.subr.mxu1 %v852_v10  ;;  %1950 = vmatpush2.msra.mxu0 %v787_v12  ;;  %v991_v8 = vld [vmem:[%s3087_s22 + $0x15f0] sm:$0xff]  ;;  %v924_v10 = vld [vmem:[%s3087_s22 + $0x13d8] sm:$0xff] }
 0x1d6   : > { %1989 = vmatpush1.msra.mxu1 %v851_v13  ;;  %1951 = vmatprep.subr.mxu0 %v784_v14  ;;  %v988_v12 = vld [vmem:[%s3087_s22 + $0x15d8] sm:$0xff]  ;;  %v923_v13 = vld [vmem:[%s3087_s22 + $0x13d0] sm:$0xff] }
 0x1d7   : > { %1990 = vmatprep.subr.mxu1 %v848_v15  ;;  %1952 = vmatpush2.msra.mxu0 %v783_v18  ;;  %v987_v14 = vld [vmem:[%s3087_s22 + $0x15d0] sm:$0xff]  ;;  %v984_v15 = vld [vmem:[%s3087_s22 + $0x15b8] sm:$0xff] }
 0x1d8   : > { %1991 = vmatpush1.msra.mxu1 %v847_v19  ;;  %1953 = vmatprep.subr.mxu0 %v780_v20  ;;  %v919_v18 = vld [vmem:[%s3087_s22 + $0x13b0] sm:$0xff]  ;;  %v916_v19 = vld [vmem:[%s3087_s22 + $0x1398] sm:$0xff] }
 0x1d9   : > { %1992 = vmatprep.subr.mxu1 %v844_v21  ;;  %1954 = vmatpush2.msra.mxu0 %v779_v23  ;;  %v980_v20 = vld [vmem:[%s3087_s22 + $0x1598] sm:$0xff]  ;;  %v915_v21 = vld [vmem:[%s3087_s22 + $0x1390] sm:$0xff] }
 0x1da   : > { %1993 = vmatpush1.msra.mxu1 %v843_v24  ;;  %1955 = vmatprep.subr.mxu0 %v776_v25  ;;  %v979_v23 = vld [vmem:[%s3087_s22 + $0x1590] sm:$0xff]  ;;  %v912_v24 = vld [vmem:[%s3087_s22 + $0x1378] sm:$0xff] }
 0x1db   : > { %1994 = vmatprep.subr.mxu1 %v840_v26  ;;  %1956 = vmatpush2.msra.mxu0 %v775_v28  ;;  %v976_v25 = vld [vmem:[%s3087_s22 + $0x1578] sm:$0xff]  ;;  %v911_v26 = vld [vmem:[%s3087_s22 + $0x1370] sm:$0xff] }
 0x1dc   : > { %1995 = vmatpush1.msra.mxu1 %v839_v29  ;;  %1957 = vmatprep.subr.mxu0 %v772_v31  ;;  %v975_v28 = vld [vmem:[%s3087_s22 + $0x1570] sm:$0xff]  ;;  %v908_v29 = vld [vmem:[%s3087_s22 + $0x1358] sm:$0xff] }
 0x1dd   : > { %1996 = vmatprep.subr.mxu1 %v836_v32  ;;  %1958 = vmatpush2.msra.mxu0 %v771_v33  ;;  %v972_v31 = vld [vmem:[%s3087_s22 + $0x1558] sm:$0xff]  ;;  %v907_v32 = vld [vmem:[%s3087_s22 + $0x1350] sm:$0xff] }
 0x1de   : > { %1997 = vmatpush1.msra.mxu1 %v835_v34  ;;  %1959 = vmatprep.subr.mxu0 %v768_v35  ;;  %v971_v33 = vld [vmem:[%s3087_s22 + $0x1550] sm:$0xff]  ;;  %v904_v34 = vld [vmem:[%s3087_s22 + $0x1338] sm:$0xff] }
 0x1df   : > { %1998 = vmatprep.subr.mxu1 %v832_v36  ;;  %1960 = vmatpush2.msra.mxu0 %v767_v37  ;;  %v968_v35 = vld [vmem:[%s3087_s22 + $0x1538] sm:$0xff]  ;;  %v903_v36 = vld [vmem:[%s3087_s22 + $0x1330] sm:$0xff] }
 0x1e0   : > { %1999 = vmatpush1.msra.mxu1 %v831_v38  ;;  %1961 = vmatprep.subr.mxu0 %v764_v39  ;;  %v967_v37 = vld [vmem:[%s3087_s22 + $0x1530] sm:$0xff]  ;;  %v900_v38 = vld [vmem:[%s3087_s22 + $0x1318] sm:$0xff] }
 0x1e1   : > { %2000 = vmatprep.subr.mxu1 %v828_v40  ;;  %1962 = vmatpush2.msra.mxu0 %v763_v41  ;;  %v964_v39 = vld [vmem:[%s3087_s22 + $0x1518] sm:$0xff]  ;;  %v899_v40 = vld [vmem:[%s3087_s22 + $0x1310] sm:$0xff] }
 0x1e2   : > { %2001 = vmatpush1.msra.mxu1 %v827_v42  ;;  %1963 = vmatprep.subr.mxu0 %v760_v45  ;;  %v963_v41 = vld [vmem:[%s3087_s22 + $0x1510] sm:$0xff]  ;;  %v896_v42 = vld [vmem:[%s3087_s22 + $0x12f8] sm:$0xff] }
 0x1e3   : > { %2002 = vmatprep.subr.mxu1 %v824_v9  ;;  %1964 = vmatpush2.msra.mxu0 %v759_v46  ;;  %v960_v45 = vld [vmem:[%s3087_s22 + $0x14f8] sm:$0xff]  ;;  %v895_v9 = vld [vmem:[%s3087_s22 + $0x12f0] sm:$0xff] }
 0x1e4   : > { %2003 = vmatpush1.msra.mxu1 %v823_v47  ;;  %1965 = vmatprep.subr.mxu0 %v756_v63  ;;  %v959_v46 = vld [vmem:[%s3087_s22 + $0x14f0] sm:$0xff]  ;;  %v892_v47 = vld [vmem:[%s3087_s22 + $0x12d8] sm:$0xff] }
 0x1e5   : > { %2004 = vmatprep.subr.mxu1 %v820_v48  ;;  %1966 = vmatpush2.msra.mxu0 %v755_v50  ;;  %v956_v63 = vld [vmem:[%s3087_s22 + $0x14d8] sm:$0xff]  ;;  %v891_v48 = vld [vmem:[%s3087_s22 + $0x12d0] sm:$0xff] }
 0x1e6   : > { %2005 = vmatpush1.msra.mxu1 %v819_v51  ;;  %1967 = vmatprep.subr.mxu0 %v752_v52  ;;  %v955_v50 = vld [vmem:[%s3087_s22 + $0x14d0] sm:$0xff]  ;;  %v888_v51 = vld [vmem:[%s3087_s22 + $0x12b8] sm:$0xff] }
 0x1e7   : > { %2006 = vmatprep.subr.mxu1 %v816_v54  ;;  %1968 = vmatpush2.msra.mxu0 %v751_v56  ;;  %v952_v52 = vld [vmem:[%s3087_s22 + $0x14b8] sm:$0xff]  ;;  %v887_v54 = vld [vmem:[%s3087_s22 + $0x12b0] sm:$0xff] }
 0x1e8   : > { %2007 = vmatpush1.msra.mxu1 %v815_v57  ;;  %1969 = vmatprep.subr.mxu0 %v748_v11  ;;  %v951_v56 = vld [vmem:[%s3087_s22 + $0x14b0] sm:$0xff]  ;;  %v884_v57 = vld [vmem:[%s3087_s22 + $0x1298] sm:$0xff] }
 0x1e9   : > { %2008 = vmatprep.subr.mxu1 %v812_v59  ;;  %1970 = vmatpush2.msra.mxu0 %v747_v60  ;;  %v948_v11 = vld [vmem:[%s3087_s22 + $0x1498] sm:$0xff]  ;;  %v883_v59 = vld [vmem:[%s3087_s22 + $0x1290] sm:$0xff] }
 0x1ea   : > { %2009 = vmatpush1.msra.mxu1 %v811_v2  ;;  %1971 = vmatprep.subr.mxu0 %v744_v61  ;;  %v947_v60 = vld [vmem:[%s3087_s22 + $0x1490] sm:$0xff]  ;;  %v880_v2 = vld [vmem:[%s3087_s22 + $0x1278] sm:$0xff] }
 0x1eb   : > { %2010 = vmatprep.subr.mxu1 %v808_v62  ;;  %1972 = vmatpush2.msra.mxu0 %v743_v0  ;;  %v944_v61 = vld [vmem:[%s3087_s22 + $0x1478] sm:$0xff]  ;;  %v879_v62 = vld [vmem:[%s3087_s22 + $0x1270] sm:$0xff] }
 0x1ec   : > { %2011 = vmatpush1.msra.mxu1 %v807_v1  ;;  %1973 = vmatprep.subr.mxu0 %v740_v3  ;;  %v943_v0 = vld [vmem:[%s3087_s22 + $0x1470] sm:$0xff]  ;;  %v876_v1 = vld [vmem:[%s3087_s22 + $0x1258] sm:$0xff] }
 0x1ed   : > { %2012 = vmatprep.subr.mxu1 %v804_v4  ;;  %1974 = vmatpush2.msra.mxu0 %v739_v5  ;;  %v940_v3 = vld [vmem:[%s3087_s22 + $0x1458] sm:$0xff]  ;;  %v875_v4 = vld [vmem:[%s3087_s22 + $0x1250] sm:$0xff] }
 0x1ee   : > { %1975 = vmatprep.mubr.f32.mxu0 %v3400_v30  ;;  %2013 = vmatpush1.msra.mxu1 %v803_v27  ;;  %v920_v30 = vld [vmem:[%s3087_s22 + $0x13b8] sm:$0xff]  ;;  %v939_v5 = vld [vmem:[%s3087_s22 + $0x1450] sm:$0xff] }
 0x1ef   : > { %1976 = vmatmul.mubr.f32.vlgmr.msra.gmra.mxu0 %v3386_v22  ;;  %2014 = vmatprep.subr.mxu1 %v928_v6  ;;  %v983_v22 = vld [vmem:[%s3087_s22 + $0x15b0] sm:$0xff]  ;;  %v872_v27 = vld [vmem:[%s3087_s22 + $0x1238] sm:$0xff] }
 0x1f0   : > { %2053 = vmatprep.subr.mxu0 %v992_v7  ;;  %2015 = vmatpush2.msra.mxu1 %v927_v17  ;;  %v936_v6 = vld [vmem:[%s3087_s22 + $0x1438] sm:$0xff]  ;;  %v871_v7 = vld [vmem:[%s3087_s22 + $0x1230] sm:$0xff] }
 0x1f1   : > { %2054 = vmatpush1.msra.mxu0 %v991_v8  ;;  %2016 = vmatprep.subr.mxu1 %v924_v10  ;;  %v935_v17 = vld [vmem:[%s3087_s22 + $0x1430] sm:$0xff]  ;;  %v868_v8 = vld [vmem:[%s3087_s22 + $0x1218] sm:$0xff] }
 0x1f2   : > { %2055 = vmatprep.subr.mxu0 %v988_v12  ;;  %2017 = vmatpush2.msra.mxu1 %v923_v13  ;;  %v932_v10 = vld [vmem:[%s3087_s22 + $0x1418] sm:$0xff]  ;;  %v867_v12 = vld [vmem:[%s3087_s22 + $0x1210] sm:$0xff] }
 0x1f3   : > { %2056 = vmatpush1.msra.mxu0 %v987_v14  ;;  %2018 = vmatprep.subr.mxu1 %v920_v30  ;;  %v931_v13 = vld [vmem:[%s3087_s22 + $0x1410] sm:$0xff]  ;;  %v1056_v14 = vld [vmem:[%s3087_s22 + $0x17f8] sm:$0xff] }
 0x1f4   : > { %2057 = vmatprep.subr.mxu0 %v984_v15  ;;  %2019 = vmatpush2.msra.mxu1 %v919_v18  ;;  %v1120_v30 = vld [vmem:[%s3087_s22 + $0x19f8] sm:$0xff]  ;;  %v1055_v15 = vld [vmem:[%s3087_s22 + $0x17f0] sm:$0xff] }
 0x1f5   : > { %2058 = vmatpush1.msra.mxu0 %v983_v22  ;;  %2020 = vmatprep.subr.mxu1 %v916_v19  ;;  %v1119_v18 = vld [vmem:[%s3087_s22 + $0x19f0] sm:$0xff]  ;;  %v1052_v22 = vld [vmem:[%s3087_s22 + $0x17d8] sm:$0xff] }
 0x1f6   : > { %2059 = vmatprep.subr.mxu0 %v980_v20  ;;  %2021 = vmatpush2.msra.mxu1 %v915_v21  ;;  %v1116_v19 = vld [vmem:[%s3087_s22 + $0x19d8] sm:$0xff]  ;;  %v1051_v20 = vld [vmem:[%s3087_s22 + $0x17d0] sm:$0xff] }
 0x1f7   : > { %2060 = vmatpush1.msra.mxu0 %v979_v23  ;;  %2022 = vmatprep.subr.mxu1 %v912_v24  ;;  %v1115_v21 = vld [vmem:[%s3087_s22 + $0x19d0] sm:$0xff]  ;;  %v1112_v23 = vld [vmem:[%s3087_s22 + $0x19b8] sm:$0xff] }
 0x1f8   : > { %2061 = vmatprep.subr.mxu0 %v976_v25  ;;  %2023 = vmatpush2.msra.mxu1 %v911_v26  ;;  %v1047_v24 = vld [vmem:[%s3087_s22 + $0x17b0] sm:$0xff]  ;;  %v1044_v25 = vld [vmem:[%s3087_s22 + $0x1798] sm:$0xff] }
 0x1f9   : > { %2062 = vmatpush1.msra.mxu0 %v975_v28  ;;  %2024 = vmatprep.subr.mxu1 %v908_v29  ;;  %v1108_v26 = vld [vmem:[%s3087_s22 + $0x1998] sm:$0xff]  ;;  %v1043_v28 = vld [vmem:[%s3087_s22 + $0x1790] sm:$0xff] }
 0x1fa   : > { %2063 = vmatprep.subr.mxu0 %v972_v31  ;;  %2025 = vmatpush2.msra.mxu1 %v907_v32  ;;  %v1107_v29 = vld [vmem:[%s3087_s22 + $0x1990] sm:$0xff]  ;;  %v1040_v31 = vld [vmem:[%s3087_s22 + $0x1778] sm:$0xff] }
 0x1fb   : > { %2064 = vmatpush1.msra.mxu0 %v971_v33  ;;  %2026 = vmatprep.subr.mxu1 %v904_v34  ;;  %v1104_v32 = vld [vmem:[%s3087_s22 + $0x1978] sm:$0xff]  ;;  %v1039_v33 = vld [vmem:[%s3087_s22 + $0x1770] sm:$0xff] }
 0x1fc   : > { %2065 = vmatprep.subr.mxu0 %v968_v35  ;;  %2027 = vmatpush2.msra.mxu1 %v903_v36  ;;  %v1103_v34 = vld [vmem:[%s3087_s22 + $0x1970] sm:$0xff]  ;;  %v1036_v35 = vld [vmem:[%s3087_s22 + $0x1758] sm:$0xff] }
 0x1fd   : > { %2066 = vmatpush1.msra.mxu0 %v967_v37  ;;  %2028 = vmatprep.subr.mxu1 %v900_v38  ;;  %v1100_v36 = vld [vmem:[%s3087_s22 + $0x1958] sm:$0xff]  ;;  %v1035_v37 = vld [vmem:[%s3087_s22 + $0x1750] sm:$0xff] }
 0x1fe   : > { %2067 = vmatprep.subr.mxu0 %v964_v39  ;;  %2029 = vmatpush2.msra.mxu1 %v899_v40  ;;  %v1099_v38 = vld [vmem:[%s3087_s22 + $0x1950] sm:$0xff]  ;;  %v1032_v39 = vld [vmem:[%s3087_s22 + $0x1738] sm:$0xff] }
 0x1ff   : > { %2068 = vmatpush1.msra.mxu0 %v963_v41  ;;  %2030 = vmatprep.subr.mxu1 %v896_v42  ;;  %v1096_v40 = vld [vmem:[%s3087_s22 + $0x1938] sm:$0xff]  ;;  %v1031_v41 = vld [vmem:[%s3087_s22 + $0x1730] sm:$0xff] }
 0x200   : > { %2069 = vmatprep.subr.mxu0 %v960_v45  ;;  %2031 = vmatpush2.msra.mxu1 %v895_v9  ;;  %v1095_v42 = vld [vmem:[%s3087_s22 + $0x1930] sm:$0xff]  ;;  %v1028_v45 = vld [vmem:[%s3087_s22 + $0x1718] sm:$0xff] }
 0x201   : > { %2070 = vmatpush1.msra.mxu0 %v959_v46  ;;  %2032 = vmatprep.subr.mxu1 %v892_v47  ;;  %v1092_v9 = vld [vmem:[%s3087_s22 + $0x1918] sm:$0xff]  ;;  %v1027_v46 = vld [vmem:[%s3087_s22 + $0x1710] sm:$0xff] }
 0x202   : > { %2071 = vmatprep.subr.mxu0 %v956_v63  ;;  %2033 = vmatpush2.msra.mxu1 %v891_v48  ;;  %v1091_v47 = vld [vmem:[%s3087_s22 + $0x1910] sm:$0xff]  ;;  %v1024_v63 = vld [vmem:[%s3087_s22 + $0x16f8] sm:$0xff] }
 0x203   : > { %2072 = vmatpush1.msra.mxu0 %v955_v50  ;;  %2034 = vmatprep.subr.mxu1 %v888_v51  ;;  %v1088_v48 = vld [vmem:[%s3087_s22 + $0x18f8] sm:$0xff]  ;;  %v1023_v50 = vld [vmem:[%s3087_s22 + $0x16f0] sm:$0xff] }
 0x204   : > { %2073 = vmatprep.subr.mxu0 %v952_v52  ;;  %2035 = vmatpush2.msra.mxu1 %v887_v54  ;;  %v1087_v51 = vld [vmem:[%s3087_s22 + $0x18f0] sm:$0xff]  ;;  %v1020_v52 = vld [vmem:[%s3087_s22 + $0x16d8] sm:$0xff] }
 0x205   : > { %2074 = vmatpush1.msra.mxu0 %v951_v56  ;;  %2036 = vmatprep.subr.mxu1 %v884_v57  ;;  %v1084_v54 = vld [vmem:[%s3087_s22 + $0x18d8] sm:$0xff]  ;;  %v1019_v56 = vld [vmem:[%s3087_s22 + $0x16d0] sm:$0xff] }
 0x206   : > { %2075 = vmatprep.subr.mxu0 %v948_v11  ;;  %2037 = vmatpush2.msra.mxu1 %v883_v59  ;;  %v1083_v57 = vld [vmem:[%s3087_s22 + $0x18d0] sm:$0xff]  ;;  %v1016_v11 = vld [vmem:[%s3087_s22 + $0x16b8] sm:$0xff] }
 0x207   : > { %2076 = vmatpush1.msra.mxu0 %v947_v60  ;;  %2038 = vmatprep.subr.mxu1 %v880_v2  ;;  %v1080_v59 = vld [vmem:[%s3087_s22 + $0x18b8] sm:$0xff]  ;;  %v1015_v60 = vld [vmem:[%s3087_s22 + $0x16b0] sm:$0xff] }
 0x208   : > { %2077 = vmatprep.subr.mxu0 %v944_v61  ;;  %2039 = vmatpush2.msra.mxu1 %v879_v62  ;;  %v1079_v2 = vld [vmem:[%s3087_s22 + $0x18b0] sm:$0xff]  ;;  %v1012_v61 = vld [vmem:[%s3087_s22 + $0x1698] sm:$0xff] }
 0x209   : > { %2078 = vmatpush1.msra.mxu0 %v943_v0  ;;  %2040 = vmatprep.subr.mxu1 %v876_v1  ;;  %v1076_v62 = vld [vmem:[%s3087_s22 + $0x1898] sm:$0xff]  ;;  %v1011_v0 = vld [vmem:[%s3087_s22 + $0x1690] sm:$0xff] }
 0x20a   : > { %2079 = vmatprep.subr.mxu0 %v940_v3  ;;  %2041 = vmatpush2.msra.mxu1 %v875_v4  ;;  %v1075_v1 = vld [vmem:[%s3087_s22 + $0x1890] sm:$0xff]  ;;  %v1008_v3 = vld [vmem:[%s3087_s22 + $0x1678] sm:$0xff] }
 0x20b   : > { %2080 = vmatpush1.msra.mxu0 %v939_v5  ;;  %2042 = vmatprep.subr.mxu1 %v872_v27  ;;  %v1072_v4 = vld [vmem:[%s3087_s22 + $0x1878] sm:$0xff]  ;;  %v1007_v5 = vld [vmem:[%s3087_s22 + $0x1670] sm:$0xff] }
 0x20c   : > { %2081 = vmatprep.subr.mxu0 %v936_v6  ;;  %2043 = vmatpush2.msra.mxu1 %v871_v7  ;;  %v1071_v27 = vld [vmem:[%s3087_s22 + $0x1870] sm:$0xff]  ;;  %v1004_v6 = vld [vmem:[%s3087_s22 + $0x1658] sm:$0xff] }
 0x20d   : > { %2082 = vmatpush1.msra.mxu0 %v935_v17  ;;  %2044 = vmatprep.subr.mxu1 %v868_v8  ;;  %v1068_v7 = vld [vmem:[%s3087_s22 + $0x1858] sm:$0xff]  ;;  %v1003_v17 = vld [vmem:[%s3087_s22 + $0x1650] sm:$0xff] }
 0x20e   : > { %2083 = vmatprep.subr.mxu0 %v932_v10  ;;  %2045 = vmatpush2.msra.mxu1 %v867_v12  ;;  %v1067_v8 = vld [vmem:[%s3087_s22 + $0x1850] sm:$0xff]  ;;  %v1000_v10 = vld [vmem:[%s3087_s22 + $0x1638] sm:$0xff] }
 0x20f   : > { %2046 = vmatprep.mubr.f32.mxu1 %v3541_v55  ;;  %2084 = vmatpush1.msra.mxu0 %v931_v13  ;;  %v1048_v55 = vld [vmem:[%s3087_s22 + $0x17b8] sm:$0xff]  ;;  %v999_v13 = vld [vmem:[%s3087_s22 + $0x1630] sm:$0xff] }
 0x210   : > { %2047 = vmatmul.mubr.f32.vlgmr.msra.gmra.mxu1 %v3526_v44  ;;  %2085 = vmatprep.subr.mxu0 %v1056_v14  ;;  %v1111_v44 = vld [vmem:[%s3087_s22 + $0x19b0] sm:$0xff]  ;;  %v1064_v12 = vld [vmem:[%s3087_s22 + $0x1838] sm:$0xff] }
 0x211   : > { %2124 = vmatprep.subr.mxu1 %v1120_v30  ;;  %2086 = vmatpush2.msra.mxu0 %v1055_v15  ;;  %v1063_v14 = vld [vmem:[%s3087_s22 + $0x1830] sm:$0xff]  ;;  %v996_v30 = vld [vmem:[%s3087_s22 + $0x1618] sm:$0xff] }
 0x212   : > { %2125 = vmatpush1.msra.mxu1 %v1119_v18  ;;  %2087 = vmatprep.subr.mxu0 %v1052_v22  ;;  %v1060_v15 = vld [vmem:[%s3087_s22 + $0x1818] sm:$0xff]  ;;  %v995_v18 = vld [vmem:[%s3087_s22 + $0x1610] sm:$0xff] }
 0x213   : > { %2126 = vmatprep.subr.mxu1 %v1116_v19  ;;  %2088 = vmatpush2.msra.mxu0 %v1051_v20  ;;  %v1059_v22 = vld [vmem:[%s3087_s22 + $0x1810] sm:$0xff]  ;;  %v2580_v19 = vld.sshfl [vmem:[%s3079_s15 + $0x18] sm:$0x3 pattern:$0x76325410]  ;;  %v1267_v20 = vpop.f32.mrf.mxu0 }
 0x214   : > { %2127 = vmatpush1.msra.mxu1 %v1115_v21  ;;  %2089 = vmatprep.subr.mxu0 %v1048_v55  ;;  %v1338_v21 = vpop.f32.mrf.mxu1 }
 0x215   : > { %2128 = vmatprep.subr.mxu1 %v1112_v23  ;;  %2090 = vmatpush2.msra.mxu0 %v1047_v24  ;;  %v1269_v55 = vpop.f32.mrf.mxu0 }
 0x216   : > { %2129 = vmatpush1.msra.mxu1 %v1111_v44  ;;  %2091 = vmatprep.subr.mxu0 %v1044_v25  ;;  %v1340_v23 = vpop.f32.mrf.mxu1 }
 0x217   : > { %2130 = vmatprep.subr.mxu1 %v1108_v26  ;;  %2092 = vmatpush2.msra.mxu0 %v1043_v28  ;;  %v1409_v24 = vpop.f32.mrf.mxu0 }
 0x218   : > { %2131 = vmatpush1.msra.mxu1 %v1107_v29  ;;  %2093 = vmatprep.subr.mxu0 %v1040_v31  ;;  %v1480_v44 = vpop.f32.mrf.mxu1 }
 0x219   : > { %2132 = vmatprep.subr.mxu1 %v1104_v32  ;;  %2094 = vmatpush2.msra.mxu0 %v1039_v33  ;;  %v1411_v25 = vpop.f32.mrf.mxu0 }
 0x21a   : > { %2133 = vmatpush1.msra.mxu1 %v1103_v34  ;;  %2095 = vmatprep.subr.mxu0 %v1036_v35  ;;  %v1482_v26 = vpop.f32.mrf.mxu1 }
 0x21b   : > { %2134 = vmatprep.subr.mxu1 %v1100_v36  ;;  %2096 = vmatpush2.msra.mxu0 %v1035_v37  ;;  %v1551_v28 = vpop.f32.mrf.mxu0  ;;  %v1339_v37 = vadd.f32 %v1338_v21, %v1267_v20 }
 0x21c   : > { %2135 = vmatpush1.msra.mxu1 %v1099_v38  ;;  %2097 = vmatprep.subr.mxu0 %v1032_v39  ;;  %v1622_v29 = vpop.f32.mrf.mxu1 }
 0x21d   : > { %2136 = vmatprep.subr.mxu1 %v1096_v40  ;;  %2098 = vmatpush2.msra.mxu0 %v1031_v41  ;;  %v1553_v31 = vpop.f32.mrf.mxu0  ;;  %v1410_v40 = vadd.f32 %v1409_v24, %v1339_v37 }
 0x21e   : > { %2137 = vmatpush1.msra.mxu1 %v1095_v42  ;;  %2099 = vmatprep.subr.mxu0 %v1028_v45  ;;  %v1624_v32 = vpop.f32.mrf.mxu1 }
 0x21f   : > { %2138 = vmatprep.subr.mxu1 %v1092_v9  ;;  %2100 = vmatpush2.msra.mxu0 %v1027_v46 }
 0x220   : > { %2139 = vmatpush1.msra.mxu1 %v1091_v47  ;;  %2101 = vmatprep.subr.mxu0 %v1024_v63  ;;  %v1481_v47 = vadd.f32 %v1480_v44, %v1410_v40 }
 0x221   : > { %2140 = vmatprep.subr.mxu1 %v1088_v48  ;;  %2102 = vmatpush2.msra.mxu0 %v1023_v50 }
 0x222   : > { %2141 = vmatpush1.msra.mxu1 %v1087_v51  ;;  %2103 = vmatprep.subr.mxu0 %v1020_v52  ;;  %v1552_v52 = vadd.f32 %v1551_v28, %v1481_v47 }
 0x223   : > { %2142 = vmatprep.subr.mxu1 %v1084_v54  ;;  %2104 = vmatpush2.msra.mxu0 %v1019_v56 }
 0x224   : > { %2143 = vmatpush1.msra.mxu1 %v1083_v57  ;;  %2105 = vmatprep.subr.mxu0 %v1016_v11 }
 0x225   : > { %2144 = vmatprep.subr.mxu1 %v1080_v59  ;;  %2106 = vmatpush2.msra.mxu0 %v1015_v60 }
 0x226   : > { %2145 = vmatpush1.msra.mxu1 %v1079_v2  ;;  %2107 = vmatprep.subr.mxu0 %v1012_v61 }
 0x227   : > { %2146 = vmatprep.subr.mxu1 %v1076_v62  ;;  %2108 = vmatpush2.msra.mxu0 %v1011_v0  ;;  %v1623_v62 = vadd.f32 %v1622_v29, %v1552_v52 }
 0x228   : > { %2147 = vmatpush1.msra.mxu1 %v1075_v1  ;;  %2109 = vmatprep.subr.mxu0 %v1008_v3 }
 0x229   : > { %2148 = vmatprep.subr.mxu1 %v1072_v4  ;;  %2110 = vmatpush2.msra.mxu0 %v1007_v5 }
 0x22a   : > { %2149 = vmatpush1.msra.mxu1 %v1071_v27  ;;  %2111 = vmatprep.subr.mxu0 %v1004_v6 }
 0x22b   : > { %2150 = vmatprep.subr.mxu1 %v1068_v7  ;;  %2112 = vmatpush2.msra.mxu0 %v1003_v17 }
 0x22c   : > { %2151 = vmatpush1.msra.mxu1 %v1067_v8  ;;  %2113 = vmatprep.subr.mxu0 %v1000_v10 }
 0x22d   : > { %2152 = vmatprep.subr.mxu1 %v1064_v12  ;;  %2114 = vmatpush2.msra.mxu0 %v999_v13 }
 0x22e   : > { %2153 = vmatpush1.msra.mxu1 %v1063_v14  ;;  %2115 = vmatprep.subr.mxu0 %v996_v30  ;;  %v1125_v14 = vld [vmem:[#allocation2] sm:$0xff] }
 0x22f   : > { %2154 = vmatprep.subr.mxu1 %v1060_v15  ;;  %2116 = vmatpush2.msra.mxu0 %v995_v18 }
 0x230   : > { %2117 = vmatprep.mubr.f32.mxu0 %v3547_v58  ;;  %2155 = vmatpush1.msra.mxu1 %v1059_v22  ;;  %v1693_v58 = vpop.f32.mrf.mxu0 }
 0x231   : > { %2188 = vmatprep.mubr.f32.mxu1 %v2827_v16  ;;  %2118 = vmatmul.mubr.f32.vlgmr.msra.gmra.mxu0 %v3533_v49  ;;  %v1341_v49 = vadd.f32 %v1340_v23, %v1269_v55  ;;  %v1694_v5 = vadd.f32 %v1693_v58, %v1623_v62 }
 0x232   : > { %2189 = vmatmul.mubr.f32.vlgmr.msra.gmra.mxu1 %v2580_v19  ;;  %v1695_v34 = vpop.f32.mrf.mxu0 }
 0x233   : > { %v1412_v38 = vadd.f32 %v1411_v25, %v1341_v49 }
 0x235   : > { %v1483_v45 = vadd.f32 %v1482_v26, %v1412_v38 }
 0x237   : > { %v1554_v63 = vadd.f32 %v1553_v31, %v1483_v45 }
 0x239   : > { %v1625_v11 = vadd.f32 %v1624_v32, %v1554_v63 }
 0x23b   : > { %v1696_v0 = vadd.f32 %v1695_v34, %v1625_v11 }
 0x23d   : > { %v2199_v7 = vcombine.low %v1694_v5, %v1696_v0 }
 0x23f   : > { %v2207_v12 = vrot.slane %v2199_v7, %v3221_v53 }
 0x24d   : > { %v1764_v33 = vpop.f32.mrf.mxu1 }
 0x24f   : > { %v1766_v16 = vpop.f32.mrf.mxu1 }
 0x26d   : > { %v1835_v35 = vpop.f32.mrf.mxu0 }
 0x26e   : > { %v1836_v9 = vadd.f32 %v1835_v35, %v1764_v33 }
 0x26f   : > { %v1837_v39 = vpop.f32.mrf.mxu0 }
 0x270   : > { %v1838_v48 = vadd.f32 %v1837_v39, %v1766_v16 }
 0x28e   : > { %v1906_v36 = vpop.f32.mrf.mxu1 }
 0x28f   : > { %v1907_v50 = vadd.f32 %v1906_v36, %v1836_v9 }
 0x290   : > { %v1908_v41 = vpop.f32.mrf.mxu1 }
 0x291   : > { %v1909_v54 = vadd.f32 %v1908_v41, %v1838_v48 }
 0x2af   : > { %v1977_v42 = vpop.f32.mrf.mxu0 }
 0x2b0   : > { %v1978_v56 = vadd.f32 %v1977_v42, %v1907_v50 }
 0x2b1   : > { %v1979_v51 = vpop.f32.mrf.mxu0 }
 0x2b2   : > { %v1980_v59 = vadd.f32 %v1979_v51, %v1909_v54 }
 0x2d0   : > { %v2048_v46 = vpop.f32.mrf.mxu1 }
 0x2d1   : > { %v2049_v60 = vadd.f32 %v2048_v46, %v1978_v56 }
 0x2d2   : > { %v2050_v57 = vpop.f32.mrf.mxu1 }
 0x2d3   : > { %v2051_v1 = vadd.f32 %v2050_v57, %v1980_v59 }
 0x2f1   : > { %v2119_v2 = vpop.f32.mrf.mxu0 }
 0x2f2   : > { %v2190_v61 = vpop.f32.mrf.mxu1  ;;  %v2120_v3 = vadd.f32 %v2119_v2, %v2049_v60 }
 0x2f3   : > { %v2121_v4 = vpop.f32.mrf.mxu0 }
 0x2f4   : > { %v2122_v27 = vadd.f32 %v2121_v4, %v2051_v1  ;;  %v2192_v6 = vpop.f32.mrf.mxu1  ;;  %v2191_v17 = vadd.f32 %v2190_v61, %v2120_v3 }
 0x2f6   : > { %v2193_v8 = vadd.f32 %v2192_v6, %v2122_v27 }
 0x2f8   : > { %v2200_v10 = vcombine.low %v2191_v17, %v2193_v8 }
 0x2fa   : > { %v2214_v13 = vrot.slane %v2200_v10, %v3221_v53 }
 0x2fc   : > { %v2215_v30 = vcombine.low %v2207_v12, %v2214_v13  ;;  %2222 = sbr.rel (%p2421_p1) target bundleno = 784 (0x310), region = 52 }
 0x2fe   : > { %v2217_v15 = vadd.f32 %v2215_v30, %v1125_v14 }
 0x300   : > { %2218 = vst [vmem:[#allocation2] sm:$0xff] %v2217_v15 }
 0x301   : > { %v2224_v18 = vld [vmem:[%s3097_s20] sm:$0xf]  ;;  %v2228_v22 = vsub.s32 0, %v3209_v43  ;;  %v2232_v19 = vsub.s32 1, %v3209_v43  ;;  %v2236_v20 = vsub.s32 2, %v3209_v43  ;;  %v2240_v21 = vsub.s32 3, %v3209_v43 }
 0x303   : > { %v2229_v55 = vrot.slane %v2224_v18, %v2228_v22  ;;  %v2233_v23 = vrot.slane %v2224_v18, %v2232_v19  ;;  %v2237_v24 = vrot.slane %v2224_v18, %v2236_v20  ;;  %v2241_v44 = vrot.slane %v2224_v18, %v2240_v21 }
 0x305   : > { %v2242_v25 = vcombine.low %v2229_v55, %v2233_v23  ;;  %v2243_v26 = vcombine.low %v2237_v24, %v2241_v44 }
 0x307   : > { %v2250_v28 = vrot.slane %v2242_v25, %v3221_v53  ;;  %v2257_v29 = vrot.slane %v2243_v26, %v3221_v53  ;;  %v2223_v31 = vld [vmem:[#allocation2] sm:$0xff] }
 0x309   : > { %v2258_v32 = vcombine.low %v2250_v28, %v2257_v29 }
 0x30b   : > { %v2260_v58 = vadd.f32 %v2258_v32, %v2223_v31 }
 0x30d   : > { %v2261_v33 = vmax.f32 %v2260_v58, 0.0 }
 0x30f   : > { %2262 = vst [vmem:[%s3104_s26] sm:$0xff] %v2261_v33 }
 0x310 PF: > { %s4141_s18 = sld [smem:[#allocation16_spill]]  ;;  %s2278_s3 = sshll.u32 %s3104_s26, 4  ;;  %s2279_s3 = int_to_ptr.vmem [resolvable:$true] %s2278_s3 }
 0x311   : > { %s4142_s0 = sld [smem:[#allocation23_spill]]  ;;  %s2264_s29 = scalar_lea.sflag [#allocation5], %s3094_s1 }
 0x312   : > { %s2665_s28 = scalar_lea.vmem %s2279_s3, 128  ;;  %p4143_p11 = scmp.ne.s32.totalorder %s4133_s9, 0 }
 0x313   : > { %p2666_p5 = scmp.ne.s32.totalorder %s2279_s3, %s2665_s28  ;;  %s2828_s22 = smov [#allocation9]  }
 0x314   : > { %s2669_s10 = sshll.u32 %s2828_s22, 4  ;;  %s2670_s10 = int_to_ptr.vmem [resolvable:$false] %s2669_s10 }
 0x315   : > { %p2667_p8 = pnand %p2666_p5, %p4143_p11  ;;  %s2671_s20 = scalar_lea.vmem %s2670_s10, 256 }
 0x316   : > { %s2430_s27 = sshll.u32 %s4141_s18, 7  ;;  %p2672_p0 = scmp.lt.s32.totalorder %s2279_s3, %s2670_s10 }
 0x317   : > { %s2276_s8 = scalar_lea.hbm %s4142_s0, %s2430_s27  ;;  %p2668_p3 = pneg %p2667_p8 }
 0x318   : > { %p2673_p12 = scmp.lt.s32.totalorder %s2671_s20, %s2665_s28 }
 0x31a   : > { %p2674_p2 = por %p2673_p12, %p2672_p0 }
 0x31c   : > { %p2675_p4 = pnand %p2674_p2, %p2668_p3 }
 0x31e   : > { %2678 = shalt.err (!%p2675_p4)
}
 0x31f   : > { %s2679_s4 = scalar_lea.hbm %s2276_s8, 128  ;;  %s2683_s21 = scalar_lea.hbm %s4142_s0, 256 }
 0x320   : > { %p2680_p9 = scmp.ne.s32.totalorder %s2276_s8, %s2679_s4  ;;  %p2684_p7 = scmp.lt.s32.totalorder %s2276_s8, %s4142_s0 }
 0x321   : > { %p2685_p13 = scmp.lt.s32.totalorder %s2683_s21, %s2679_s4 }
 0x322   : > { %p2681_p6 = pnand %p2680_p9, %p4143_p11 }
 0x323   : > { %p2686_p1 = por %p2685_p13, %p2684_p7 }
 0x324   : > { %p2682_p10 = pneg %p2681_p6 }
 0x326   : > { %p2687_p5 = pnand %p2686_p1, %p2682_p10 }
 0x328   : > { %2690 = shalt.err (!%p2687_p5)
}
 0x329   : > { %2441 = dma.vmem_to_hbm [thread:$0]  (%p4143_p11), %s2279_s3, 128, %s2276_s8, %s2264_s29  }
 0x32a PF: > { %p2458_p8 = scmp.ge.s32.totalorder %s2817_s25, 2  ;;  %s2290_s27 = sand.u32 1, %s2765_s12  }
 0x32b   : > { %p4144_p3 = scmp.ne.s32.totalorder %s4134_s11, 0  ;;  %s2291_s6 = scalar_lea.sflag [#allocation5], %s2290_s27 }
 0x32d   : > { %p2454_p0 = pnand %p2458_p8, %p4144_p3 }
 0x32f   : > { %p2455_p12 = pneg %p2454_p0 }
 0x331   : > { %2760 = dma.done.wait (%p2455_p12), %s2291_s6, 128  }
 0x332   : > { %2762 = vsyncadd (%p2455_p12), %s2291_s6, 4294967168  ;;  %s22_s25 = sadd.s32 1, %s2817_s25   ;;  %s4146_s9 = sld [smem:[#allocation14_spill]] }
 0x333   : > { %p4051_p2 = scmp.ge.s32.totalorder %s22_s25, 100   ;;  %s4147_s20 = sld [smem:[#allocation19_spill]] }
 0x334   : > { %s4148_s11 = sld [smem:[#allocation17_spill]]  ;;  %s4151_s12 = smov %s2769_s13 }
 0x335   : > { %s4149_s8 = sld [smem:[#allocation18_spill]]  ;;  %s4152_s13 = smov %s2773_s14 }
 0x336   : > { %s4153_s14 = smov %s3033_s5  ;;  %s4154_s15 = smov %s2781_s16 }
 0x337   : > { %s4155_s16 = smov %s2785_s17  ;;  %s4156_s17 = smov %s3017_s7 }
 0x338   : > { %s4157_s18 = smov %s2793_s19  ;;  %s4158_s19 = smov %s4146_s9 }
 0x339   : > { %s4159_s21 = smov %s2809_s23  ;;  %s4160_s22 = smov %s2813_s24 }
 0x33a   : > { %s4161_s23 = smov %s4148_s11  ;;  %21 = sbr.rel (!%p4051_p2) target bundleno = 16 (0x10), region = 109 }
 0x33b   : > { %s4162_s24 = smov %s4149_s8 }
 0x33f   :  { %2296 = vsyncpa [#allocation4], 1 }
 0x340   :  { %2298 = vsyncpa [#allocation4 + $0x1], 1 }
 0x341   :  { %2299 = vsyncpa [#allocation7], 1 }
 0x342   :  { %2301 = vsyncpa [#allocation7 + $0x1], 1 }
 0x343   :  { %2302 = vsyncpa [#allocation5], 1 }
 0x344   :  { %2304 = vsyncpa [#allocation5 + $0x1], 1 }

</bundles_post_ra>
